<compile_context>
chip_gen: v5e
topology: v5e:2x2
jax: 0.10.0
libtpu: 0.0.40
codegen_flags: <defaults>
</compile_context>

<pallas_src>
import jax
import jax.numpy as jnp
from jax import lax
from jax.experimental import pallas as pl
from jax.experimental.pallas import tpu as pltpu

WINDOW = 3                         # interleave window
KERNEL_SIZE = 3                    # Conv1d kernel size
NTAPS = WINDOW + KERNEL_SIZE - 1   # effective taps after folding interleave = 5
LANE = 128


def _round_up(x, m):
    return (x + m - 1) // m * m


# ----------------------------------------------------------------------------
# Kernel bodies
# ----------------------------------------------------------------------------
def _branch_compute(x, wc, bc, ws, bs):
    """Folded conv(5 taps) -> tanh -> Linear -> tanh -> max over time.

    x  : (N, T, E)        bf16 raw embeddings
    wc : (E, NTAPS*Lp)    bf16 folded conv weights, taps concatenated on lanes
    bc : (1, Lp)          f32 conv bias (zero-padded)
    ws : (Lp, Op)         bf16 linear weight (zero-padded)
    bs : (1, Op)          f32 linear bias (zero-padded)
    returns (N, Op) f32 latent representation (padded cols are exactly 0).
    """
    N, T, E = x.shape
    Lp = bc.shape[-1]
    Op = bs.shape[-1]
    t_out = T - NTAPS + 1

    # One large 2-D MXU matmul over the FULL time axis (M = N*T rows).
    y = jnp.dot(x.reshape(N * T, E), wc, preferred_element_type=jnp.float32)
    y = y.reshape(N, T, NTAPS * Lp)

    # Conv = shift-and-add of 128-aligned lane slices of the (small) result.
    # (sublane shifts go to the XLU slot -> free filler under the MXU.)
    acc = y[:, 0:t_out, 0:Lp]
    for s in range(1, NTAPS):
        acc = acc + y[:, s:s + t_out, s * Lp:(s + 1) * Lp]
    h = jnp.tanh(acc + bc[None, :, :])                        # (N, t_out, Lp) f32

    # Linear, again as one flattened 2-D matmul (bf16 in, f32 accumulate).
    z = jnp.dot(h.reshape(N * t_out, Lp).astype(jnp.bfloat16), ws,
                preferred_element_type=jnp.float32)
    z = jnp.tanh(z.reshape(N, t_out, Op) + bs[None, :, :])
    return jnp.max(z, axis=1)                                 # (N, Op)


def _cdssm_kernel(xq_ref, xd_ref,
                  qwc_ref, qbc_ref, qws_ref, qbs_ref,
                  dwc_ref, dbc_ref, dws_ref, dbs_ref,
                  score_ref):
    """Fused query branch + doc branch + cosine-similarity epilogue.

    xq_ref    : (TB, Tq, E)        bf16
    xd_ref    : (TB, ND, Td, E)    bf16
    *_wc/_bc/_ws/_bs : folded/padded per-branch weights (resident)
    score_ref : (TB, ND)           f32
    """
    TB, ND, Td, E = xd_ref.shape

    q_lat = _branch_compute(xq_ref[...], qwc_ref[...], qbc_ref[...],
                            qws_ref[...], qbs_ref[...])               # (TB, Op)
    d_lat = _branch_compute(xd_ref[...].reshape(TB * ND, Td, E),
                            dwc_ref[...], dbc_ref[...],
                            dws_ref[...], dbs_ref[...])               # (TB*ND, Op)
    d_lat = d_lat.reshape(TB, ND, -1)

    # Cosine: VPU multiply-reduce + EUP rsqrt (padded zero columns contribute 0).
    dot = jnp.sum(q_lat[:, None, :] * d_lat, axis=-1)                 # (TB, ND)
    q2 = jnp.sum(q_lat * q_lat, axis=-1)[:, None]                     # (TB, 1)
    d2 = jnp.sum(d_lat * d_lat, axis=-1)                              # (TB, ND)
    score_ref[...] = (dot * lax.rsqrt(jnp.maximum(q2 * d2, 1e-16))
                      ).astype(score_ref.dtype)


# ----------------------------------------------------------------------------
# Parameter preparation (fold interleave into conv weights, pad lanes, bf16)
# ----------------------------------------------------------------------------
def _fold_conv_weight(w_conv, emsize):
    """(L, 3*emsize, 3) torch-layout Conv1d weight -> (NTAPS, emsize, L).

    interleave(window=3) followed by Conv1d(ks=3) is a linear map over the raw
    embedding: tap s collects every (window w, kernel k) pair with k + w == s.
    """
    L = w_conv.shape[0]
    w = w_conv.reshape(L, WINDOW, emsize, KERNEL_SIZE)        # (L, w, e, k)
    taps = []
    for s in range(NTAPS):
        acc = jnp.zeros((emsize, L), w_conv.dtype)
        for k in range(KERNEL_SIZE):
            wnd = s - k
            if 0 <= wnd < WINDOW:
                acc = acc + jnp.transpose(w[:, wnd, :, k])    # (e, L)
        taps.append(acc)
    return jnp.stack(taps, axis=0)                            # (NTAPS, E, L)


def prepare_kernel_params(params):
    """Convert torch-layout f32 params to kernel layout (folded, padded, bf16)."""
    emsize = params["emb"].shape[1]
    nhid = params["q_conv_w"].shape[0]
    nout = params["q_sem_w"].shape[0]
    Lp = _round_up(nhid, LANE)
    Op = _round_up(nout, LANE)

    def branch(prefix):
        taps = _fold_conv_weight(params[f"{prefix}_conv_w"], emsize)  # (5, E, L)
        taps = jnp.pad(taps, ((0, 0), (0, 0), (0, Lp - nhid)))
        wc = jnp.concatenate([taps[s] for s in range(NTAPS)], axis=1)  # (E, 5*Lp)
        bc = jnp.pad(params[f"{prefix}_conv_b"], (0, Lp - nhid)).reshape(1, Lp)
        ws = jnp.pad(jnp.transpose(params[f"{prefix}_sem_w"]),
                     ((0, Lp - nhid), (0, Op - nout)))                 # (Lp, Op)
        bs = jnp.pad(params[f"{prefix}_sem_b"], (0, Op - nout)).reshape(1, Op)
        return (wc.astype(jnp.bfloat16), bc.astype(jnp.float32),
                ws.astype(jnp.bfloat16), bs.astype(jnp.float32))

    q_wc, q_bc, q_ws, q_bs = branch("q")
    d_wc, d_bc, d_ws, d_bs = branch("d")
    return {
        "emb": params["emb"].astype(jnp.bfloat16),
        "q_wc": q_wc, "q_bc": q_bc, "q_ws": q_ws, "q_bs": q_bs,
        "d_wc": d_wc, "d_bc": d_bc, "d_ws": d_ws, "d_bs": d_bs,
    }


# ----------------------------------------------------------------------------
# Wrapper
# ----------------------------------------------------------------------------
def _pick_tile_b(B, nd, tq, td, E, Lp, Op, budget_bytes=16 * 1024 * 1024):
    """Batch-tile size: as large as fits a conservative per-TC VMEM budget
    (safe on v7x's 64 MiB VMEM and below the explicit vmem_limit we request)."""
    rows = tq + nd * td
    per_row = (2 * rows * E * 2                 # double-buffered bf16 inputs
               + rows * NTAPS * Lp * 4          # conv matmul result (f32)
               + rows * Lp * 4                  # tanh'd conv activations
               + rows * Op * 4                  # sem activations
               + (1 + nd) * Op * 4              # latents
               + 2 * nd * 4)                    # double-buffered scores
    tb = max(8, (budget_bytes // max(per_row, 1)) // 8 * 8)
    return int(min(tb, _round_up(B, 8)))


def cdssm_pallas(kparams, batch_queries, batch_docs):
    """batch_queries: (B, qlen) int32; batch_docs: (B, ND, dlen) int32 -> (B, ND) f32."""
    B, qlen = batch_queries.shape
    _, ND, dlen = batch_docs.shape
    emb = kparams["emb"]
    E = emb.shape[1]
    Lp = kparams["q_bc"].shape[-1]
    Op = kparams["q_bs"].shape[-1]

    # Embedding gather in plain JAX (emb_drop = identity in eval mode).
    # TODO(synk): very long docs could gather rows in-kernel via scalar-prefetched
    # token ids + DMA; at these sizes the XLA gather is the better trade.
    xq = emb[batch_queries]                     # (B, qlen, E)  bf16
    xd = emb[batch_docs]                        # (B, ND, dlen, E) bf16

    TB = _pick_tile_b(B, ND, qlen, dlen, E, Lp, Op)
    B_pad = _round_up(B, TB)
    if B_pad != B:
        xq = jnp.pad(xq, ((0, B_pad - B), (0, 0), (0, 0)))
        xd = jnp.pad(xd, ((0, B_pad - B), (0, 0), (0, 0), (0, 0)))

    # Advisory cost hint for XLA's scheduler around the custom call.
    rows_conv = B_pad * (qlen + ND * dlen)
    rows_lin = B_pad * ((qlen - NTAPS + 1) + ND * (dlen - NTAPS + 1))
    weight_bytes = sum(int(kparams[k].size) * kparams[k].dtype.itemsize
                       for k in ("q_wc", "q_bc", "q_ws", "q_bs",
                                 "d_wc", "d_bc", "d_ws", "d_bs"))
    cost = pl.CostEstimate(
        flops=int(2 * rows_conv * E * NTAPS * Lp + 2 * rows_lin * Lp * Op),
        transcendentals=int(rows_lin * (Lp + Op)),
        bytes_accessed=int(xq.size * 2 + xd.size * 2
                           + B_pad * ND * 4 + weight_bytes))

    const2 = lambda i: (0, 0)
    scores = pl.pallas_call(
        _cdssm_kernel,
        out_shape=jax.ShapeDtypeStruct((B_pad, ND), jnp.float32),
        grid=(B_pad // TB,),
        in_specs=[
            pl.BlockSpec((TB, qlen, E), lambda i: (i, 0, 0)),          # xq
            pl.BlockSpec((TB, ND, dlen, E), lambda i: (i, 0, 0, 0)),   # xd
            pl.BlockSpec(kparams["q_wc"].shape, const2),               # resident weights
            pl.BlockSpec(kparams["q_bc"].shape, const2),
            pl.BlockSpec(kparams["q_ws"].shape, const2),
            pl.BlockSpec(kparams["q_bs"].shape, const2),
            pl.BlockSpec(kparams["d_wc"].shape, const2),
            pl.BlockSpec(kparams["d_bc"].shape, const2),
            pl.BlockSpec(kparams["d_ws"].shape, const2),
            pl.BlockSpec(kparams["d_bs"].shape, const2),
        ],
        out_specs=pl.BlockSpec((TB, ND), lambda i: (i, 0)),
        compiler_params=pltpu.CompilerParams(
            dimension_semantics=("parallel",),          # megacore-shard batch tiles
            vmem_limit_bytes=32 * 1024 * 1024),
        cost_estimate=cost,
    )(xq, xd,
      kparams["q_wc"], kparams["q_bc"], kparams["q_ws"], kparams["q_bs"],
      kparams["d_wc"], kparams["d_bc"], kparams["d_ws"], kparams["d_bs"])
    return scores[:B]


# ----------------------------------------------------------------------------
# Module-style parameter init + pure-JAX reference (original semantics, f32)
# ----------------------------------------------------------------------------
def init_module_params(key, emsize, vocab_size, nhid, nout, pad_idx=0):
    """Parameters in the same layout as the PyTorch module."""
    K = WINDOW * emsize
    ks = jax.random.split(key, 9)

    def unif(k, shape, fan_in):
        bound = 1.0 / jnp.sqrt(float(fan_in))
        return jax.random.uniform(k, shape, jnp.float32, -bound, bound)

    emb = jax.random.normal(ks[0], (vocab_size, emsize), jnp.float32) * 0.1
    emb = emb.at[pad_idx].set(0.0)
    return {
        "emb": emb,
        "q_conv_w": unif(ks[1], (nhid, K, KERNEL_SIZE), K * KERNEL_SIZE),  # Conv1d layout
        "q_conv_b": unif(ks[2], (nhid,), K * KERNEL_SIZE),
        "q_sem_w": unif(ks[3], (nout, nhid), nhid),                        # Linear layout
        "q_sem_b": unif(ks[4], (nout,), nhid),
        "d_conv_w": unif(ks[5], (nhid, K, KERNEL_SIZE), K * KERNEL_SIZE),
        "d_conv_b": unif(ks[6], (nhid,), K * KERNEL_SIZE),
        "d_sem_w": unif(ks[7], (nout, nhid), nhid),
        "d_sem_b": unif(ks[8], (nout,), nhid),
    }


def cdssm_reference(params, batch_queries, batch_docs):
    """Pure-JAX f32 reference of the ORIGINAL (unfolded, unpadded) forward pass."""
    def interleave(x):
        off = x.shape[1] - WINDOW + 1
        return jnp.concatenate([x[:, i:off + i, :] for i in range(WINDOW)], -1)

    def branch(tokens, wc, bc, ws, bs):
        x = interleave(params["emb"][tokens])                 # (N, T', 3E)
        t_out = x.shape[1] - KERNEL_SIZE + 1
        conv = sum(jnp.einsum("ntc,lc->ntl", x[:, k:k + t_out, :], wc[:, :, k])
                   for k in range(KERNEL_SIZE)) + bc[None, None, :]
        z = jnp.tanh(jnp.einsum("ntl,ol->nto", jnp.tanh(conv), ws) + bs[None, None, :])
        return jnp.max(z, axis=1)

    B, _ = batch_queries.shape
    _, ND, dlen = batch_docs.shape
    q_lat = branch(batch_queries, params["q_conv_w"], params["q_conv_b"],
                   params["q_sem_w"], params["q_sem_b"])
    d_lat = branch(batch_docs.reshape(B * ND, dlen), params["d_conv_w"],
                   params["d_conv_b"], params["d_sem_w"],
                   params["d_sem_b"]).reshape(B, ND, -1)
    dot = jnp.einsum("bo,bno->bn", q_lat, d_lat)
    denom = (jnp.maximum(jnp.linalg.norm(q_lat, axis=-1, keepdims=True), 1e-8)
             * jnp.maximum(jnp.linalg.norm(d_lat, axis=-1), 1e-8))
    return dot / denom


if __name__ == "__main__":
    key = jax.random.PRNGKey(0)
    k_param, k_q, k_d = jax.random.split(key, 3)

    # small shapes consistent with the module
    emsize, nhid, nout, vocab = 32, 64, 32, 100
    B, ND, qlen, dlen = 2, 3, 10, 12

    params = init_module_params(k_param, emsize, vocab, nhid, nout)
    kparams = prepare_kernel_params(params)
    batch_queries = jax.random.randint(k_q, (B, qlen), 1, vocab, jnp.int32)
    batch_docs = jax.random.randint(k_d, (B, ND, dlen), 1, vocab, jnp.int32)

    scores = jax.jit(cdssm_pallas)(kparams, batch_queries, batch_docs)
    scores = jax.block_until_ready(scores)
    assert scores.shape == (B, ND)
    assert bool(jnp.all(jnp.isfinite(scores)))

    # bf16 matmul inputs (f32 accumulation) vs f32 reference -> relaxed tolerance.
    ref = cdssm_reference(params, batch_queries, batch_docs)
    assert jnp.allclose(scores, ref, atol=3e-2, rtol=3e-2), (scores, ref)

    print("KERNEL_OK")
</pallas_src>

<mosaic_0001>
module attributes {stable_mosaic.version = 11 : i64} {
  func.func @_cdssm_kernel(%arg0: i32, %arg1: memref<8x10x32xbf16, #tpu.memory_space<vmem>>, %arg2: memref<8x3x12x32xbf16, #tpu.memory_space<vmem>>, %arg3: memref<32x640xbf16, #tpu.memory_space<vmem>>, %arg4: memref<1x128xf32, #tpu.memory_space<vmem>>, %arg5: memref<128x128xbf16, #tpu.memory_space<vmem>>, %arg6: memref<1x128xf32, #tpu.memory_space<vmem>>, %arg7: memref<32x640xbf16, #tpu.memory_space<vmem>>, %arg8: memref<1x128xf32, #tpu.memory_space<vmem>>, %arg9: memref<128x128xbf16, #tpu.memory_space<vmem>>, %arg10: memref<1x128xf32, #tpu.memory_space<vmem>>, %arg11: memref<8x3xf32, #tpu.memory_space<vmem>>) attributes {dimension_semantics = [#tpu.dimension_semantics<parallel>], iteration_bounds = array<i64: 1>, scalar_prefetch = 0 : i64, scratch_operands = 0 : i64, tpu.core_type = #tpu.core_type<tc>, window_params = [{transform_indices = @transform_0, window_bounds = array<i64: 8, 10, 32>}, {transform_indices = @transform_1, window_bounds = array<i64: 8, 3, 12, 32>}, {pipeline_mode = #tpu.pipeline_mode<synchronous>, transform_indices = @transform_2, window_bounds = array<i64: 32, 640>}, {pipeline_mode = #tpu.pipeline_mode<synchronous>, transform_indices = @transform_3, window_bounds = array<i64: 1, 128>}, {pipeline_mode = #tpu.pipeline_mode<synchronous>, transform_indices = @transform_4, window_bounds = array<i64: 128, 128>}, {pipeline_mode = #tpu.pipeline_mode<synchronous>, transform_indices = @transform_5, window_bounds = array<i64: 1, 128>}, {pipeline_mode = #tpu.pipeline_mode<synchronous>, transform_indices = @transform_6, window_bounds = array<i64: 32, 640>}, {pipeline_mode = #tpu.pipeline_mode<synchronous>, transform_indices = @transform_7, window_bounds = array<i64: 1, 128>}, {pipeline_mode = #tpu.pipeline_mode<synchronous>, transform_indices = @transform_8, window_bounds = array<i64: 128, 128>}, {pipeline_mode = #tpu.pipeline_mode<synchronous>, transform_indices = @transform_9, window_bounds = array<i64: 1, 128>}, {transform_indices = @transform_10, window_bounds = array<i64: 8, 3>}]} {
    %c0 = arith.constant 0 : index
    %c0_0 = arith.constant 0 : index
    %c0_1 = arith.constant 0 : index
    %0 = vector.load %arg1[%c0, %c0_0, %c0_1] : memref<8x10x32xbf16, #tpu.memory_space<vmem>>, vector<8x10x32xbf16>
    %c0_2 = arith.constant 0 : index
    %c0_3 = arith.constant 0 : index
    %1 = vector.load %arg3[%c0_2, %c0_3] : memref<32x640xbf16, #tpu.memory_space<vmem>>, vector<32x640xbf16>
    %c0_4 = arith.constant 0 : index
    %c0_5 = arith.constant 0 : index
    %2 = vector.load %arg4[%c0_4, %c0_5] : memref<1x128xf32, #tpu.memory_space<vmem>>, vector<1x128xf32>
    %c0_6 = arith.constant 0 : index
    %c0_7 = arith.constant 0 : index
    %3 = vector.load %arg5[%c0_6, %c0_7] : memref<128x128xbf16, #tpu.memory_space<vmem>>, vector<128x128xbf16>
    %c0_8 = arith.constant 0 : index
    %c0_9 = arith.constant 0 : index
    %4 = vector.load %arg6[%c0_8, %c0_9] : memref<1x128xf32, #tpu.memory_space<vmem>>, vector<1x128xf32>
    %5 = vector.shape_cast %0 : vector<8x10x32xbf16> to vector<80x32xbf16>
    %cst = arith.constant dense<0.000000e+00> : vector<80x640xf32>
    %6 = tpu.matmul %5, %1, %cst {dimension_numbers = #tpu.dot_dimension_numbers<[1], [0], [0], [1], [0, 0, 1, 1], [], []>} : vector<80x32xbf16>, vector<32x640xbf16>, vector<80x640xf32> -> vector<80x640xf32>
    %7 = vector.shape_cast %6 : vector<80x640xf32> to vector<8x10x640xf32>
    %8 = vector.extract_strided_slice %7 {offsets = [0, 0, 0], sizes = [8, 6, 128], strides = [1, 1, 1]} : vector<8x10x640xf32> to vector<8x6x128xf32>
    %9 = vector.extract_strided_slice %7 {offsets = [0, 1, 128], sizes = [8, 6, 128], strides = [1, 1, 1]} : vector<8x10x640xf32> to vector<8x6x128xf32>
    %10 = arith.addf %8, %9 : vector<8x6x128xf32>
    %11 = vector.extract_strided_slice %7 {offsets = [0, 2, 256], sizes = [8, 6, 128], strides = [1, 1, 1]} : vector<8x10x640xf32> to vector<8x6x128xf32>
    %12 = arith.addf %10, %11 : vector<8x6x128xf32>
    %13 = vector.extract_strided_slice %7 {offsets = [0, 3, 384], sizes = [8, 6, 128], strides = [1, 1, 1]} : vector<8x10x640xf32> to vector<8x6x128xf32>
    %14 = arith.addf %12, %13 : vector<8x6x128xf32>
    %15 = vector.extract_strided_slice %7 {offsets = [0, 4, 512], sizes = [8, 6, 128], strides = [1, 1, 1]} : vector<8x10x640xf32> to vector<8x6x128xf32>
    %16 = arith.addf %14, %15 : vector<8x6x128xf32>
    %17 = vector.shape_cast %2 : vector<1x128xf32> to vector<1x1x128xf32>
    %18 = vector.broadcast %17 : vector<1x1x128xf32> to vector<8x6x128xf32>
    %19 = arith.addf %16, %18 : vector<8x6x128xf32>
    %20 = math.tanh %19 : vector<8x6x128xf32>
    %21 = vector.shape_cast %20 : vector<8x6x128xf32> to vector<48x128xf32>
    %22 = arith.truncf %21 : vector<48x128xf32> to vector<48x128xbf16>
    %cst_10 = arith.constant dense<0.000000e+00> : vector<48x128xf32>
    %23 = tpu.matmul %22, %3, %cst_10 {dimension_numbers = #tpu.dot_dimension_numbers<[1], [0], [0], [1], [0, 0, 1, 1], [], []>} : vector<48x128xbf16>, vector<128x128xbf16>, vector<48x128xf32> -> vector<48x128xf32>
    %24 = vector.shape_cast %23 : vector<48x128xf32> to vector<8x6x128xf32>
    %25 = vector.shape_cast %4 : vector<1x128xf32> to vector<1x1x128xf32>
    %26 = vector.broadcast %25 : vector<1x1x128xf32> to vector<8x6x128xf32>
    %27 = arith.addf %24, %26 : vector<8x6x128xf32>
    %28 = math.tanh %27 : vector<8x6x128xf32>
    %cst_11 = arith.constant dense<0xFF800000> : vector<8x128xf32>
    %29 = vector.multi_reduction <maximumf>, %28, %cst_11 [1] : vector<8x6x128xf32> to vector<8x128xf32>
    %c0_12 = arith.constant 0 : index
    %c0_13 = arith.constant 0 : index
    %c0_14 = arith.constant 0 : index
    %c0_15 = arith.constant 0 : index
    %30 = vector.load %arg2[%c0_12, %c0_13, %c0_14, %c0_15] : memref<8x3x12x32xbf16, #tpu.memory_space<vmem>>, vector<8x3x12x32xbf16>
    %31 = vector.shape_cast %30 : vector<8x3x12x32xbf16> to vector<24x12x32xbf16>
    %c0_16 = arith.constant 0 : index
    %c0_17 = arith.constant 0 : index
    %32 = vector.load %arg7[%c0_16, %c0_17] : memref<32x640xbf16, #tpu.memory_space<vmem>>, vector<32x640xbf16>
    %c0_18 = arith.constant 0 : index
    %c0_19 = arith.constant 0 : index
    %33 = vector.load %arg8[%c0_18, %c0_19] : memref<1x128xf32, #tpu.memory_space<vmem>>, vector<1x128xf32>
    %c0_20 = arith.constant 0 : index
    %c0_21 = arith.constant 0 : index
    %34 = vector.load %arg9[%c0_20, %c0_21] : memref<128x128xbf16, #tpu.memory_space<vmem>>, vector<128x128xbf16>
    %c0_22 = arith.constant 0 : index
    %c0_23 = arith.constant 0 : index
    %35 = vector.load %arg10[%c0_22, %c0_23] : memref<1x128xf32, #tpu.memory_space<vmem>>, vector<1x128xf32>
    %36 = vector.shape_cast %31 : vector<24x12x32xbf16> to vector<288x32xbf16>
    %cst_24 = arith.constant dense<0.000000e+00> : vector<288x640xf32>
    %37 = tpu.matmul %36, %32, %cst_24 {dimension_numbers = #tpu.dot_dimension_numbers<[1], [0], [0], [1], [0, 0, 1, 1], [], []>} : vector<288x32xbf16>, vector<32x640xbf16>, vector<288x640xf32> -> vector<288x640xf32>
    %38 = vector.shape_cast %37 : vector<288x640xf32> to vector<24x12x640xf32>
    %39 = vector.extract_strided_slice %38 {offsets = [0, 0, 0], sizes = [24, 8, 128], strides = [1, 1, 1]} : vector<24x12x640xf32> to vector<24x8x128xf32>
    %40 = vector.extract_strided_slice %38 {offsets = [0, 1, 128], sizes = [24, 8, 128], strides = [1, 1, 1]} : vector<24x12x640xf32> to vector<24x8x128xf32>
    %41 = arith.addf %39, %40 : vector<24x8x128xf32>
    %42 = vector.extract_strided_slice %38 {offsets = [0, 2, 256], sizes = [24, 8, 128], strides = [1, 1, 1]} : vector<24x12x640xf32> to vector<24x8x128xf32>
    %43 = arith.addf %41, %42 : vector<24x8x128xf32>
    %44 = vector.extract_strided_slice %38 {offsets = [0, 3, 384], sizes = [24, 8, 128], strides = [1, 1, 1]} : vector<24x12x640xf32> to vector<24x8x128xf32>
    %45 = arith.addf %43, %44 : vector<24x8x128xf32>
    %46 = vector.extract_strided_slice %38 {offsets = [0, 4, 512], sizes = [24, 8, 128], strides = [1, 1, 1]} : vector<24x12x640xf32> to vector<24x8x128xf32>
    %47 = arith.addf %45, %46 : vector<24x8x128xf32>
    %48 = vector.shape_cast %33 : vector<1x128xf32> to vector<1x1x128xf32>
    %49 = vector.broadcast %48 : vector<1x1x128xf32> to vector<24x8x128xf32>
    %50 = arith.addf %47, %49 : vector<24x8x128xf32>
    %51 = math.tanh %50 : vector<24x8x128xf32>
    %52 = vector.shape_cast %51 : vector<24x8x128xf32> to vector<192x128xf32>
    %53 = arith.truncf %52 : vector<192x128xf32> to vector<192x128xbf16>
    %cst_25 = arith.constant dense<0.000000e+00> : vector<192x128xf32>
    %54 = tpu.matmul %53, %34, %cst_25 {dimension_numbers = #tpu.dot_dimension_numbers<[1], [0], [0], [1], [0, 0, 1, 1], [], []>} : vector<192x128xbf16>, vector<128x128xbf16>, vector<192x128xf32> -> vector<192x128xf32>
    %55 = vector.shape_cast %54 : vector<192x128xf32> to vector<24x8x128xf32>
    %56 = vector.shape_cast %35 : vector<1x128xf32> to vector<1x1x128xf32>
    %57 = vector.broadcast %56 : vector<1x1x128xf32> to vector<24x8x128xf32>
    %58 = arith.addf %55, %57 : vector<24x8x128xf32>
    %59 = math.tanh %58 : vector<24x8x128xf32>
    %cst_26 = arith.constant dense<0xFF800000> : vector<24x128xf32>
    %60 = vector.multi_reduction <maximumf>, %59, %cst_26 [1] : vector<24x8x128xf32> to vector<24x128xf32>
    %61 = vector.shape_cast %60 : vector<24x128xf32> to vector<8x3x128xf32>
    %62 = vector.shape_cast %29 : vector<8x128xf32> to vector<8x1x128xf32>
    %63 = vector.broadcast %62 : vector<8x1x128xf32> to vector<8x3x128xf32>
    %64 = arith.mulf %63, %61 : vector<8x3x128xf32>
    %cst_27 = arith.constant dense<0.000000e+00> : vector<8x3xf32>
    %65 = vector.multi_reduction <add>, %64, %cst_27 [2] : vector<8x3x128xf32> to vector<8x3xf32>
    %66 = arith.mulf %29, %29 : vector<8x128xf32>
    %cst_28 = arith.constant dense<0.000000e+00> : vector<8xf32>
    %67 = vector.multi_reduction <add>, %66, %cst_28 [1] : vector<8x128xf32> to vector<8xf32>
    %68 = vector.shape_cast %67 : vector<8xf32> to vector<8x1xf32>
    %69 = arith.mulf %61, %61 : vector<8x3x128xf32>
    %cst_29 = arith.constant dense<0.000000e+00> : vector<8x3xf32>
    %70 = vector.multi_reduction <add>, %69, %cst_29 [2] : vector<8x3x128xf32> to vector<8x3xf32>
    %71 = vector.broadcast %68 : vector<8x1xf32> to vector<8x3xf32>
    %72 = arith.mulf %71, %70 : vector<8x3xf32>
    %cst_30 = arith.constant 1.000000e-16 : f32
    %73 = vector.broadcast %cst_30 : f32 to vector<8x3xf32>
    %74 = arith.maximumf %72, %73 : vector<8x3xf32>
    %75 = math.rsqrt %74 : vector<8x3xf32>
    %76 = arith.mulf %65, %75 : vector<8x3xf32>
    %c0_31 = arith.constant 0 : index
    %c0_32 = arith.constant 0 : index
    %77 = vector.load %arg11[%c0_31, %c0_32] : memref<8x3xf32, #tpu.memory_space<vmem>>, vector<8x3xf32>
    tpu.vector_store %arg11[%c0_31, %c0_32], %76 {strides = array<i32>} : memref<8x3xf32, #tpu.memory_space<vmem>>, vector<8x3xf32>,
    return
  }
  func.func @transform_0(%arg0: i32) -> (i32, i32, i32) {
    %c0_i32 = arith.constant 0 : i32
    %c0_i32_0 = arith.constant 0 : i32
    %c0_i32_1 = arith.constant 0 : i32
    return %arg0, %c0_i32, %c0_i32_0 : i32, i32, i32
  }
  func.func @transform_1(%arg0: i32) -> (i32, i32, i32, i32) {
    %c0_i32 = arith.constant 0 : i32
    %c0_i32_0 = arith.constant 0 : i32
    %c0_i32_1 = arith.constant 0 : i32
    %c0_i32_2 = arith.constant 0 : i32
    return %arg0, %c0_i32, %c0_i32_0, %c0_i32_1 : i32, i32, i32, i32
  }
  func.func @transform_2(%arg0: i32) -> (i32, i32) {
    %c0_i32 = arith.constant 0 : i32
    %c0_i32_0 = arith.constant 0 : i32
    %c0_i32_1 = arith.constant 0 : i32
    return %c0_i32, %c0_i32_0 : i32, i32
  }
  func.func @transform_3(%arg0: i32) -> (i32, i32) {
    %c0_i32 = arith.constant 0 : i32
    %c0_i32_0 = arith.constant 0 : i32
    %c0_i32_1 = arith.constant 0 : i32
    return %c0_i32, %c0_i32_0 : i32, i32
  }
  func.func @transform_4(%arg0: i32) -> (i32, i32) {
    %c0_i32 = arith.constant 0 : i32
    %c0_i32_0 = arith.constant 0 : i32
    %c0_i32_1 = arith.constant 0 : i32
    return %c0_i32, %c0_i32_0 : i32, i32
  }
  func.func @transform_5(%arg0: i32) -> (i32, i32) {
    %c0_i32 = arith.constant 0 : i32
    %c0_i32_0 = arith.constant 0 : i32
    %c0_i32_1 = arith.constant 0 : i32
    return %c0_i32, %c0_i32_0 : i32, i32
  }
  func.func @transform_6(%arg0: i32) -> (i32, i32) {
    %c0_i32 = arith.constant 0 : i32
    %c0_i32_0 = arith.constant 0 : i32
    %c0_i32_1 = arith.constant 0 : i32
    return %c0_i32, %c0_i32_0 : i32, i32
  }
  func.func @transform_7(%arg0: i32) -> (i32, i32) {
    %c0_i32 = arith.constant 0 : i32
    %c0_i32_0 = arith.constant 0 : i32
    %c0_i32_1 = arith.constant 0 : i32
    return %c0_i32, %c0_i32_0 : i32, i32
  }
  func.func @transform_8(%arg0: i32) -> (i32, i32) {
    %c0_i32 = arith.constant 0 : i32
    %c0_i32_0 = arith.constant 0 : i32
    %c0_i32_1 = arith.constant 0 : i32
    return %c0_i32, %c0_i32_0 : i32, i32
  }
  func.func @transform_9(%arg0: i32) -> (i32, i32) {
    %c0_i32 = arith.constant 0 : i32
    %c0_i32_0 = arith.constant 0 : i32
    %c0_i32_1 = arith.constant 0 : i32
    return %c0_i32, %c0_i32_0 : i32, i32
  }
  func.func @transform_10(%arg0: i32) -> (i32, i32) {
    %c0_i32 = arith.constant 0 : i32
    %c0_i32_0 = arith.constant 0 : i32
    return %arg0, %c0_i32 : i32, i32
  }
}

</mosaic_0001>

<bundles_post_ra>
// kernel: cdssm_pallas.1
= control target key start
LH: loop header
LB: loop body
LE: loop exit
PB: predicated region body
PF: predicated region fallthrough
CT: control target
= control target key end

     0   :  { %vm114_vm0 = vcmask 1040384   ;;  %vm118_vm1 = vcmask 1041409   ;;  %vm122_vm2 = vcmask 1042434   ;;  %vm126_vm3 = vcmask 1043459   ;;  %s9178_s2 = inlined_call_operand.vmem [shape: bf16[32,640], index: 2, kind: input, shape index: {}]   ;;  %s9179_s0 = inlined_call_operand.vmem [shape: bf16[8,10,32], index: 0, kind: input, shape index: {}]   ;;  %s9180_s3 = inlined_call_operand.vmem [shape: f32[1,128], index: 3, kind: input, shape index: {}]   ;;  %s9181_s5 = inlined_call_operand.vmem [shape: f32[1,128], index: 5, kind: input, shape index: {}]   ;;  %s9182_s4 = inlined_call_operand.vmem [shape: bf16[128,128], index: 4, kind: input, shape index: {}]   ;;  %s9183_s6 = inlined_call_operand.vmem [shape: bf16[32,640], index: 6, kind: input, shape index: {}]   ;;  %s9184_s1 = inlined_call_operand.vmem [shape: bf16[8,3,12,32], index: 1, kind: input, shape index: {}]   ;;  %s9185_s8 = inlined_call_operand.vmem [shape: bf16[128,128], index: 8, kind: input, shape index: {}]   ;;  %s9186_s7 = inlined_call_operand.vmem [shape: f32[1,128], index: 7, kind: input, shape index: {}]   ;;  %s9187_s9 = inlined_call_operand.vmem [shape: f32[1,128], index: 9, kind: input, shape index: {}]   ;;  %s9188_s10 = inlined_call_operand.vmem [shape: f32[8,3], index: 10, kind: output, shape index: {}]  }
   0x1   :  { %v5165_v0 = vld [vmem:[%s9178_s2 + $0x28] sm:$0xf]  ;;  %v5507_v1 = vld [vmem:[%s9178_s2 + $0x38] sm:$0xf0]  ;;  %v5505_v2 = vld [vmem:[%s9178_s2 + $0x2c] sm:$0xf] }
   0x2   :  { %v5166_v3 = vor.u32 %v5507_v1, %v5165_v0  ;;  %v5167_v4 = vld [vmem:[%s9178_s2 + $0x3c] sm:$0xf0]  ;;  %v5173_v5 = vld [vmem:[%s9178_s2 + $0x30] sm:$0xf]  ;;  %v5508_v6 = vld [vmem:[%s9178_s2 + $0x40] sm:$0xf0] }
   0x3   :  { %v5170_v7 = vor.u32 %v5505_v2, %v5167_v4  ;;  %v5174_v8 = vor.u32 %v5508_v6, %v5173_v5  ;;  %v5145_v9 = vld [vmem:[%s9178_s2] sm:$0xf]  ;;  %v5502_v10 = vld [vmem:[%s9178_s2 + $0x10] sm:$0xf0]  ;;  %v5500_v11 = vld [vmem:[%s9178_s2 + $0x4] sm:$0xf] }
   0x4   :  { %383 = vmatpush.bf16.msra.mxu0 %v5166_v3  ;;  %v5146_v12 = vor.u32 %v5502_v10, %v5145_v9  ;;  %v5147_v13 = vld [vmem:[%s9178_s2 + $0x14] sm:$0xf0]  ;;  %v5153_v14 = vld [vmem:[%s9178_s2 + $0x8] sm:$0xf]  ;;  %v5503_v15 = vld [vmem:[%s9178_s2 + $0x18] sm:$0xf0] }
   0x5   :  { %417 = vmatpush.bf16.msra.mxu1 %v5170_v7  ;;  %451 = vmatpush.bf16.msra.mxu2 %v5174_v8  ;;  %v5150_v16 = vor.u32 %v5500_v11, %v5147_v13  ;;  %v5154_v17 = vor.u32 %v5503_v15, %v5153_v14  ;;  %v36_v18 = vld [vmem:[%s9179_s0] sm:$0xf]  ;;  %v37_v19 = vld [vmem:[%s9179_s0 + $0x4] sm:$0x1]  ;;  %v38_v20 = vld [vmem:[%s9179_s0 + $0x8] sm:$0xf] }
   0x6   :  { %v98_v21 = vrot.slane %v36_v18, 3  ;;  %v99_v22 = vrot.slane %v37_v19, 3  ;;  %v100_v23 = vrot.slane %v38_v20, 3  ;;  %5536 = vmatpush.bf16.msra.mxu3 %v5170_v7  ;;  %v5506_v24 = vld [vmem:[%s9178_s2 + $0x34] sm:$0xf]  ;;  %vm366_vm4 = vcmask 261120   ;;  %vm843_vm11 = vmor %vm114_vm0, %vm122_vm2 }
   0x7   :  { %v5175_v25 = vld [vmem:[%s9178_s2 + $0x44] sm:$0xf0]  ;;  %v40_v40 = vld [vmem:[%s9179_s0 + $0x10] sm:$0xf]  ;;  %v39_v41 = vld [vmem:[%s9179_s0 + $0xc] sm:$0x1] }
   0x8   :  { %384 = vmatpush.bf16.msra.mxu0 %v5146_v12  ;;  %v117_v26 = vsel %vm114_vm0, %v36_v18, %v98_v21  ;;  %v119_v27 = vsel %vm118_vm1, %v36_v18, %v98_v21  ;;  %v123_v28 = vsel %vm122_vm2, %v36_v18, %v98_v21  ;;  %v127_v29 = vsel %vm126_vm3, %v36_v18, %v98_v21  ;;  %v41_v45 = vld [vmem:[%s9179_s0 + $0x14] sm:$0x1]  ;;  %v42_v48 = vld [vmem:[%s9179_s0 + $0x18] sm:$0xf]  ;;  %v5501_v59 = vld [vmem:[%s9178_s2 + $0xc] sm:$0xf] }
   0x9   :  { %418 = vmatpush.bf16.msra.mxu1 %v5150_v16  ;;  %452 = vmatpush.bf16.msra.mxu2 %v5154_v17  ;;  %v121_v30 = vrot.slane %v119_v27, 1  ;;  %v125_v31 = vrot.slane %v123_v28, 2  ;;  %v129_v32 = vrot.slane %v127_v29, 3  ;;  %v132_v33 = vsel %vm114_vm0, %v37_v19, %v99_v22  ;;  %238 = vst [vmem:[#allocation1] ss:$9 sm:$0xff] %v117_v26 }
   0xa   :  { %v136_v34 = vsel %vm118_vm1, %v38_v20, %v100_v23  ;;  %v139_v35 = vsel %vm122_vm2, %v38_v20, %v100_v23  ;;  %249 = vst [vmem:[#allocation1 + $0x4] ss:$9 sm:$0xff] %v132_v33  ;;  %v5178_v36 = vor.u32 %v5506_v24, %v5175_v25  ;;  %v135_v37 = vsel %vm114_vm0, %v38_v20, %v100_v23  ;;  %v5155_v60 = vld [vmem:[%s9178_s2 + $0x1c] sm:$0xf0]  ;;  %v43_v1 = vld [vmem:[%s9179_s0 + $0x1c] sm:$0x1] }
   0xb   :  { %v138_v38 = vrot.slane %v136_v34, 1  ;;  %241 = vst [vmem:[#allocation1 + $0x1] ss:$9 sm:$0xff] %v121_v30  ;;  %5537 = vmatpush.bf16.msra.mxu3 %v5150_v16  ;;  %v141_v39 = vrot.slane %v139_v35, 2  ;;  %v102_v42 = vrot.slane %v40_v40, 3  ;;  %v142_v43 = vsel %vm126_vm3, %v38_v20, %v100_v23 }
   0xc   :  { %244 = vst [vmem:[#allocation1 + $0x2] ss:$9 sm:$0xff] %v125_v31  ;;  %485 = vmatpush.bf16.msrb.mxu0 %v5178_v36  ;;  %v101_v44 = vrot.slane %v39_v41, 3  ;;  %v144_v46 = vrot.slane %v142_v43, 3  ;;  %v103_v53 = vrot.slane %v41_v45, 3  ;;  %v104_v56 = vrot.slane %v42_v48, 3 }
   0xd   :  { %247 = vst [vmem:[#allocation1 + $0x3] ss:$9 sm:$0xff] %v129_v32  ;;  %v151_v47 = vsel %vm118_vm1, %v40_v40, %v102_v42  ;;  %v154_v49 = vsel %vm122_vm2, %v40_v40, %v102_v42  ;;  %v157_v50 = vsel %vm126_vm3, %v40_v40, %v102_v42  ;;  %v150_v54 = vsel %vm114_vm0, %v40_v40, %v102_v42  ;;  %v44_v0 = vld [vmem:[%s9179_s0 + $0x20] sm:$0xf]  ;;  %v46_v19 = vld [vmem:[%s9179_s0 + $0x28] sm:$0xf] }
   0xe   :  { %251 = vst [vmem:[#allocation1 + $0x5] ss:$9 sm:$0xff] %v135_v37  ;;  %v147_v51 = vsel %vm114_vm0, %v39_v41, %v101_v44  ;;  %v153_v55 = vrot.slane %v151_v47, 1  ;;  %v156_v57 = vrot.slane %v154_v49, 2  ;;  %v159_v58 = vrot.slane %v157_v50, 3 }
   0xf   :  { %5538 = vmatpush.bf16.msrb.mxu3 %v5178_v36  ;;  %254 = vst [vmem:[#allocation1 + $0x6] ss:$9 sm:$0xff] %v138_v38  ;;  %v5158_v61 = vor.u32 %v5501_v59, %v5155_v60  ;;  %v162_v62 = vsel %vm114_vm0, %v41_v45, %v103_v53  ;;  %v165_v63 = vsel %vm114_vm0, %v42_v48, %v104_v56  ;;  %v106_v3 = vrot.slane %v44_v0, 3  ;;  %v45_v20 = vld [vmem:[%s9179_s0 + $0x24] sm:$0x1] }
  0x10   :  { %257 = vst [vmem:[#allocation1 + $0x7] ss:$9 sm:$0xff] %v141_v39  ;;  %v166_v2 = vsel %vm118_vm1, %v42_v48, %v104_v56  ;;  %v169_v4 = vsel %vm122_vm2, %v42_v48, %v104_v56  ;;  %v172_v5 = vsel %vm126_vm3, %v42_v48, %v104_v56  ;;  %v105_v6 = vrot.slane %v43_v1, 3  ;;  %v48_v22 = vld [vmem:[%s9179_s0 + $0x30] sm:$0xf] }
  0x11   :  { %486 = vmatpush.bf16.msrb.mxu0 %v5158_v61  ;;  %v168_v7 = vrot.slane %v166_v2, 1  ;;  %v171_v8 = vrot.slane %v169_v4, 2  ;;  %v174_v9 = vrot.slane %v172_v5, 3  ;;  %v181_v10 = vsel %vm118_vm1, %v44_v0, %v106_v3  ;;  %v47_v24 = vld [vmem:[%s9179_s0 + $0x2c] sm:$0x1] }
  0x12   :  { %v184_v12 = vsel %vm122_vm2, %v44_v0, %v106_v3  ;;  %v177_v13 = vsel %vm114_vm0, %v43_v1, %v105_v6  ;;  %v187_v14 = vsel %vm126_vm3, %v44_v0, %v106_v3  ;;  %v180_v15 = vsel %vm114_vm0, %v44_v0, %v106_v3  ;;  %v50_v40 = vld [vmem:[%s9179_s0 + $0x38] sm:$0xf]  ;;  %v49_v41 = vld [vmem:[%s9179_s0 + $0x34] sm:$0x1]  ;;  %v51_v47 = vld [vmem:[%s9179_s0 + $0x3c] sm:$0x1] }
  0x13   :  { %5539 = vmatpush.bf16.msrb.mxu3 %v5158_v61  ;;  %v183_v16 = vrot.slane %v181_v10, 1  ;;  %v186_v17 = vrot.slane %v184_v12, 2  ;;  %v189_v18 = vrot.slane %v187_v14, 3  ;;  %v108_v21 = vrot.slane %v46_v19, 3  ;;  %v5181_v60 = vld [vmem:[%s9178_s2 + $0x38] sm:$0xf] }
  0x14   :  { %v107_v23 = vrot.slane %v45_v20, 3  ;;  %v110_v26 = vrot.slane %v48_v22, 3  ;;  %v109_v30 = vrot.slane %v47_v24, 3  ;;  %v112_v42 = vrot.slane %v50_v40, 3  ;;  %v5509_v61 = vld [vmem:[%s9178_s2 + $0x48] sm:$0xf0] }
  0x15   :  { %v196_v25 = vsel %vm118_vm1, %v46_v19, %v108_v21  ;;  %v199_v27 = vsel %vm122_vm2, %v46_v19, %v108_v21  ;;  %v202_v29 = vsel %vm126_vm3, %v46_v19, %v108_v21  ;;  %v195_v31 = vsel %vm114_vm0, %v46_v19, %v108_v21  ;;  %v5161_v1 = vld [vmem:[%s9178_s2 + $0x10] sm:$0xf]  ;;  %v5504_v2 = vld [vmem:[%s9178_s2 + $0x20] sm:$0xf0] }
  0x16   :  { %v192_v28 = vsel %vm114_vm0, %v45_v20, %v107_v23  ;;  %v198_v32 = vrot.slane %v196_v25, 1  ;;  %v201_v34 = vrot.slane %v199_v27, 2  ;;  %v204_v35 = vrot.slane %v202_v29, 3 }
  0x17   :  { %v5930_v52 = vld [vmem:[#allocation1] sm:$0xff]  ;;  %v211_v36 = vsel %vm118_vm1, %v48_v22, %v110_v26  ;;  %v207_v37 = vsel %vm114_vm0, %v47_v24, %v109_v30  ;;  %v210_v38 = vsel %vm114_vm0, %v48_v22, %v110_v26  ;;  %v214_v43 = vsel %vm122_vm2, %v48_v22, %v110_v26 }
  0x18   :  { %5183 = vmatmul.msk.bf16.vlgmr.msra.gmra.mxu0 %vm366_vm4, %v5930_v52  ;;  %5188 = vmatmul.msk.bf16.vlgmr.msra.gmra.mxu1 %vm366_vm4, %v5930_v52  ;;  %260 = vst [vmem:[#allocation1] ss:$9 sm:$0xff] %v144_v46  ;;  %v213_v39 = vrot.slane %v211_v36, 1  ;;  %v217_v44 = vsel %vm126_vm3, %v48_v22, %v110_v26  ;;  %v111_v45 = vrot.slane %v49_v41, 3  ;;  %v216_v46 = vrot.slane %v214_v43, 2 }
  0x19   :  { %5193 = vmatmul.msk.bf16.vlgmr.msra.gmra.mxu2 %vm366_vm4, %v5930_v52  ;;  %261 = vst [vmem:[#allocation1 + $0x1] ss:$9 sm:$0xff] %v147_v51  ;;  %v219_v48 = vrot.slane %v217_v44, 3  ;;  %v226_v49 = vsel %vm118_vm1, %v50_v40, %v112_v42  ;;  %v229_v50 = vsel %vm122_vm2, %v50_v40, %v112_v42  ;;  %v225_v56 = vsel %vm114_vm0, %v50_v40, %v112_v42 }
  0x1a   :  { %262 = vst [vmem:[#allocation1 + $0x2] ss:$9 sm:$0xff] %v150_v54  ;;  %v222_v53 = vsel %vm114_vm0, %v49_v41, %v111_v45  ;;  %v232_v54 = vsel %vm126_vm3, %v50_v40, %v112_v42  ;;  %v5162_v3 = vor.u32 %v5504_v2, %v5161_v1  ;;  %vm627_vm5 = vcmask 1041408  }
  0x1b   :  { %264 = vst [vmem:[#allocation1 + $0x3] ss:$9 sm:$0xff] %v153_v55  ;;  %v113_v55 = vrot.slane %v51_v47, 3  ;;  %v234_v59 = vrot.slane %v232_v54, 3  ;;  %vm629_vm6 = vcmask 1045508   ;;  %vm637_vm7 = vcmask 1045506  }
  0x1c   :  { %266 = vst [vmem:[#allocation1 + $0x4] ss:$9 sm:$0xff] %v156_v57  ;;  %v228_v57 = vrot.slane %v226_v49, 1  ;;  %vm633_vm8 = vcmask 1043458   ;;  %vm635_vm9 = vcmask 1045504   ;;  %vm631_vm10 = vcmask 1043456  }
  0x1d   :  { %268 = vst [vmem:[#allocation1 + $0x5] ss:$9 sm:$0xff] %v159_v58  ;;  %v231_v58 = vrot.slane %v229_v50, 2  ;;  %vm844_vm12 = vcmask 1044484   ;;  %vm846_vm14 = vcmask 1046534  }
  0x1e   :  { %269 = vst [vmem:[#allocation1 + $0x6] ss:$9 sm:$0xff] %v162_v62  ;;  %v237_v62 = vsel %vm114_vm0, %v51_v47, %v113_v55  ;;  %vm6265_vm13 = vmor %vm843_vm11, %vm844_vm12  ;;  %vm3258_vm11 = vcmask 1046532  }
  0x1f   :  { %270 = vst [vmem:[#allocation1 + $0x7] ss:$9 sm:$0xff] %v165_v63  ;;  %v5182_v63 = vor.u32 %v5509_v61, %v5181_v60  ;;  %vm6308_vm15 = vmor %vm6265_vm13, %vm846_vm14 }
  0x21   :  { %519 = vmatpush.bf16.msra.mxu0 %v5182_v63 }
  0x25   :  { %520 = vmatpush.bf16.msra.mxu0 %v5162_v3 }
  0x26   :  { %v5957_v11 = vld [vmem:[#allocation1] sm:$0xff] }
  0x27   :  { %273 = vst [vmem:[#allocation1] ss:$9 sm:$0xff] %v168_v7 }
  0x28   :  { %5184 = vmatmul.msk.bf16.gmra.mxu0 %vm366_vm4, %v5957_v11  ;;  %5189 = vmatmul.msk.bf16.gmra.mxu1 %vm366_vm4, %v5957_v11  ;;  %275 = vst [vmem:[#allocation1 + $0x1] ss:$9 sm:$0xff] %v171_v8 }
  0x29   :  { %5194 = vmatmul.msk.bf16.gmra.mxu2 %vm366_vm4, %v5957_v11  ;;  %277 = vst [vmem:[#allocation1 + $0x2] ss:$9 sm:$0xff] %v174_v9 }
  0x2a   :  { %278 = vst [vmem:[#allocation1 + $0x3] ss:$9 sm:$0xff] %v177_v13 }
  0x2b   :  { %279 = vst [vmem:[#allocation1 + $0x4] ss:$9 sm:$0xff] %v180_v15 }
  0x2c   :  { %281 = vst [vmem:[#allocation1 + $0x5] ss:$9 sm:$0xff] %v183_v16 }
  0x2d   :  { %283 = vst [vmem:[#allocation1 + $0x6] ss:$9 sm:$0xff] %v186_v17 }
  0x2e   :  { %285 = vst [vmem:[#allocation1 + $0x7] ss:$9 sm:$0xff] %v189_v18 }
  0x35   :  { %v5986_v33 = vld [vmem:[#allocation1] sm:$0xff] }
  0x36   :  { %287 = vst [vmem:[#allocation1] ss:$9 sm:$0xff] %v192_v28 }
  0x37   :  { %288 = vst [vmem:[#allocation1 + $0x1] ss:$9 sm:$0xff] %v195_v31 }
  0x38   :  { %5185 = vmatmul.msk.bf16.gmra.mxu0 %vm366_vm4, %v5986_v33  ;;  %5190 = vmatmul.msk.bf16.gmra.mxu1 %vm366_vm4, %v5986_v33  ;;  %290 = vst [vmem:[#allocation1 + $0x2] ss:$9 sm:$0xff] %v198_v32 }
  0x39   :  { %5195 = vmatmul.msk.bf16.gmra.mxu2 %vm366_vm4, %v5986_v33  ;;  %292 = vst [vmem:[#allocation1 + $0x3] ss:$9 sm:$0xff] %v201_v34 }
  0x3a   :  { %294 = vst [vmem:[#allocation1 + $0x4] ss:$9 sm:$0xff] %v204_v35 }
  0x3b   :  { %295 = vst [vmem:[#allocation1 + $0x5] ss:$9 sm:$0xff] %v207_v37 }
  0x3c   :  { %296 = vst [vmem:[#allocation1 + $0x6] ss:$9 sm:$0xff] %v210_v38 }
  0x3d   :  { %298 = vst [vmem:[#allocation1 + $0x7] ss:$9 sm:$0xff] %v213_v39 }
  0x44   :  { %v6010_v51 = vld [vmem:[#allocation1] sm:$0xff] }
  0x45   :  { %301 = vst [vmem:[#allocation1] ss:$9 sm:$0xff] %v216_v46 }
  0x46   :  { %303 = vst [vmem:[#allocation1 + $0x1] ss:$9 sm:$0xff] %v219_v48 }
  0x47   :  { %304 = vst [vmem:[#allocation1 + $0x2] ss:$9 sm:$0xff] %v222_v53 }
  0x48   :  { %5186 = vmatmul.msk.bf16.gmra.mxu0 %vm366_vm4, %v6010_v51  ;;  %5191 = vmatmul.msk.bf16.gmra.mxu1 %vm366_vm4, %v6010_v51  ;;  %305 = vst [vmem:[#allocation1 + $0x3] ss:$9 sm:$0xff] %v225_v56 }
  0x49   :  { %307 = vst [vmem:[#allocation1 + $0x4] ss:$9 sm:$0xff] %v228_v57  ;;  %5196 = vmatmul.msk.bf16.gmra.mxu2 %vm366_vm4, %v6010_v51 }
  0x4a   :  { %309 = vst [vmem:[#allocation1 + $0x5] ss:$9 sm:$0xff] %v231_v58 }
  0x4b   :  { %311 = vst [vmem:[#allocation1 + $0x6] ss:$9 sm:$0xff] %v234_v59 }
  0x4c   :  { %312 = vst [vmem:[#allocation1 + $0x7] ss:$9 sm:$0xff] %v237_v62 }
  0x53   :  { %v313_v0 = vld [vmem:[#allocation1] sm:$0xff] }
  0x54   :  { %5192 = vmatmul.msk.bf16.vlgmr.msra.gmra.mxu3 %vm366_vm4, %v313_v0 }
  0x58   :  { %5187 = vmatmul.msk.bf16.gmra.mxu0 %vm366_vm4, %v313_v0 }
  0x59   :  { %5197 = vmatmul.msk.bf16.gmra.mxu2 %vm366_vm4, %v313_v0 }
  0x64   :  { %5202 = vmatmul.msk.bf16.vlgmr.msrb.gmra.mxu3 %vm366_vm4, %v313_v0 }
  0x68   :  { %5198 = vmatmul.msk.bf16.vlgmr.msrb.gmra.mxu0 %vm366_vm4, %v5930_v52 }
  0x78   :  { %5199 = vmatmul.msk.bf16.gmra.mxu0 %vm366_vm4, %v5957_v11 }
  0x88   :  { %5200 = vmatmul.msk.bf16.gmra.mxu0 %vm366_vm4, %v5986_v33 }
  0x95   :  { %v386_v4 = vpop.f32.mrf.mxu0  ;;  %v420_v12 = vpop.f32.mrf.mxu1 }
  0x96   :  { %v597_v37 = vrot.slane %v420_v12, 6 }
  0x98   :  { %5201 = vmatmul.msk.bf16.gmra.mxu0 %vm366_vm4, %v6010_v51  ;;  %v6119_v48 = vsel %vm627_vm5, %v386_v4, %v597_v37  ;;  %v6122_v49 = vsel %vm633_vm8, %v386_v4, %v597_v37  ;;  %v640_v50 = vsel %vm629_vm6, %v386_v4, %v597_v37  ;;  %v645_v53 = vsel %vm635_vm9, %v597_v37, %v386_v4 }
  0x9c   :  { %v454_v5 = vpop.f32.mrf.mxu2 }
  0x9d   :  { %v6046_v6 = vpop.f32.mrf.mxu0  ;;  %v422_v15 = vpop.f32.mrf.mxu1  ;;  %v6090_v34 = vrot.slane %v454_v5, 4 }
  0x9e   :  { %v600_v38 = vrot.slane %v422_v15, 6 }
  0xa0   :  { %v6128_v54 = vsel %vm627_vm5, %v6046_v6, %v600_v38  ;;  %v6132_v56 = vsel %vm633_vm8, %v6046_v6, %v600_v38  ;;  %v657_v60 = vsel %vm629_vm6, %v6046_v6, %v600_v38  ;;  %v661_v61 = vsel %vm635_vm9, %v600_v38, %v6046_v6 }
  0xa4   :  { %v456_v7 = vpop.f32.mrf.mxu2 }
  0xa5   :  { %v6048_v8 = vpop.f32.mrf.mxu0  ;;  %v425_v18 = vpop.f32.mrf.mxu1  ;;  %v6134_v57 = vrot.slane %v456_v7, 4 }
  0xa6   :  { %v603_v46 = vrot.slane %v425_v18, 6 }
  0xa8   :  { %5203 = vmatmul.msk.bf16.vlgmr.msra.gmra.mxu0 %vm366_vm4, %v5930_v52  ;;  %v6145_v62 = vsel %vm627_vm5, %v6048_v8, %v603_v46  ;;  %v6153_v1 = vsel %vm629_vm6, %v6048_v8, %v603_v46  ;;  %v6157_v2 = vsel %vm635_vm9, %v603_v46, %v6048_v8 }
  0xac   :  { %v6052_v9 = vpop.f32.mrf.mxu2 }
  0xad   :  { %v6054_v10 = vpop.f32.mrf.mxu0  ;;  %v427_v20 = vpop.f32.mrf.mxu1  ;;  %v6160_v3 = vrot.slane %v6052_v9, 4 }
  0xae   :  { %v606_v55 = vrot.slane %v427_v20, 6 }
  0xb0   :  { %v6164_v4 = vsel %vm627_vm5, %v6054_v10, %v606_v55  ;;  %v6173_v12 = vsel %vm633_vm8, %v6054_v10, %v606_v55  ;;  %v6181_v9 = vsel %vm635_vm9, %v606_v55, %v6054_v10 }
  0xb4   :  { %v6056_v13 = vpop.f32.mrf.mxu2 }
  0xb5   :  { %v6058_v14 = vpop.f32.mrf.mxu0  ;;  %v6187_v18 = vrot.slane %v6056_v13, 4 }
  0xb8   :  { %5204 = vmatmul.msk.bf16.gmra.mxu0 %vm366_vm4, %v5957_v11  ;;  %v430_v11 = vpop.f32.mrf.mxu1 }
  0xb9   :  { %v609_v63 = vrot.slane %v430_v11, 6 }
  0xbb   :  { %v6191_v20 = vsel %vm627_vm5, %v6058_v14, %v609_v63  ;;  %v6195_v11 = vsel %vm633_vm8, %v6058_v14, %v609_v63 }
  0xbc   :  { %v6062_v16 = vpop.f32.mrf.mxu2 }
  0xbd   :  { %v6064_v17 = vpop.f32.mrf.mxu0  ;;  %v6206_v13 = vrot.slane %v6062_v16, 4 }
  0xc0   :  { %v432_v28 = vpop.f32.mrf.mxu1 }
  0xc1   :  { %v612_v5 = vrot.slane %v432_v28, 6 }
  0xc3   :  { %v6213_v37 = vsel %vm627_vm5, %v6064_v17, %v612_v5  ;;  %v6217_v38 = vsel %vm633_vm8, %v6064_v17, %v612_v5  ;;  %v6223_v16 = vsel %vm629_vm6, %v6064_v17, %v612_v5 }
  0xc4   :  { %v6066_v19 = vpop.f32.mrf.mxu2 }
  0xc5   :  { %v6068_v52 = vpop.f32.mrf.mxu0 }
  0xc8   :  { %5205 = vmatmul.msk.bf16.gmra.mxu0 %vm366_vm4, %v5986_v33  ;;  %v435_v39 = vpop.f32.mrf.mxu1 }
  0xcc   :  { %v6074_v22 = vpop.f32.mrf.mxu2 }
  0xcd   :  { %v6072_v21 = vpop.f32.mrf.mxu0 }
  0xce   :  { %9258 = vst [vmem:[#allocation2_spill] sm:$0xff] %v6072_v21 }
  0xd0   :  { %v437_v28 = vpop.f32.mrf.mxu1 }
  0xd4   :  { %v6080_v25 = vpop.f32.mrf.mxu2 }
  0xd5   :  { %v6076_v23 = vpop.f32.mrf.mxu0 }
  0xd7   :  { %v440_v24 = vpop.f32.mrf.mxu3 }
  0xd8   :  { %5206 = vmatmul.msk.bf16.gmra.mxu0 %vm366_vm4, %v6010_v51  ;;  %v6086_v31 = vrot.slane %v440_v24, 6  ;;  %v615_v24 = vrot.slane %v435_v39, 6 }
  0xda   :  { %v769_v40 = vsel %vm633_vm8, %v6076_v23, %v6086_v31  ;;  %v779_v41 = vsel %vm635_vm9, %v6086_v31, %v6076_v23 }
  0xdc   :  { %v474_v29 = vpop.f32.mrf.mxu2 }
  0xdd   :  { %v6082_v26 = vpop.f32.mrf.mxu0  ;;  %v6088_v32 = vrot.slane %v474_v29, 4  ;;  %v6203_v29 = vsel %vm635_vm9, %v609_v63, %v6058_v14 }
  0xde   :  { %9259 = vst [vmem:[#allocation3_spill] sm:$0xff] %v6082_v26 }
  0xdf   :  { %v6084_v27 = vpop.f32.mrf.mxu3 }
  0xe5   :  { %v488_v30 = vpop.f32.mrf.mxu0 }
  0xe6   :  { %v6094_v36 = vrot.slane %v488_v30, 2 }
  0xe7   :  { %v508_v33 = vpop.f32.mrf.mxu3 }
  0xe8   :  { %v6092_v35 = vrot.slane %v508_v33, 2  ;;  %5207 = vmatmul.msk.bf16.gmra.mxu0 %vm366_vm4, %v313_v0  ;;  %v641_v47 = vsel %vm627_vm5, %v6090_v34, %v6094_v36  ;;  %v6149_v0 = vsel %vm633_vm8, %v6048_v8, %v603_v46  ;;  %v646_v7 = vsel %vm633_vm8, %v6090_v34, %v6094_v36 }
  0xe9   :  { %v642_v58 = vsel %vm631_vm10, %v641_v47, %v640_v50  ;;  %v6177_v8 = vsel %vm629_vm6, %v6054_v10, %v606_v55  ;;  %v6199_v10 = vsel %vm629_vm6, %v6058_v14, %v609_v63  ;;  %v6209_v30 = vsel %vm637_vm7, %v646_v7, %v645_v53 }
  0xea   :  { %v770_v42 = vsel %vm635_vm9, %v6092_v35, %v6088_v32  ;;  %v780_v43 = vsel %vm633_vm8, %v6088_v32, %v6092_v35  ;;  %v6166_v6 = vrot.slane %v642_v58, 4  ;;  %v6242_v46 = vsel %vm633_vm8, %v6068_v52, %v615_v24 }
  0xeb   :  { %v6110_v44 = vsel %vm637_vm7, %v769_v40, %v770_v42  ;;  %v6113_v45 = vsel %vm637_vm7, %v780_v43, %v779_v41  ;;  %v6227_v40 = vsel %vm635_vm9, %v612_v5, %v6064_v17  ;;  %v6229_v41 = vrot.slane %v437_v28, 6 }
  0xec   :  { %9260 = vst [vmem:[#allocation4_spill] sm:$0xff] %v6110_v44  ;;  %v9189_v14 = vrot.slane %v6166_v6, 7  ;;  %v6234_v42 = vrot.slane %v6066_v19, 4  ;;  %v6238_v43 = vsel %vm627_vm5, %v6068_v52, %v615_v24  ;;  %v9192_v17 = vrot.slane %v6209_v30, 6 }
  0xed   :  { %9261 = vst [vmem:[#allocation5_spill] sm:$0xff] %v6113_v45  ;;  %v490_v51 = vpop.f32.mrf.mxu0  ;;  %v6247_v47 = vsel %vm629_vm6, %v6068_v52, %v615_v24  ;;  %v6251_v50 = vsel %vm635_vm9, %v615_v24, %v6068_v52  ;;  %v6259_v53 = vrot.slane %v6074_v22, 4  ;;  %v6262_v55 = vrot.slane %v6084_v27, 6 }
  0xee   :  { %v6137_v59 = vrot.slane %v490_v51, 2  ;;  %9262 = vst [vmem:[#allocation6_spill] sm:$0xff] %v6229_v41  ;;  %v855_v52 = vrot.slane %v9189_v14, 2  ;;  %v6279_v22 = vsel %vm629_vm6, %v6072_v21, %v6229_v41  ;;  %v6284_v27 = vsel %vm635_vm9, %v6229_v41, %v6072_v21 }
  0xef   :  { %9263 = vst [vmem:[#allocation7_spill] sm:$0xff] %v6238_v43  ;;  %v6287_v63 = vrot.slane %v6080_v25, 4  ;;  %v630_v5 = vsel %vm629_vm6, %v6090_v34, %v6094_v36  ;;  %v636_v7 = vsel %vm635_vm9, %v6094_v36, %v6090_v34  ;;  %v767_v28 = vsel %vm629_vm6, %v6088_v32, %v6092_v35 }
  0xf0   :  { %v658_v15 = vsel %vm627_vm5, %v6134_v57, %v6137_v59  ;;  %v662_v51 = vsel %vm633_vm8, %v6134_v57, %v6137_v59  ;;  %9264 = vst [vmem:[#allocation8_spill] sm:$0xff] %v6262_v55  ;;  %v775_v25 = vsel %vm627_vm5, %v6088_v32, %v6092_v35  ;;  %v766_v36 = vsel %vm627_vm5, %v6076_v23, %v6086_v31 }
  0xf1   :  { %v659_v39 = vsel %vm631_vm10, %v658_v15, %v657_v60  ;;  %v6274_v60 = vsel %vm627_vm5, %v6072_v21, %v6229_v41  ;;  %9268 = vst [vmem:[#allocation10_spill] sm:$0xff] %v6279_v22  ;;  %v856_v15 = vrot.slane %v9192_v17, 7  ;;  %v663_v24 = vsel %vm637_vm7, %v662_v51, %v661_v61 }
  0xf2   :  { %v6253_v19 = vrot.slane %v659_v39, 4  ;;  %9267 = vst [vmem:[#allocation9_spill] sm:$0xff] %v6274_v60  ;;  %v476_v39 = vpop.f32.mrf.mxu2  ;;  %v774_v32 = vsel %vm629_vm6, %v6076_v23, %v6086_v31  ;;  %v6321_v35 = vsel %vm627_vm5, %v6082_v26, %v6262_v55  ;;  %v638_v51 = vsel %vm637_vm7, %v6122_v49, %v636_v7 }
  0xf3   :  { %9269 = vst [vmem:[#allocation11_spill] sm:$0xff] %v6284_v27  ;;  %v6325_v61 = vsel %vm6308_vm15, %v855_v52, %v856_v15  ;;  %v651_v23 = vsel %vm629_vm6, %v6134_v57, %v6137_v59  ;;  %v6337_v31 = vrot.slane %v663_v24, 6  ;;  %v6340_v58 = vsel %vm631_vm10, %v766_v36, %v767_v28 }
  0xf4   :  { %9272 = vst [vmem:[#allocation12_spill] sm:$0xff] %v6340_v58  ;;  %v6343_v52 = vsel %vm631_vm10, %v775_v25, %v774_v32  ;;  %v6345_v17 = vrot.slane %v476_v39, 4  ;;  %v6349_v14 = vsel %vm631_vm10, %v6119_v48, %v630_v5  ;;  %v930_v24 = vrot.slane %v6325_v61, 2 }
  0xf5   :  { %v493_v33 = vpop.f32.mrf.mxu0  ;;  %9273 = vst [vmem:[#allocation13_spill] sm:$0xff] %v6343_v52  ;;  %v9274_v28 = vrot.slane %v6253_v19, 7  ;;  %v6360_v32 = vrot.slane %v638_v51, 2  ;;  %v652_v48 = vsel %vm631_vm10, %v6128_v54, %v651_v23  ;;  %v5208_v22 = vrot.slane %v6349_v14, 9 }
  0xf6   :  { %v605_v21 = vrot.slane %v493_v33, 2  ;;  %v6330_v33 = vsel %vm633_vm8, %v6082_v26, %v6262_v55  ;;  %v510_v26 = vpop.f32.mrf.mxu3  ;;  %v654_v55 = vsel %vm635_vm9, %v6137_v59, %v6134_v57  ;;  %v978_v59 = vadd.f32 %v930_v24, %v6166_v6 }
  0xf7   :  { %v862_v36 = vrot.slane %v9274_v28, 2  ;;  %v863_v28 = vrot.slane %v6337_v31, 7  ;;  %v1072_v39 = vrot.slane %v856_v15, 2  ;;  %v1073_v43 = vrot.slane %v652_v48, 7 }
  0xf8   :  { %v675_v49 = vsel %vm627_vm5, %v6160_v3, %v605_v21  ;;  %v679_v7 = vsel %vm633_vm8, %v6160_v3, %v605_v21  ;;  %v667_v25 = vsel %vm629_vm6, %v6160_v3, %v605_v21  ;;  %v6385_v52 = vrot.slane %v510_v26, 2 }
  0xf9   :  { %v6374_v51 = vsel %vm631_vm10, %v675_v49, %v6153_v1  ;;  %v680_v54 = vsel %vm637_vm7, %v679_v7, %v6157_v2  ;;  %v6382_v57 = vsel %vm6308_vm15, %v862_v36, %v863_v28  ;;  %v6389_v1 = vsel %vm637_vm7, %v6132_v56, %v654_v55 }
  0xfa   :  { %v850_v49 = vrot.slane %v6360_v32, 7  ;;  %v9200_v7 = vrot.slane %v6374_v51, 4  ;;  %v9275_v36 = vrot.slane %v6209_v30, 6  ;;  %v1074_v26 = vsel %vm6308_vm15, %v1072_v39, %v1073_v43 }
  0xfb   :  { %v9276_v15 = vrot.slane %v6110_v44, 2  ;;  %v6404_v56 = vrot.slane %v680_v54, 6  ;;  %v668_v55 = vsel %vm631_vm10, %v6145_v62, %v667_v25  ;;  %v932_v2 = vrot.slane %v6382_v57, 2 }
  0xfc   :  { %v1002_v24 = vrot.slane %v9275_v36, 4  ;;  %v784_v54 = vsel %vm629_vm6, %v6345_v17, %v6385_v52  ;;  %v852_v36 = vrot.slane %v850_v49, 2  ;;  %v9280_v58 = vrot.slane %v6389_v1, 2 }
  0xfd   :  { %v495_v41 = vpop.f32.mrf.mxu0  ;;  %v6402_v48 = vrot.slane %v9276_v15, 7  ;;  %v5210_v15 = vrot.slane %v9200_v7, 9  ;;  %v870_v44 = vrot.slane %v6404_v56, 7  ;;  %v980_v62 = vadd.f32 %v932_v2, %v6253_v19 }
  0xfe   :  { %v6378_v23 = vrot.slane %v495_v41, 2  ;;  %v670_v41 = vsel %vm635_vm9, %v605_v21, %v6160_v3  ;;  %v9278_v21 = vrot.slane %v6113_v45, 6  ;;  %v1050_v39 = vadd.f32 %v1002_v24, %v978_v59 }
  0xff   :  { %9277 = vst [vmem:[#allocation14_spill] sm:$0xff] %v6402_v48  ;;  %v671_v25 = vsel %vm637_vm7, %v6149_v0, %v670_v41  ;;  %v865_v45 = vrot.slane %v863_v28, 2  ;;  %v5209_v60 = vrot.slane %v9280_v58, 9  ;;  %v9281_v27 = vrot.slane %v6166_v6, 7 }
 0x100   :  { %v6411_v3 = vrot.slane %v9278_v21, 9  ;;  %v683_v30 = vsel %vm629_vm6, %v6187_v18, %v6378_v23  ;;  %v686_v43 = vsel %vm635_vm9, %v6378_v23, %v6187_v18  ;;  %v1098_v21 = vrot.slane %v1074_v26, 6 }
 0x101   :  { %v6430_v59 = vsel %vm631_vm10, %v6164_v4, %v683_v30  ;;  %v6434_v24 = vsel %vm637_vm7, %v6173_v12, %v686_v43  ;;  %v1004_v26 = vrot.slane %v6337_v31, 4  ;;  %v6448_v4 = vsel %vm631_vm10, %v6321_v35, %v784_v54 }
 0x102   :  { %9279 = vst [vmem:[#allocation15_spill] sm:$0xff] %v6411_v3  ;;  %v866_v3 = vrot.slane %v668_v55, 7  ;;  %v6441_v7 = vadd.f32 %v1098_v21, %v1050_v39  ;;  %v787_v12 = vsel %vm635_vm9, %v6385_v52, %v6345_v17  ;;  %v873_v30 = vrot.slane %v6430_v59, 7 }
 0x103   :  { %v1052_v39 = vadd.f32 %v1004_v26, %v980_v62  ;;  %v5216_v21 = vrot.slane %v671_v25, 9  ;;  %v9204_v48 = vrot.slane %v6434_v24, 2  ;;  %v851_v35 = vsel %vm6308_vm15, %v5208_v22, %v850_v49 }
 0x104   :  { %v867_v28 = vsel %vm6308_vm15, %v865_v45, %v866_v3  ;;  %v1075_v2 = vrot.slane %v866_v3, 2  ;;  %v871_v54 = vsel %vm6308_vm15, %v5210_v15, %v870_v44  ;;  %v6471_v62 = vsel %vm6308_vm15, %v852_v36, %v9281_v27 }
 0x105   :  { %v498_v5 = vpop.f32.mrf.mxu0  ;;  %v933_v43 = vrot.slane %v867_v28, 2  ;;  %v1100_v45 = vrot.slane %v867_v28, 6  ;;  %v872_v25 = vrot.slane %v870_v44, 2  ;;  %v1005_v15 = vrot.slane %v668_v55, 4  ;;  %v5517_v55 = vld [vmem:[%s9182_s4 + $0x38] sm:$0xff] }
 0x106   :  { %v6437_v0 = vrot.slane %v498_v5, 2  ;;  %v696_v5 = vsel %vm633_vm8, %v6187_v18, %v6378_v23  ;;  %v1077_v58 = vsel %vm6308_vm15, %v1075_v2, %v5216_v21  ;;  %v934_v36 = vrot.slane %v871_v54, 2  ;;  %1365 = vmatpush.bf16.msrb.mxu1 %v5517_v55 }
 0x107   :  { %v697_v22 = vsel %vm637_vm7, %v696_v5, %v6181_v9  ;;  %v981_v28 = vadd.f32 %v933_v43, %v6337_v31  ;;  %v6481_v26 = vadd.f32 %v1100_v45, %v1052_v39  ;;  %v874_v27 = vsel %vm6308_vm15, %v872_v25, %v873_v30 }
 0x108   :  { %v700_v3 = vsel %vm629_vm6, %v6206_v13, %v6437_v0  ;;  %v703_v49 = vsel %vm635_vm9, %v6437_v0, %v6206_v13  ;;  %v875_v44 = vrot.slane %v873_v30, 2  ;;  %v6487_v9 = vrot.slane %v9204_v48, 7 }
 0x109   :  { %v6491_v5 = vsel %vm631_vm10, %v6191_v20, %v700_v3  ;;  %v935_v31 = vrot.slane %v874_v27, 2  ;;  %v698_v2 = vrot.slane %v697_v22, 6  ;;  %v704_v43 = vsel %vm637_vm7, %v6195_v11, %v703_v49 }
 0x10a   :  { %v1053_v45 = vadd.f32 %v1005_v15, %v981_v28  ;;  %v1101_v30 = vrot.slane %v1077_v58, 6  ;;  %v928_v21 = vrot.slane %v851_v35, 2  ;;  %v929_v54 = vrot.slane %v6471_v62, 2 }
 0x10b   :  { %v9282_v25 = vrot.slane %v6253_v19, 7  ;;  %v983_v3 = vadd.f32 %v935_v31, %v6404_v56  ;;  %v880_v48 = vrot.slane %v6491_v5, 7  ;;  %v9284_v11 = vrot.slane %v6374_v51, 4 }
 0x10c   :  { %v6505_v22 = vadd.f32 %v1101_v30, %v1053_v45  ;;  %v1007_v15 = vrot.slane %v6430_v59, 4  ;;  %v6510_v35 = vrot.slane %v704_v43, 2  ;;  %v1000_v58 = vrot.slane %v6360_v32, 4 }
 0x10d   :  { %v6439_v41 = vpop.f32.mrf.mxu0  ;;  %v861_v20 = vsel %vm6308_vm15, %v5209_v60, %v9282_v25  ;;  %v982_v49 = vadd.f32 %v934_v36, %v9284_v11  ;;  %v1001_v28 = vrot.slane %v6166_v6, 4  ;;  %v6517_v60 = vsel %vm6308_vm15, %v875_v44, %v6487_v9  ;;  %v5516_v6 = vld [vmem:[%s9182_s4 + $0x30] sm:$0xff] }
 0x10e   :  { %9283 = vst [vmem:[#allocation16_spill] sm:$0xff] %v6505_v22  ;;  %v788_v55 = vsel %vm637_vm7, %v6330_v33, %v787_v12  ;;  %v5211_v31 = vrot.slane %v698_v2, 9  ;;  %v1006_v51 = vrot.slane %v6404_v56, 4  ;;  %v1055_v36 = vadd.f32 %v1007_v15, %v983_v3  ;;  %1366 = vmatpush.bf16.msrb.mxu1 %v5516_v6 }
 0x10f   :  { %v920_v45 = vrot.slane %v6448_v4, 7  ;;  %v976_v43 = vadd.f32 %v928_v21, %v6349_v14  ;;  %v977_v30 = vadd.f32 %v929_v54, %v6360_v32  ;;  %v931_v25 = vrot.slane %v861_v20, 2 }
 0x110   :  { %v1054_v44 = vadd.f32 %v1006_v51, %v982_v49  ;;  %v1102_v11 = vrot.slane %v874_v27, 6  ;;  %v1103_v22 = vrot.slane %v6517_v60, 6  ;;  %v881_v33 = vsel %vm6308_vm15, %v5211_v31, %v880_v48 }
 0x111   :  { %v691_v56 = vsel %vm627_vm5, %v6187_v18, %v6378_v23  ;;  %v882_v12 = vrot.slane %v880_v48, 2  ;;  %v883_v14 = vrot.slane %v6510_v35, 7  ;;  %v937_v32 = vrot.slane %v881_v33, 2 }
 0x112   :  { %v6535_v21 = vrot.slane %v788_v55, 2  ;;  %v6540_v54 = vsel %vm627_vm5, %v6345_v17, %v6385_v52  ;;  %v6544_v20 = vadd.f32 %v1102_v11, %v1054_v44  ;;  %v6546_v3 = vadd.f32 %v1103_v22, %v1055_v36 }
 0x113   :  { %v708_v18 = vsel %vm627_vm5, %v6206_v13, %v6437_v0  ;;  %v1048_v23 = vadd.f32 %v1000_v58, %v976_v43  ;;  %v1049_v48 = vadd.f32 %v1001_v28, %v977_v30  ;;  %v985_v49 = vadd.f32 %v937_v32, %v698_v2  ;;  %v6585_v30 = vld [vmem:[%s9180_s3] ss:$0 sm:$0xff] }
 0x114   :  { %v6553_v15 = vrot.slane %v920_v45, 2  ;;  %v692_v55 = vsel %vm631_vm10, %v691_v56, %v6177_v8  ;;  %v713_v31 = vsel %vm633_vm8, %v6206_v13, %v6437_v0  ;;  %v9285_v22 = vrot.slane %v6389_v1, 2 }
 0x115   :  { %v503_v39 = vpop.f32.mrf.mxu0  ;;  %v614_v36 = vrot.slane %v6439_v41, 2  ;;  %v1096_v58 = vrot.slane %v6471_v62, 6  ;;  %v1097_v2 = vrot.slane %v6325_v61, 6  ;;  %v6569_v28 = vsel %vm6308_vm15, %v882_v12, %v883_v14 }
 0x116   :  { %v979_v51 = vadd.f32 %v931_v25, %v9285_v22  ;;  %v923_v8 = vrot.slane %v6535_v21, 7  ;;  %v6574_v13 = vsel %vm631_vm10, %v708_v18, %v6199_v10  ;;  %v1003_v1 = vrot.slane %v6253_v19, 4  ;;  %v5515_v10 = vld [vmem:[%s9182_s4 + $0x28] sm:$0xff] }
 0x117   :  { %v1009_v0 = vrot.slane %v6491_v5, 4  ;;  %v5217_v41 = vrot.slane %v692_v55, 11  ;;  %v6580_v61 = vsel %vm637_vm7, %v713_v31, %v6203_v29  ;;  %v1144_v62 = vadd.f32 %v1096_v58, %v1048_v23  ;;  %1367 = vmatpush.bf16.msrb.mxu1 %v5515_v10 }
 0x118   :  { %v1145_v43 = vadd.f32 %v1097_v2, %v1049_v48  ;;  %v617_v25 = vrot.slane %v503_v39, 2  ;;  %v1051_v6 = vadd.f32 %v1003_v1, %v979_v51  ;;  %v1105_v44 = vrot.slane %v6569_v28, 6 }
 0x119   :  { %v1057_v19 = vadd.f32 %v1009_v0, %v985_v49  ;;  %v1078_v11 = vrot.slane %v6487_v9, 2  ;;  %v710_v29 = vrot.slane %v6574_v13, 4  ;;  %v721_v33 = vsel %vm635_vm9, %v614_v36, %v6234_v42 }
 0x11a   :  { %v1099_v56 = vrot.slane %v6382_v57, 6  ;;  %v5218_v12 = vrot.slane %v6580_v61, 13  ;;  %v725_v39 = vsel %vm627_vm5, %v6234_v42, %v614_v36  ;;  %v730_v32 = vsel %vm633_vm8, %v6234_v42, %v614_v36 }
 0x11b   :  { %v6601_v23 = vadd.f32 %v1105_v44, %v1057_v19  ;;  %v718_v9 = vsel %vm629_vm6, %v6234_v42, %v614_v36  ;;  %v6606_v55 = vrot.slane %v6585_v30, 2  ;;  %v722_v57 = vsel %vm637_vm7, %v6217_v38, %v721_v33 }
 0x11c   :  { %v738_v31 = vsel %vm635_vm9, %v617_v25, %v6259_v53  ;;  %v1147_v22 = vadd.f32 %v1099_v56, %v1051_v6  ;;  %v936_v51 = vrot.slane %v6517_v60, 2  ;;  %v726_v58 = vsel %vm631_vm10, %v725_v39, %v6223_v16 }
 0x11d   :  { %v6542_v27 = vpop.f32.mrf.mxu0  ;;  %v6617_v42 = vsel %vm637_vm7, %v730_v32, %v6227_v40  ;;  %v6621_v1 = vrot.slane %v710_v29, 7  ;;  %v6625_v38 = vsel %vm631_vm10, %v6213_v37, %v718_v9  ;;  %v742_v60 = vsel %vm627_vm5, %v6259_v53, %v617_v25 }
 0x11e   :  { %v746_v16 = vsel %vm633_vm8, %v6259_v53, %v617_v25  ;;  %v6633_v40 = vsel %vm637_vm7, %v6242_v46, %v738_v31  ;;  %v6639_v6 = vrot.slane %v722_v57, 2  ;;  %v6641_v37 = vrot.slane %v726_v58, 4 }
 0x11f   :  { %v732_v10 = vrot.slane %v6617_v42, 6  ;;  %v984_v19 = vadd.f32 %v936_v51, %v6430_v59  ;;  %v6646_v44 = vrot.slane %v6585_v30, 4  ;;  %v9286_v46 = vrot.slane %v6434_v24, 2 }
 0x120   :  { %v1080_v56 = vsel %vm6308_vm15, %v1078_v11, %v5217_v41  ;;  %v740_v39 = vrot.slane %v6633_v40, 2  ;;  %v743_v32 = vsel %vm631_vm10, %v742_v60, %v6247_v47  ;;  %v747_v59 = vsel %vm637_vm7, %v746_v16, %v6251_v50 }
 0x121   :  { %v1008_v33 = vrot.slane %v9286_v46, 4  ;;  %v6661_v24 = vrot.slane %v6542_v27, 2  ;;  %v890_v47 = vrot.slane %v6639_v6, 7  ;;  %v938_v50 = vrot.slane %v6569_v28, 2 }
 0x122   :  { %v6672_v57 = vrot.slane %v732_v10, 7  ;;  %v6676_v27 = vsel %vm629_vm6, %v6259_v53, %v617_v25  ;;  %v6679_v51 = vrot.slane %v743_v32, 4  ;;  %v6681_v58 = vrot.slane %v747_v59, 6 }
 0x123   :  { %v6685_v28 = vrot.slane %v740_v39, 9  ;;  %v763_v16 = vsel %vm633_vm8, %v6287_v63, %v6661_v24  ;;  %v754_v40 = vsel %vm635_vm9, %v6661_v24, %v6287_v63 }
 0x124   :  { %v1084_v42 = vrot.slane %v6672_v57, 2 }
 0x125   :  { %v522_v18 = vpop.f32.mrf.mxu0 }
 0x126   :  { %v644_v48 = vrot.slane %v522_v18, 4  ;;  %v649_v49 = vrot.slane %v522_v18, 6 }
 0x128   :  { %v1168_v36 = vadd.f32 %v1144_v62, %v644_v48  ;;  %v1169_v2 = vadd.f32 %v1145_v43, %v649_v49  ;;  %v885_v43 = vrot.slane %v883_v14, 2  ;;  %v5514_v14 = vld [vmem:[%s9182_s4 + $0x20] sm:$0xff]  ;;  %v5212_v48 = vrot.slane %v6625_v38, 9 }
 0x129   :  { %1368 = vmatpush.bf16.msrb.mxu1 %v5514_v14  ;;  %v1056_v49 = vadd.f32 %v1008_v33, %v984_v19  ;;  %v1010_v19 = vrot.slane %v6510_v35, 4  ;;  %v892_v33 = vrot.slane %v890_v47, 2 }
 0x12a   :  { %v1199_v0 = vadd.f32 %v6585_v30, %v1168_v36  ;;  %v1200_v62 = vadd.f32 %v6606_v55, %v1169_v2  ;;  %v887_v11 = vsel %vm6308_vm15, %v885_v43, %v6621_v1  ;;  %v1104_v36 = vrot.slane %v1080_v56, 6  ;;  %v9287_v56 = vld [vmem:[#allocation11_spill] sm:$0xff] }
 0x12b   :  { %v939_v2 = vrot.slane %v887_v11, 2  ;;  %v1081_v43 = vrot.slane %v6621_v1, 2  ;;  %v891_v46 = vsel %vm6308_vm15, %v5212_v48, %v890_v47  ;;  %v764_v14 = vsel %vm637_vm7, %v763_v16, %v9287_v56  ;;  %v9288_v1 = vld [vmem:[#allocation9_spill] sm:$0xff] }
 0x12c   :  { %5553 = vtanh.f32 %v1199_v0  ;;  %v6694_v0 = vadd.f32 %v1104_v36, %v1056_v49  ;;  %v940_v13 = vrot.slane %v891_v46, 2  ;;  %v6723_v36 = vrot.slane %v764_v14, 6 }
 0x12d   :  { %5555 = vtanh.f32 %v1200_v62  ;;  %v524_v18 = vpop.f32.mrf.mxu0  ;;  %v986_v62 = vadd.f32 %v938_v50, %v6491_v5  ;;  %v987_v59 = vadd.f32 %v939_v2, %v6510_v35  ;;  %v893_v5 = vrot.slane %v6641_v37, 7  ;;  %v9291_v2 = vld [vmem:[#allocation16_spill] sm:$0xff] }
 0x12e   :  { %v665_v9 = vrot.slane %v524_v18, 6  ;;  %v1170_v41 = vadd.f32 %v6441_v7, %v524_v18  ;;  %v1011_v18 = vrot.slane %v710_v29, 4  ;;  %v1083_v35 = vsel %vm6308_vm15, %v1081_v43, %v5218_v12  ;;  %v9289_v29 = vld [vmem:[#allocation12_spill] sm:$0xff]  ;;  %v9292_v12 = vld [vmem:[#allocation14_spill] sm:$0xff] }
 0x12f   :  { %v1058_v49 = vadd.f32 %v1010_v19, %v986_v62  ;;  %v9290_v50 = vrot.slane %v9289_v29, 7  ;;  %v1107_v19 = vrot.slane %v1083_v35, 6  ;;  %v1090_v14 = vrot.slane %v9292_v12, 2  ;;  %v9295_v35 = vld [vmem:[#allocation13_spill] sm:$0xff] }
 0x130   :  { %v1171_v7 = vadd.f32 %v1147_v22, %v665_v9  ;;  %v1201_v31 = vadd.f32 %v6646_v44, %v1170_v41  ;;  %v751_v22 = vsel %vm629_vm6, %v6287_v63, %v6661_v24  ;;  %v6714_v41 = vsel %vm627_vm5, %v6287_v63, %v6661_v24 }
 0x131   :  { %v6709_v9 = vsel %vm631_vm10, %v9288_v1, %v751_v22  ;;  %v1059_v61 = vadd.f32 %v1011_v18, %v987_v59  ;;  %v1012_v59 = vrot.slane %v6639_v6, 4 }
 0x132   :  { %v5554_v60 = vpop.eup %5553  ;;  %v1202_v53 = vadd.f32 %v6585_v30, %v1171_v7  ;;  %5557 = vtanh.f32 %v1201_v31  ;;  %v915_v7 = vrot.slane %v9290_v50, 2 }
 0x133   :  { %v5556_v25 = vpop.eup %5555  ;;  %1271 = vst [vmem:[#allocation1] ss:$4 sm:$0xff] %v5554_v60 }
 0x134   :  { %1273 = vst [vmem:[#allocation1 + $0x1] ss:$4 sm:$0xff] %v5556_v25  ;;  %5559 = vtanh.f32 %v1202_v53  ;;  %v1106_v53 = vrot.slane %v887_v11, 6  ;;  %v895_v25 = vrot.slane %v893_v5, 2  ;;  %v6734_v22 = vsel %vm6308_vm15, %v915_v7, %v9292_v12  ;;  %v9297_v7 = vld [vmem:[#allocation15_spill] sm:$0xff] }
 0x135   :  { %v527_v32 = vpop.f32.mrf.mxu0  ;;  %v948_v46 = vrot.slane %v6734_v22, 2  ;;  %v988_v11 = vadd.f32 %v940_v13, %v6625_v38  ;;  %v9296_v13 = vrot.slane %v9295_v35, 11  ;;  %v900_v12 = vrot.slane %v6679_v51, 7  ;;  %v5511_v35 = vld [vmem:[%s9182_s4 + $0x8] sm:$0xff] }
 0x136   :  { %v673_v48 = vrot.slane %v527_v32, 2  ;;  %v1172_v47 = vadd.f32 %v6481_v26, %v527_v32  ;;  %v6729_v26 = vsel %vm6308_vm15, %v892_v33, %v893_v5  ;;  %v6738_v56 = vadd.f32 %v1106_v53, %v1058_v49  ;;  %v5513_v32 = vld [vmem:[%s9182_s4 + $0x18] sm:$0xff] }
 0x137   :  { %v941_v33 = vrot.slane %v6729_v26, 2  ;;  %v996_v18 = vadd.f32 %v948_v46, %v9289_v29  ;;  %v9293_v5 = vld [vmem:[#allocation4_spill] sm:$0xff]  ;;  %v1155_v49 = vadd.f32 %v1107_v19, %v1059_v61  ;;  %v6753_v38 = vsel %vm6308_vm15, %v895_v25, %v6672_v57  ;;  %1369 = vmatpush.bf16.msrb.mxu1 %v5513_v32  ;;  %v5512_v61 = vld [vmem:[%s9182_s4 + $0x10] sm:$0xff] }
 0x138   :  { %v5558_v31 = vpop.eup %5557  ;;  %v1173_v60 = vadd.f32 %v9291_v2, %v673_v48  ;;  %v1203_v16 = vadd.f32 %v6606_v55, %v1172_v47  ;;  %v9294_v1 = vrot.slane %v9293_v5, 2  ;;  %v1092_v50 = vsel %vm6308_vm15, %v1090_v14, %v9296_v13 }
 0x139   :  { %1275 = vst [vmem:[#allocation1 + $0x2] ss:$4 sm:$0xff] %v5558_v31  ;;  %v921_v31 = vsel %vm6308_vm15, %v9297_v7, %v920_v45  ;;  %v989_v25 = vadd.f32 %v941_v33, %v6639_v6  ;;  %v6781_v6 = vsel %vm6308_vm15, %v6553_v15, %v923_v8  ;;  %v9298_v33 = vld [vmem:[#allocation5_spill] sm:$0xff]  ;;  %v1060_v15 = vadd.f32 %v1012_v59, %v988_v11 }
 0x13a   :  { %v5560_v62 = vpop.eup %5559  ;;  %v1204_v43 = vadd.f32 %v6646_v44, %v1173_v60  ;;  %5561 = vtanh.f32 %v1203_v16  ;;  %v1020_v48 = vrot.slane %v9294_v1, 4  ;;  %v1108_v13 = vrot.slane %v6729_v26, 6 }
 0x13b   :  { %1277 = vst [vmem:[#allocation1 + $0x3] ss:$4 sm:$0xff] %v5560_v62  ;;  %v1116_v62 = vrot.slane %v1092_v50, 6  ;;  %1370 = vmatpush.bf16.msrb.mxu1 %v5512_v61  ;;  %v1109_v50 = vrot.slane %v6753_v38, 6  ;;  %v901_v26 = vsel %vm6308_vm15, %v6685_v28, %v900_v12  ;;  %v903_v11 = vrot.slane %v6681_v58, 7 }
 0x13c   :  { %5563 = vtanh.f32 %v1204_v43  ;;  %v1068_v53 = vadd.f32 %v1020_v48, %v996_v18  ;;  %v949_v43 = vrot.slane %v921_v31, 2  ;;  %v9299_v18 = vrot.slane %v9298_v33, 6  ;;  %v9300_v31 = vld [vmem:[#allocation7_spill] sm:$0xff] }
 0x13d   :  { %v529_v47 = vpop.f32.mrf.mxu0 }
 0x13e   :  { %v689_v2 = vrot.slane %v529_v47, 2  ;;  %v694_v60 = vrot.slane %v529_v47, 4  ;;  %v1174_v16 = vadd.f32 %v6544_v20, %v529_v47  ;;  %v910_v20 = vrot.slane %v6723_v36, 7 }
 0x13f   :  { %v6774_v32 = vadd.f32 %v1116_v62, %v1068_v53  ;;  %v997_v5 = vadd.f32 %v949_v43, %v9299_v18  ;;  %v1013_v47 = vrot.slane %v6641_v37, 4  ;;  %1371 = vmatpush.bf16.msrb.mxu1 %v5511_v35 }
 0x140   :  { %v5562_v19 = vpop.eup %5561  ;;  %v1175_v46 = vadd.f32 %v6546_v3, %v689_v2  ;;  %v1176_v45 = vadd.f32 %v6694_v0, %v694_v60  ;;  %v1205_v14 = vadd.f32 %v6585_v30, %v1174_v16  ;;  %v1021_v3 = vrot.slane %v6448_v4, 4 }
 0x141   :  { %1279 = vst [vmem:[#allocation1 + $0x20] ss:$4 sm:$0xff] %v5562_v19  ;;  %v736_v2 = vsel %vm631_vm10, %v9300_v31, %v6676_v27  ;;  %v912_v60 = vrot.slane %v910_v20, 2  ;;  %v1117_v16 = vrot.slane %v6781_v6, 6  ;;  %v1061_v53 = vadd.f32 %v1013_v47, %v989_v25  ;;  %v5510_v27 = vld [vmem:[%s9182_s4] sm:$0xff] }
 0x142   :  { %v5564_v0 = vpop.eup %5563  ;;  %v1206_v1 = vadd.f32 %v6606_v55, %v1175_v46  ;;  %v1207_v48 = vadd.f32 %v6646_v44, %v1176_v45  ;;  %5565 = vtanh.f32 %v1205_v14  ;;  %v1069_v7 = vadd.f32 %v1021_v3, %v997_v5 }
 0x143   :  { %1281 = vst [vmem:[#allocation1 + $0x21] ss:$4 sm:$0xff] %v5564_v0  ;;  %v902_v46 = vrot.slane %v900_v12, 2  ;;  %v942_v45 = vrot.slane %v6753_v38, 2  ;;  %v1014_v25 = vrot.slane %v732_v10, 4  ;;  %v1085_v14 = vrot.slane %v736_v2, 7  ;;  %1372 = vmatpush.bf16.msrb.mxu1 %v5510_v27 }
 0x144   :  { %5567 = vtanh.f32 %v1206_v1  ;;  %v6807_v19 = vadd.f32 %v1117_v16, %v1069_v7  ;;  %v9301_v3 = vrot.slane %v9289_v29, 7  ;;  %v943_v12 = vrot.slane %v901_v26, 2  ;;  %v1286_v7 = vld.sshfl [vmem:[#allocation1] sm:$0xff pattern:$0x73625140] }
 0x145   :  { %5569 = vtanh.f32 %v1207_v48  ;;  %v532_v61 = vpop.f32.mrf.mxu0  ;;  %v1015_v38 = vrot.slane %v6679_v51, 4  ;;  %v906_v10 = vrot.slane %v6709_v9, 7  ;;  %v9302_v48 = vld [vmem:[#allocation10_spill] sm:$0xff]  ;;  %v1156_v31 = vadd.f32 %v1108_v13, %v1060_v15 }
 0x146   :  { %v706_v59 = vrot.slane %v532_v61, 2  ;;  %v711_v62 = vrot.slane %v532_v61, 4  ;;  %v716_v43 = vrot.slane %v532_v61, 6  ;;  %v6818_v0 = vsel %vm6308_vm15, %v912_v60, %v9301_v3 }
 0x147   :  { %v6829_v47 = vsel %vm631_vm10, %v6714_v41, %v9302_v48  ;;  %v1157_v57 = vadd.f32 %v1109_v50, %v1061_v53  ;;  %v904_v2 = vsel %vm6308_vm15, %v902_v46, %v903_v11  ;;  %v947_v60 = vrot.slane %v6818_v0, 2 }
 0x148   :  { %v5566_v28 = vpop.eup %5565  ;;  %v1177_v33 = vadd.f32 %v6601_v23, %v706_v59  ;;  %v1178_v18 = vadd.f32 %v6738_v56, %v711_v62  ;;  %v1179_v5 = vadd.f32 %v1155_v49, %v716_v43  ;;  %v990_v16 = vadd.f32 %v942_v45, %v6641_v37 }
 0x149   :  { %1283 = vst [vmem:[#allocation1 + $0x22] ss:$4 sm:$0xff] %v5566_v28  ;;  %v1086_v61 = vsel %vm6308_vm15, %v1084_v42, %v1085_v14  ;;  %v905_v26 = vrot.slane %v903_v11, 2  ;;  %v761_v59 = vrot.slane %v6829_v47, 4  ;;  %v995_v15 = vadd.f32 %v947_v60, %v6723_v36 }
 0x14a   :  { %v5568_v1 = vpop.eup %5567  ;;  %v1208_v23 = vadd.f32 %v6585_v30, %v1177_v33  ;;  %v1209_v56 = vadd.f32 %v6606_v55, %v1178_v18  ;;  %v1210_v49 = vadd.f32 %v6646_v44, %v1179_v5  ;;  %v1019_v13 = vrot.slane %v9289_v29, 4  ;;  %v9303_v33 = vld [vmem:[#allocation8_spill] sm:$0xff]  ;;  %v9304_v18 = vld [vmem:[#allocation3_spill] sm:$0xff] }
 0x14b   :  { %v5570_v35 = vpop.eup %5569  ;;  %1285 = vst [vmem:[#allocation1 + $0x23] ss:$4 sm:$0xff] %v5568_v1  ;;  %v991_v62 = vadd.f32 %v943_v12, %v740_v39  ;;  %v944_v43 = vrot.slane %v904_v2, 2  ;;  %v907_v37 = vsel %vm6308_vm15, %v905_v26, %v906_v10  ;;  %v1115_v11 = vrot.slane %v6734_v22, 6 }
 0x14c   :  { %1288 = vst [vmem:[#allocation1] ss:$4 sm:$0xff] %v5570_v35  ;;  %5571 = vtanh.f32 %v1208_v23  ;;  %v1067_v27 = vadd.f32 %v1019_v13, %v995_v15  ;;  %v1062_v14 = vadd.f32 %v1014_v25, %v990_v16  ;;  %v1110_v28 = vrot.slane %v1086_v61, 6 }
 0x14d   :  { %5573 = vtanh.f32 %v1209_v56  ;;  %v534_v41 = vpop.f32.mrf.mxu0  ;;  %v791_v29 = vsel %vm629_vm6, %v9304_v18, %v9303_v33  ;;  %v5214_v39 = vrot.slane %v761_v59, 9  ;;  %v1063_v42 = vadd.f32 %v1015_v38, %v991_v62  ;;  %v9305_v56 = vld [vmem:[#allocation6_spill] sm:$0xff] }
 0x14e   :  { %5575 = vtanh.f32 %v1210_v49  ;;  %v728_v50 = vrot.slane %v534_v41, 4  ;;  %v733_v53 = vrot.slane %v534_v41, 6  ;;  %v6853_v5 = vadd.f32 %v1115_v11, %v1067_v27  ;;  %v9306_v49 = vld [vmem:[#allocation2_spill] sm:$0xff] }
 0x14f   :  { %v945_v1 = vrot.slane %v907_v37, 2  ;;  %v753_v48 = vsel %vm633_vm8, %v9306_v49, %v9305_v56  ;;  %v6862_v63 = vsel %vm631_vm10, %v6540_v54, %v791_v29  ;;  %v992_v35 = vadd.f32 %v944_v43, %v6679_v51 }
 0x150   :  { %v1180_v46 = vadd.f32 %v1156_v31, %v728_v50  ;;  %v1181_v45 = vadd.f32 %v1157_v57, %v733_v53  ;;  %v755_v57 = vsel %vm637_vm7, %v753_v48, %v754_v40  ;;  %v1111_v38 = vrot.slane %v904_v2, 6 }
 0x151   :  { %v1158_v60 = vadd.f32 %v1110_v28, %v1062_v14  ;;  %v1016_v61 = vrot.slane %v6681_v58, 4  ;;  %v1087_v26 = vrot.slane %v906_v10, 2  ;;  %v911_v54 = vsel %vm6308_vm15, %v5214_v39, %v910_v20 }
 0x152   :  { %v5572_v3 = vpop.eup %5571  ;;  %v1211_v22 = vadd.f32 %v6585_v30, %v1180_v46  ;;  %v1212_v12 = vadd.f32 %v6606_v55, %v1181_v45  ;;  %v1287_v25 = vld.sshfl [vmem:[#allocation1 + $0x20] sm:$0xff pattern:$0x73625140]  ;;  %v993_v15 = vadd.f32 %v945_v1, %v6681_v58  ;;  %v5219_v13 = vrot.slane %v755_v57, 9 }
 0x153   :  { %v5574_v23 = vpop.eup %5573  ;;  %1289 = vst [vmem:[#allocation1 + $0x1] ss:$4 sm:$0xff] %v5572_v3  ;;  %v1314_v24 = vpack.c.bf16 %v1287_v25, %v1286_v7  ;;  %v1159_v7 = vadd.f32 %v1111_v38, %v1063_v42  ;;  %v1017_v2 = vrot.slane %v6709_v9, 4  ;;  %v1064_v50 = vadd.f32 %v1016_v61, %v992_v35 }
 0x154   :  { %v5576_v31 = vpop.eup %5575  ;;  %1290 = vst [vmem:[#allocation1 + $0x2] ss:$4 sm:$0xff] %v5574_v23  ;;  %5577 = vtanh.f32 %v1211_v22  ;;  %v1112_v43 = vrot.slane %v907_v37, 6  ;;  %v946_v27 = vrot.slane %v911_v54, 2  ;;  %v794_v10 = vrot.slane %v6862_v63, 4 }
 0x155   :  { %1291 = vst [vmem:[#allocation1 + $0x3] ss:$4 sm:$0xff] %v5576_v31  ;;  %5579 = vtanh.f32 %v1212_v12  ;;  %v537_v16 = vpop.f32.mrf.mxu0  ;;  %1373 = vmatmul.bf16.vlgmr.msrb.gmra.mxu1 %v1314_v24  ;;  %v1089_v11 = vsel %vm6308_vm15, %v1087_v26, %v5219_v13  ;;  %v1065_v45 = vadd.f32 %v1017_v2, %v993_v15  ;;  %v925_v9 = vrot.slane %v923_v8, 2 }
 0x156   :  { %v749_v51 = vrot.slane %v537_v16, 6  ;;  %v1182_v41 = vadd.f32 %v1158_v60, %v537_v16  ;;  %v1113_v14 = vrot.slane %v1089_v11, 6  ;;  %v1160_v37 = vadd.f32 %v1112_v43, %v1064_v50 }
 0x157   :  { %v994_v28 = vadd.f32 %v946_v27, %v761_v59  ;;  %v926_v29 = vrot.slane %v794_v10, 7  ;;  %v1018_v12 = vrot.slane %v6723_v36, 4  ;;  %v797_v47 = vsel %vm633_vm8, %v6345_v17, %v6385_v52 }
 0x158   :  { %v1183_v53 = vadd.f32 %v1159_v7, %v749_v51  ;;  %v1213_v62 = vadd.f32 %v6646_v44, %v1182_v41  ;;  %v1161_v3 = vadd.f32 %v1113_v14, %v1065_v45  ;;  %v950_v59 = vrot.slane %v6781_v6, 2 }
 0x159   :  { %v927_v25 = vsel %vm6308_vm15, %v925_v9, %v926_v29  ;;  %v1066_v23 = vadd.f32 %v1018_v12, %v994_v28  ;;  %v1114_v36 = vrot.slane %v6818_v0, 6  ;;  %v796_v63 = vsel %vm635_vm9, %v9303_v33, %v9304_v18 }
 0x15a   :  { %v5578_v20 = vpop.eup %5577  ;;  %v1214_v46 = vadd.f32 %v6585_v30, %v1183_v53  ;;  %5581 = vtanh.f32 %v1213_v62  ;;  %v951_v48 = vrot.slane %v927_v25, 2  ;;  %v798_v24 = vsel %vm637_vm7, %v797_v47, %v796_v63 }
 0x15b   :  { %v5580_v58 = vpop.eup %5579  ;;  %1292 = vst [vmem:[#allocation1 + $0x20] ss:$4 sm:$0xff] %v5578_v20  ;;  %v1162_v35 = vadd.f32 %v1114_v36, %v1066_v23  ;;  %v1093_v17 = vrot.slane %v926_v29, 2  ;;  %v998_v6 = vadd.f32 %v950_v59, %v6448_v4  ;;  %v5221_v0 = vrot.slane %v798_v24, 13 }
 0x15c   :  { %1293 = vst [vmem:[#allocation1 + $0x21] ss:$4 sm:$0xff] %v5580_v58  ;;  %5583 = vtanh.f32 %v1214_v46  ;;  %v999_v60 = vadd.f32 %v951_v48, %v6535_v21  ;;  %v1022_v16 = vrot.slane %v6535_v21, 4  ;;  %v1296_v26 = vld.sshfl [vmem:[#allocation1] sm:$0xff pattern:$0x73625140] }
 0x15d   :  { %v539_v40 = vpop.f32.mrf.mxu0  ;;  %v1023_v51 = vrot.slane %v794_v10, 4  ;;  %v1095_v4 = vsel %vm6308_vm15, %v1093_v17, %v5221_v0  ;;  %vm3257_vm7 = vcmask 1042432   ;;  %vm7770_vm15 = vmor %vm114_vm0, %vm844_vm12  ;;  %vm4874_vm0 = vcmask 1045509  }
 0x15e   :  { %v757_v39 = vrot.slane %v539_v40, 2  ;;  %v1184_v22 = vadd.f32 %v1160_v37, %v539_v40  ;;  %v1070_v7 = vadd.f32 %v1022_v16, %v998_v6  ;;  %vm7317_vm13 = vmor %vm3257_vm7, %vm3258_vm11 }
 0x15f   :  { %v1071_v2 = vadd.f32 %v1023_v51, %v999_v60 }
 0x160   :  { %v5582_v42 = vpop.eup %5581  ;;  %v1185_v1 = vadd.f32 %v1161_v3, %v757_v39  ;;  %v1215_v8 = vadd.f32 %v6606_v55, %v1184_v22 }
 0x161   :  { %1294 = vst [vmem:[#allocation1 + $0x22] ss:$4 sm:$0xff] %v5582_v42 }
 0x162   :  { %v5584_v56 = vpop.eup %5583  ;;  %v1216_v49 = vadd.f32 %v6646_v44, %v1185_v1  ;;  %5585 = vtanh.f32 %v1215_v8 }
 0x163   :  { %1295 = vst [vmem:[#allocation1 + $0x23] ss:$4 sm:$0xff] %v5584_v56 }
 0x164   :  { %5587 = vtanh.f32 %v1216_v49 }
 0x165   :  { %v542_v52 = vpop.f32.mrf.mxu0 }
 0x166   :  { %v773_v31 = vrot.slane %v542_v52, 2  ;;  %v778_v57 = vrot.slane %v542_v52, 4  ;;  %v1186_v38 = vadd.f32 %v1162_v35, %v542_v52 }
 0x168   :  { %v5586_v61 = vpop.eup %5585  ;;  %v1187_v33 = vadd.f32 %v6853_v5, %v773_v31  ;;  %v1188_v18 = vadd.f32 %v6774_v32, %v778_v57  ;;  %v1217_v54 = vadd.f32 %v6585_v30, %v1186_v38  ;;  %v1118_v5 = vrot.slane %v927_v25, 6 }
 0x169   :  { %1298 = vst [vmem:[#allocation1] ss:$4 sm:$0xff] %v5586_v61  ;;  %v1119_v32 = vrot.slane %v1095_v4, 6 }
 0x16a   :  { %v5588_v41 = vpop.eup %5587  ;;  %v1297_v15 = vld.sshfl [vmem:[#allocation1 + $0x20] sm:$0xff pattern:$0x73625140]  ;;  %v1218_v13 = vadd.f32 %v6606_v55, %v1187_v33  ;;  %v1219_v21 = vadd.f32 %v6646_v44, %v1188_v18  ;;  %5589 = vtanh.f32 %v1217_v54  ;;  %v1166_v53 = vadd.f32 %v1118_v5, %v1070_v7  ;;  %v5525_v33 = vld [vmem:[%s9183_s6 + $0x38] sm:$0xf0] }
 0x16b   :  { %1299 = vst [vmem:[#allocation1 + $0x1] ss:$4 sm:$0xff] %v5588_v41  ;;  %v1315_v62 = vpack.c.bf16 %v1297_v15, %v1296_v26  ;;  %v1167_v10 = vadd.f32 %v1119_v32, %v1071_v2  ;;  %v5276_v26 = vld [vmem:[%s9183_s6 + $0x28] sm:$0xf] }
 0x16c   :  { %5591 = vtanh.f32 %v1218_v13  ;;  %v5277_v18 = vor.u32 %v5525_v33, %v5276_v26 }
 0x16d   :  { %5593 = vtanh.f32 %v1219_v21  ;;  %v544_v50 = vpop.f32.mrf.mxu0  ;;  %1378 = vmatmul.bf16.gmra.mxu1 %v1315_v62 }
 0x16e   :  { %v790_v43 = vrot.slane %v544_v50, 2  ;;  %v795_v27 = vrot.slane %v544_v50, 4  ;;  %v800_v34 = vrot.slane %v544_v50, 6  ;;  %5540 = vmatpush.bf16.msrb.mxu2 %v5277_v18  ;;  %2216 = vmatpush.bf16.msra.mxu1 %v5277_v18 }
 0x170   :  { %v5590_v11 = vpop.eup %5589  ;;  %v1189_v20 = vadd.f32 %v6807_v19, %v790_v43  ;;  %v1190_v46 = vadd.f32 %v1166_v53, %v795_v27  ;;  %v1191_v45 = vadd.f32 %v1167_v10, %v800_v34 }
 0x171   :  { %1300 = vst [vmem:[#allocation1 + $0x2] ss:$4 sm:$0xff] %v5590_v11 }
 0x172   :  { %v5592_v58 = vpop.eup %5591  ;;  %v1220_v9 = vadd.f32 %v6585_v30, %v1189_v20  ;;  %v1221_v14 = vadd.f32 %v6606_v55, %v1190_v46  ;;  %v1222_v37 = vadd.f32 %v6646_v44, %v1191_v45  ;;  %v6913_v30 = vld [vmem:[%s9181_s5] ss:$0 sm:$0xff] }
 0x173   :  { %v5594_v28 = vpop.eup %5593  ;;  %1301 = vst [vmem:[#allocation1 + $0x3] ss:$4 sm:$0xff] %v5592_v58  ;;  %v6916_v55 = vrot.slane %v6913_v30, 2  ;;  %v6919_v44 = vrot.slane %v6913_v30, 4 }
 0x174   :  { %1302 = vst [vmem:[#allocation1 + $0x20] ss:$4 sm:$0xff] %v5594_v28  ;;  %5595 = vtanh.f32 %v1220_v9 }
 0x175   :  { %5597 = vtanh.f32 %v1221_v14 }
 0x176   :  { %5599 = vtanh.f32 %v1222_v37 }
 0x17a   :  { %v5596_v29 = vpop.eup %5595  ;;  %v1306_v39 = vld.sshfl [vmem:[#allocation1] sm:$0xff pattern:$0x73625140] }
 0x17b   :  { %v5598_v40 = vpop.eup %5597  ;;  %1303 = vst [vmem:[#allocation1 + $0x21] ss:$4 sm:$0xff] %v5596_v29 }
 0x17c   :  { %v5600_v19 = vpop.eup %5599  ;;  %1304 = vst [vmem:[#allocation1 + $0x22] ss:$4 sm:$0xff] %v5598_v40 }
 0x17d   :  { %1305 = vst [vmem:[#allocation1 + $0x23] ss:$4 sm:$0xff] %v5600_v19 }
 0x184   :  { %v1307_v3 = vld.sshfl [vmem:[#allocation1 + $0x20] sm:$0xff pattern:$0x73625140] }
 0x185   :  { %v1316_v22 = vpack.c.bf16 %v1307_v3, %v1306_v39 }
 0x187   :  { %1383 = vmatmul.bf16.gmra.mxu1 %v1316_v22 }
 0x1d2   :  { %v1374_v12 = vpop.f32.mrf.mxu1 }
 0x1d3   :  { %v1395_v25 = vrot.slane %v1374_v12, 2  ;;  %v1396_v42 = vrot.slane %v1374_v12, 4  ;;  %v1397_v1 = vrot.slane %v1374_v12, 6  ;;  %v1438_v8 = vadd.f32 %v6913_v30, %v1374_v12 }
 0x1d5   :  { %v1439_v23 = vadd.f32 %v6916_v55, %v1395_v25  ;;  %v1440_v47 = vadd.f32 %v6919_v44, %v1396_v42  ;;  %v1441_v59 = vadd.f32 %v6913_v30, %v1397_v1  ;;  %5601 = vtanh.f32 %v1438_v8 }
 0x1d7   :  { %5603 = vtanh.f32 %v1439_v23 }
 0x1d8   :  { %5605 = vtanh.f32 %v1440_v47 }
 0x1d9   :  { %5607 = vtanh.f32 %v1441_v59 }
 0x1da   :  { %v1376_v56 = vpop.f32.mrf.mxu1 }
 0x1db   :  { %v5602_v49 = vpop.eup %5601  ;;  %v1398_v36 = vrot.slane %v1376_v56, 2  ;;  %v1399_v48 = vrot.slane %v1376_v56, 4  ;;  %v1400_v63 = vrot.slane %v1376_v56, 6  ;;  %v1442_v24 = vadd.f32 %v6916_v55, %v1376_v56 }
 0x1dc   :  { %1510 = vst [vmem:[#allocation1] ss:$4 sm:$0xff] %v5602_v49 }
 0x1dd   :  { %v5604_v35 = vpop.eup %5603  ;;  %v1443_v17 = vadd.f32 %v6919_v44, %v1398_v36  ;;  %v1444_v52 = vadd.f32 %v6913_v30, %v1399_v48  ;;  %v1445_v6 = vadd.f32 %v6916_v55, %v1400_v63  ;;  %5609 = vtanh.f32 %v1442_v24 }
 0x1de   :  { %v5606_v31 = vpop.eup %5605  ;;  %1512 = vst [vmem:[#allocation1 + $0x1] ss:$4 sm:$0xff] %v5604_v35 }
 0x1df   :  { %v5608_v57 = vpop.eup %5607  ;;  %1514 = vst [vmem:[#allocation1 + $0x2] ss:$4 sm:$0xff] %v5606_v31  ;;  %5611 = vtanh.f32 %v1443_v17  ;;  %v1611_v17 = vld [vmem:[%s9184_s1] sm:$0xf]  ;;  %v1615_v31 = vld [vmem:[%s9184_s1 + $0x10] sm:$0xf] }
 0x1e0   :  { %1517 = vst [vmem:[#allocation1 + $0x20] ss:$4 sm:$0xff] %v5608_v57  ;;  %5613 = vtanh.f32 %v1444_v52  ;;  %v1741_v18 = vrot.slane %v1615_v31, 2 }
 0x1e1   :  { %5615 = vtanh.f32 %v1445_v6 }
 0x1e3   :  { %v5610_v38 = vpop.eup %5609 }
 0x1e4   :  { %1519 = vst [vmem:[#allocation1 + $0x21] ss:$4 sm:$0xff] %v5610_v38 }
 0x1e5   :  { %v5612_v60 = vpop.eup %5611 }
 0x1e6   :  { %v5614_v0 = vpop.eup %5613  ;;  %v6929_v16 = vld.sshfl [vmem:[#allocation1] sm:$0xff pattern:$0x73625140]  ;;  %1521 = vst [vmem:[#allocation1 + $0x22] ss:$4 sm:$0xff] %v5612_v60 }
 0x1e7   :  { %9307 = vst [vmem:[#allocation11_spill] sm:$0xff] %v6929_v16  ;;  %v5616_v61 = vpop.eup %5615 }
 0x1e8   :  { %1523 = vst [vmem:[#allocation1] ss:$4 sm:$0xff] %v5614_v0 }
 0x1e9   :  { %1524 = vst [vmem:[#allocation1 + $0x1] ss:$4 sm:$0xff] %v5616_v61  ;;  %v1614_v61 = vld [vmem:[%s9184_s1 + $0xc] sm:$0x3] }
 0x1ea   :  { %v1379_v54 = vpop.f32.mrf.mxu1 }
 0x1eb   :  { %v1401_v51 = vrot.slane %v1379_v54, 2  ;;  %v1402_v7 = vrot.slane %v1379_v54, 4  ;;  %v1403_v4 = vrot.slane %v1379_v54, 6  ;;  %v1446_v41 = vadd.f32 %v6919_v44, %v1379_v54 }
 0x1ed   :  { %v1447_v15 = vadd.f32 %v6913_v30, %v1401_v51  ;;  %v1448_v13 = vadd.f32 %v6916_v55, %v1402_v7  ;;  %v1449_v21 = vadd.f32 %v6919_v44, %v1403_v4  ;;  %5617 = vtanh.f32 %v1446_v41  ;;  %v6942_v27 = vld.sshfl [vmem:[#allocation1 + $0x20] sm:$0xff pattern:$0x73625140]  ;;  %v1617_v41 = vld [vmem:[%s9184_s1 + $0x18] sm:$0xf] }
 0x1ee   :  { %9308 = vst [vmem:[#allocation9_spill] sm:$0xff] %v6942_v27  ;;  %v1740_v4 = vrot.slane %v1614_v61, 2 }
 0x1ef   :  { %5619 = vtanh.f32 %v1447_v15 }
 0x1f0   :  { %5621 = vtanh.f32 %v1448_v13 }
 0x1f1   :  { %5623 = vtanh.f32 %v1449_v21  ;;  %v1806_v21 = vsel %vm633_vm8, %v1615_v31, %v1741_v18 }
 0x1f2   :  { %v1381_v2 = vpop.f32.mrf.mxu1 }
 0x1f3   :  { %v5618_v5 = vpop.eup %5617  ;;  %v1404_v32 = vrot.slane %v1381_v2, 2  ;;  %v1405_v50 = vrot.slane %v1381_v2, 4  ;;  %v1406_v53 = vrot.slane %v1381_v2, 6  ;;  %v1450_v62 = vadd.f32 %v6913_v30, %v1381_v2 }
 0x1f4   :  { %1525 = vst [vmem:[#allocation1 + $0x2] ss:$4 sm:$0xff] %v5618_v5 }
 0x1f5   :  { %v5620_v43 = vpop.eup %5619  ;;  %v1451_v34 = vadd.f32 %v6916_v55, %v1404_v32  ;;  %v1452_v10 = vadd.f32 %v6919_v44, %v1405_v50  ;;  %v1453_v11 = vadd.f32 %v6913_v30, %v1406_v53  ;;  %5625 = vtanh.f32 %v1450_v62  ;;  %v1616_v32 = vld [vmem:[%s9184_s1 + $0x14] sm:$0x3]  ;;  %v1619_v53 = vld [vmem:[%s9184_s1 + $0x20] sm:$0xf] }
 0x1f6   :  { %v5622_v20 = vpop.eup %5621  ;;  %1527 = vst [vmem:[#allocation1 + $0x20] ss:$4 sm:$0xff] %v5620_v43  ;;  %v1743_v50 = vrot.slane %v1617_v41, 2  ;;  %v1802_v62 = vsel %vm627_vm5, %v1614_v61, %v1740_v4  ;;  %v1805_v43 = vsel %vm627_vm5, %v1615_v31, %v1741_v18 }
 0x1f7   :  { %v5624_v46 = vpop.eup %5623  ;;  %1528 = vst [vmem:[#allocation1 + $0x21] ss:$4 sm:$0xff] %v5622_v20  ;;  %5627 = vtanh.f32 %v1451_v34  ;;  %v1808_v34 = vrot.slane %v1806_v21, 2  ;;  %v1618_v20 = vld [vmem:[%s9184_s1 + $0x1c] sm:$0x3] }
 0x1f8   :  { %1529 = vst [vmem:[#allocation1 + $0x22] ss:$4 sm:$0xff] %v5624_v46  ;;  %5629 = vtanh.f32 %v1452_v10  ;;  %v1745_v46 = vrot.slane %v1619_v53, 2 }
 0x1f9   :  { %5631 = vtanh.f32 %v1453_v11  ;;  %v1742_v11 = vrot.slane %v1616_v32, 2 }
 0x1fb   :  { %v5626_v45 = vpop.eup %5625  ;;  %v6947_v58 = vld.sshfl [vmem:[#allocation1] sm:$0xff pattern:$0x73625140] }
 0x1fc   :  { %9309 = vst [vmem:[#allocation12_spill] sm:$0xff] %v6947_v58 }
 0x1fd   :  { %1531 = vst [vmem:[#allocation1] ss:$4 sm:$0xff] %v5626_v45  ;;  %v5628_v9 = vpop.eup %5627  ;;  %v1815_v45 = vsel %vm633_vm8, %v1617_v41, %v1743_v50 }
 0x1fe   :  { %v5630_v14 = vpop.eup %5629  ;;  %1532 = vst [vmem:[#allocation1 + $0x1] ss:$4 sm:$0xff] %v5628_v9  ;;  %v1620_v9 = vld [vmem:[%s9184_s1 + $0x24] sm:$0x3] }
 0x1ff   :  { %v5632_v37 = vpop.eup %5631  ;;  %v6949_v28 = vld.sshfl [vmem:[#allocation1 + $0x20] sm:$0xff pattern:$0x73625140]  ;;  %1533 = vst [vmem:[#allocation1 + $0x2] ss:$4 sm:$0xff] %v5630_v14  ;;  %v1744_v14 = vrot.slane %v1618_v20, 2 }
 0x200   :  { %9310 = vst [vmem:[#allocation16_spill] sm:$0xff] %v6949_v28 }
 0x201   :  { %1535 = vst [vmem:[#allocation1 + $0x20] ss:$4 sm:$0xff] %v5632_v37  ;;  %v1621_v37 = vld [vmem:[%s9184_s1 + $0x28] sm:$0xf] }
 0x204   :  { %v1384_v29 = vpop.f32.mrf.mxu1 }
 0x205   :  { %v1407_v40 = vrot.slane %v1384_v29, 2  ;;  %v1408_v19 = vrot.slane %v1384_v29, 4  ;;  %v1409_v39 = vrot.slane %v1384_v29, 6  ;;  %v1454_v3 = vadd.f32 %v6916_v55, %v1384_v29 }
 0x206   :  { %v6959_v24 = vld.sshfl [vmem:[#allocation1] sm:$0xff pattern:$0x73625140]  ;;  %v1811_v29 = vsel %vm627_vm5, %v1616_v32, %v1742_v11  ;;  %v5258_v11 = vld [vmem:[%s9183_s6 + $0x14] sm:$0xf0] }
 0x207   :  { %v1455_v22 = vadd.f32 %v6919_v44, %v1407_v40  ;;  %v1456_v12 = vadd.f32 %v6913_v30, %v1408_v19  ;;  %v1457_v25 = vadd.f32 %v6916_v55, %v1409_v39  ;;  %5633 = vtanh.f32 %v1454_v3  ;;  %9311 = vst [vmem:[#allocation14_spill] sm:$0xff] %v6959_v24 }
 0x208   :  { %v1814_v40 = vsel %vm627_vm5, %v1617_v41, %v1743_v50  ;;  %v1817_v19 = vrot.slane %v1815_v45, 2  ;;  %v1824_v39 = vsel %vm633_vm8, %v1619_v53, %v1745_v46  ;;  %v1746_v3 = vrot.slane %v1620_v9, 2  ;;  %v5523_v50 = vld [vmem:[%s9183_s6 + $0x2c] sm:$0xf] }
 0x209   :  { %5635 = vtanh.f32 %v1455_v22 }
 0x20a   :  { %5637 = vtanh.f32 %v1456_v12  ;;  %v1747_v12 = vrot.slane %v1621_v37, 2 }
 0x20b   :  { %5639 = vtanh.f32 %v1457_v25  ;;  %v1623_v25 = vld [vmem:[%s9184_s1 + $0x30] sm:$0xf] }
 0x20c   :  { %v1386_v42 = vpop.f32.mrf.mxu1 }
 0x20d   :  { %v5634_v1 = vpop.eup %5633  ;;  %v1410_v8 = vrot.slane %v1386_v42, 2  ;;  %v1411_v23 = vrot.slane %v1386_v42, 4  ;;  %v1412_v47 = vrot.slane %v1386_v42, 6  ;;  %v1458_v59 = vadd.f32 %v6919_v44, %v1386_v42 }
 0x20e   :  { %1536 = vst [vmem:[#allocation1 + $0x21] ss:$4 sm:$0xff] %v5634_v1  ;;  %v1820_v42 = vsel %vm627_vm5, %v1618_v20, %v1744_v14  ;;  %v1823_v1 = vsel %vm627_vm5, %v1619_v53, %v1745_v46  ;;  %v5278_v53 = vld [vmem:[%s9183_s6 + $0x3c] sm:$0xf0] }
 0x20f   :  { %v5636_v56 = vpop.eup %5635  ;;  %v1459_v49 = vadd.f32 %v6913_v30, %v1410_v8  ;;  %v1460_v36 = vadd.f32 %v6916_v55, %v1411_v23  ;;  %v1461_v48 = vadd.f32 %v6919_v44, %v1412_v47  ;;  %5641 = vtanh.f32 %v1458_v59  ;;  %v1612_v55 = vld [vmem:[%s9184_s1 + $0x4] sm:$0x3]  ;;  %v1613_v44 = vld [vmem:[%s9184_s1 + $0x8] sm:$0xf]  ;;  %v1622_v23 = vld [vmem:[%s9184_s1 + $0x2c] sm:$0x3] }
 0x210   :  { %v5638_v63 = vpop.eup %5637  ;;  %1537 = vst [vmem:[#allocation1 + $0x22] ss:$4 sm:$0xff] %v5636_v56  ;;  %v1737_v30 = vrot.slane %v1611_v17, 2  ;;  %v1738_v26 = vrot.slane %v1612_v55, 2  ;;  %v1739_v33 = vrot.slane %v1613_v44, 2  ;;  %v1826_v8 = vrot.slane %v1824_v39, 2 }
 0x211   :  { %v5640_v35 = vpop.eup %5639  ;;  %1539 = vst [vmem:[#allocation1] ss:$4 sm:$0xff] %v5638_v63  ;;  %5643 = vtanh.f32 %v1459_v49  ;;  %v1625_v47 = vld [vmem:[%s9184_s1 + $0x38] sm:$0xf]  ;;  %v1749_v59 = vrot.slane %v1623_v25, 2  ;;  %v1829_v56 = vsel %vm627_vm5, %v1620_v9, %v1746_v3 }
 0x212   :  { %1540 = vst [vmem:[#allocation1 + $0x1] ss:$4 sm:$0xff] %v5640_v35  ;;  %5645 = vtanh.f32 %v1460_v36  ;;  %v1788_v60 = vsel %vm633_vm8, %v1611_v17, %v1737_v30  ;;  %v1787_v54 = vsel %vm627_vm5, %v1611_v17, %v1737_v30  ;;  %v1797_v7 = vsel %vm633_vm8, %v1613_v44, %v1739_v33  ;;  %v1624_v63 = vld [vmem:[%s9184_s1 + $0x34] sm:$0x3] }
 0x213   :  { %5647 = vtanh.f32 %v1461_v48  ;;  %v1790_v51 = vrot.slane %v1788_v60, 2  ;;  %v1793_v13 = vsel %vm627_vm5, %v1612_v55, %v1738_v26  ;;  %v1796_v2 = vsel %vm627_vm5, %v1613_v44, %v1739_v33  ;;  %v1626_v55 = vld [vmem:[%s9184_s1 + $0x3c] sm:$0x3]  ;;  %v1631_v26 = vld [vmem:[%s9184_s1 + $0x50] sm:$0xf] }
 0x214   :  { %v1799_v5 = vrot.slane %v1797_v7, 2  ;;  %v1832_v36 = vsel %vm627_vm5, %v1621_v37, %v1747_v12  ;;  %v1833_v48 = vsel %vm633_vm8, %v1621_v37, %v1747_v12  ;;  %v1748_v35 = vrot.slane %v1622_v23, 2  ;;  %v1629_v33 = vld [vmem:[%s9184_s1 + $0x48] sm:$0xf] }
 0x215   :  { %v5642_v52 = vpop.eup %5641  ;;  %v1751_v17 = vrot.slane %v1625_v47, 2  ;;  %v1835_v30 = vrot.slane %v1833_v48, 2  ;;  %v1750_v44 = vrot.slane %v1624_v63, 2  ;;  %v1841_v31 = vsel %vm627_vm5, %v1623_v25, %v1749_v59  ;;  %v1636_v48 = vld [vmem:[%s9184_s1 + $0x64] sm:$0x3] }
 0x216   :  { %1541 = vst [vmem:[#allocation1 + $0x2] ss:$4 sm:$0xff] %v5642_v52  ;;  %v1842_v52 = vsel %vm633_vm8, %v1623_v25, %v1749_v59  ;;  %v1752_v61 = vrot.slane %v1626_v55, 2  ;;  %v1757_v4 = vrot.slane %v1631_v26, 2  ;;  %v1755_v21 = vrot.slane %v1629_v33, 2 }
 0x217   :  { %v5644_v6 = vpop.eup %5643  ;;  %v6973_v57 = vld.sshfl [vmem:[#allocation1 + $0x20] sm:$0xff pattern:$0x73625140]  ;;  %v1851_v60 = vsel %vm633_vm8, %v1625_v47, %v1751_v17  ;;  %v1847_v18 = vsel %vm627_vm5, %v1624_v63, %v1750_v44  ;;  %v1633_v63 = vld [vmem:[%s9184_s1 + $0x58] sm:$0xf]  ;;  %v1762_v44 = vrot.slane %v1636_v48, 2 }
 0x218   :  { %9312 = vst [vmem:[#allocation4_spill] sm:$0xff] %v6973_v57  ;;  %v5646_v38 = vpop.eup %5645  ;;  %v1856_v41 = vsel %vm627_vm5, %v1626_v55, %v1752_v61  ;;  %v1868_v20 = vsel %vm627_vm5, %v1629_v33, %v1755_v21  ;;  %v1878_v37 = vsel %vm633_vm8, %v1631_v26, %v1757_v4  ;;  %v1877_v12 = vsel %vm627_vm5, %v1631_v26, %v1757_v4  ;;  %v1632_v55 = vld [vmem:[%s9184_s1 + $0x54] sm:$0x3]  ;;  %v1634_v61 = vld [vmem:[%s9184_s1 + $0x5c] sm:$0x3] }
 0x219   :  { %1543 = vst [vmem:[#allocation1 + $0x20] ss:$4 sm:$0xff] %v5644_v6  ;;  %v5648_v0 = vpop.eup %5647  ;;  %v1838_v6 = vsel %vm627_vm5, %v1622_v23, %v1748_v35  ;;  %v1880_v25 = vrot.slane %v1878_v37, 2  ;;  %v1758_v26 = vrot.slane %v1632_v55, 2  ;;  %v1760_v4 = vrot.slane %v1634_v61, 2 }
 0x21a   :  { %1544 = vst [vmem:[#allocation1 + $0x21] ss:$4 sm:$0xff] %v5646_v38  ;;  %v1844_v38 = vrot.slane %v1842_v52, 2  ;;  %v1639_v37 = vld [vmem:[%s9184_s1 + $0x70] sm:$0xf] }
 0x21b   :  { %1545 = vst [vmem:[#allocation1 + $0x22] ss:$4 sm:$0xff] %v5648_v0 }
 0x21d   :  { %v6984_v15 = vld.sshfl [vmem:[#allocation1] sm:$0xff pattern:$0x73625140] }
 0x21e   :  { %9313 = vst [vmem:[#allocation13_spill] sm:$0xff] %v6984_v15 }
 0x21f   :  { %2001 = vst [vmem:[#allocation1] ss:$4 sm:$0xff] %v1787_v54  ;;  %v1850_v54 = vsel %vm627_vm5, %v1625_v47, %v1751_v17 }
 0x220   :  { %2004 = vst [vmem:[#allocation1 + $0x1] ss:$4 sm:$0xff] %v1790_v51  ;;  %v1853_v51 = vrot.slane %v1851_v60, 2 }
 0x221   :  { %2006 = vst [vmem:[#allocation1 + $0x2] ss:$4 sm:$0xff] %v1793_v13  ;;  %v1630_v13 = vld [vmem:[%s9184_s1 + $0x4c] sm:$0x3] }
 0x222   :  { %v6997_v10 = vld.sshfl [vmem:[#allocation1 + $0x20] sm:$0xff pattern:$0x73625140]  ;;  %2008 = vst [vmem:[#allocation1 + $0x3] ss:$4 sm:$0xff] %v1796_v2  ;;  %v1756_v46 = vrot.slane %v1630_v13, 2 }
 0x223   :  { %9314 = vst [vmem:[#allocation15_spill] sm:$0xff] %v6997_v10  ;;  %v5256_v2 = vld [vmem:[%s9183_s6] sm:$0xf] }
 0x224   :  { %2011 = vst [vmem:[#allocation1 + $0x20] ss:$4 sm:$0xff] %v1799_v5  ;;  %v5520_v5 = vld [vmem:[%s9183_s6 + $0x10] sm:$0xf0]  ;;  %v1874_v39 = vsel %vm627_vm5, %v1630_v13, %v1756_v46  ;;  %v1883_v13 = vsel %vm627_vm5, %v1632_v55, %v1758_v26 }
 0x225   :  { %2013 = vst [vmem:[#allocation1 + $0x21] ss:$4 sm:$0xff] %v1802_v62  ;;  %v5257_v32 = vor.u32 %v5520_v5, %v5256_v2  ;;  %v1869_v62 = vsel %vm633_vm8, %v1629_v33, %v1755_v21  ;;  %v1901_v33 = vsel %vm627_vm5, %v1636_v48, %v1762_v44 }
 0x226   :  { %2015 = vst [vmem:[#allocation1 + $0x22] ss:$4 sm:$0xff] %v1805_v43  ;;  %v5281_v43 = vor.u32 %v5523_v50, %v5278_v53  ;;  %v1871_v9 = vrot.slane %v1869_v62, 2  ;;  %v1892_v50 = vsel %vm627_vm5, %v1634_v61, %v1760_v4  ;;  %v5284_v53 = vld [vmem:[%s9183_s6 + $0x30] sm:$0xf] }
 0x227   :  { %2018 = vst [vmem:[#allocation1 + $0x23] ss:$4 sm:$0xff] %v1808_v34  ;;  %v5518_v34 = vld [vmem:[%s9183_s6 + $0x4] sm:$0xf]  ;;  %5541 = vmatpush.bf16.msrb.mxu2 %v5257_v32  ;;  %2217 = vmatpush.bf16.msra.mxu1 %v5257_v32 }
 0x228   :  { %2315 = vmatpush.bf16.msra.mxu3 %v5281_v43  ;;  %v5261_v45 = vor.u32 %v5518_v34, %v5258_v11  ;;  %v5526_v62 = vld [vmem:[%s9183_s6 + $0x40] sm:$0xf0] }
 0x229   :  { %v7012_v22 = vld.sshfl [vmem:[#allocation1] sm:$0xff pattern:$0x73625140]  ;;  %v5285_v43 = vor.u32 %v5526_v62, %v5284_v53 }
 0x22a   :  { %2021 = vst [vmem:[#allocation1] ss:$4 sm:$0xff] %v1811_v29  ;;  %5294 = vmatmul.msk.bf16.vlgmr.msra.gmra.mxu1 %vm366_vm4, %v7012_v22  ;;  %v1627_v29 = vld [vmem:[%s9184_s1 + $0x40] sm:$0xf] }
 0x22b   :  { %2022 = vst [vmem:[#allocation1 + $0x1] ss:$4 sm:$0xff] %v1814_v40  ;;  %v1628_v40 = vld [vmem:[%s9184_s1 + $0x44] sm:$0x3]  ;;  %v1753_v3 = vrot.slane %v1627_v29, 2  ;;  %2414 = vmatpush.bf16.msrb.mxu1 %v5285_v43 }
 0x22c   :  { %2024 = vst [vmem:[#allocation1 + $0x2] ss:$4 sm:$0xff] %v1817_v19  ;;  %v1635_v19 = vld [vmem:[%s9184_s1 + $0x60] sm:$0xf]  ;;  %2316 = vmatpush.bf16.msra.mxu3 %v5261_v45  ;;  %v5272_v43 = vld [vmem:[%s9183_s6 + $0x10] sm:$0xf] }
 0x22d   :  { %2025 = vst [vmem:[#allocation1 + $0x3] ss:$4 sm:$0xff] %v1820_v42  ;;  %v1761_v23 = vrot.slane %v1635_v19, 2  ;;  %v1859_v47 = vsel %vm627_vm5, %v1627_v29, %v1753_v3 }
 0x22e   :  { %v7026_v49 = vld.sshfl [vmem:[#allocation1 + $0x20] sm:$0xff pattern:$0x73625140] }
 0x22f   :  { %2026 = vst [vmem:[#allocation1 + $0x20] ss:$4 sm:$0xff] %v1823_v1  ;;  %v1754_v1 = vrot.slane %v1628_v40, 2  ;;  %5312 = vmatmul.msk.bf16.vlgmr.msra.gmra.mxu3 %vm366_vm4, %v7012_v22  ;;  %v1896_v52 = vsel %vm633_vm8, %v1635_v19, %v1761_v23 }
 0x230   :  { %2028 = vst [vmem:[#allocation1 + $0x21] ss:$4 sm:$0xff] %v1826_v8  ;;  %v1860_v8 = vsel %vm633_vm8, %v1627_v29, %v1753_v3  ;;  %v1898_v60 = vrot.slane %v1896_v52, 2 }
 0x231   :  { %2029 = vst [vmem:[#allocation1 + $0x22] ss:$4 sm:$0xff] %v1829_v56  ;;  %v1862_v59 = vrot.slane %v1860_v8, 2  ;;  %v5292_v56 = vld [vmem:[%s9183_s6 + $0x38] sm:$0xf]  ;;  %v1865_v35 = vsel %vm627_vm5, %v1628_v40, %v1754_v1  ;;  %v1765_v40 = vrot.slane %v1639_v37, 2 }
 0x232   :  { %2030 = vst [vmem:[#allocation1 + $0x23] ss:$4 sm:$0xff] %v1832_v36  ;;  %v5527_v36 = vld [vmem:[%s9183_s6 + $0x48] sm:$0xf0]  ;;  %v1641_v1 = vld [vmem:[%s9184_s1 + $0x78] sm:$0xf] }
 0x233   :  { %v5293_v17 = vor.u32 %v5527_v36, %v5292_v56  ;;  %v1914_v3 = vsel %vm633_vm8, %v1639_v37, %v1765_v40 }
 0x234   :  { %v7040_v0 = vld.sshfl [vmem:[#allocation1] sm:$0xff pattern:$0x73625140] }
 0x235   :  { %2034 = vst [vmem:[#allocation1] ss:$4 sm:$0xff] %v1835_v30  ;;  %v1637_v30 = vld [vmem:[%s9184_s1 + $0x68] sm:$0xf]  ;;  %2612 = vmatpush.bf16.msra.mxu2 %v5293_v17 }
 0x236   :  { %2035 = vst [vmem:[#allocation1 + $0x1] ss:$4 sm:$0xff] %v1838_v6  ;;  %v1759_v6 = vrot.slane %v1633_v63, 2  ;;  %v1645_v17 = vld [vmem:[%s9184_s1 + $0x88] sm:$0xf] }
 0x237   :  { %2036 = vst [vmem:[#allocation1 + $0x2] ss:$4 sm:$0xff] %v1841_v31  ;;  %v1763_v31 = vrot.slane %v1637_v30, 2  ;;  %v1771_v55 = vrot.slane %v1645_v17, 2 }
 0x238   :  { %2038 = vst [vmem:[#allocation1 + $0x3] ss:$4 sm:$0xff] %v1844_v38  ;;  %v1895_v38 = vsel %vm627_vm5, %v1635_v19, %v1761_v23  ;;  %v1886_v21 = vsel %vm627_vm5, %v1633_v63, %v1759_v6  ;;  %v1767_v23 = vrot.slane %v1641_v1, 2 }
 0x239   :  { %v7050_v7 = vld.sshfl [vmem:[#allocation1 + $0x20] sm:$0xff pattern:$0x73625140]  ;;  %v1905_v34 = vsel %vm633_vm8, %v1637_v30, %v1763_v31  ;;  %v1941_v61 = vsel %vm633_vm8, %v1645_v17, %v1771_v55 }
 0x23a   :  { %2039 = vst [vmem:[#allocation1 + $0x20] ss:$4 sm:$0xff] %v1847_v18  ;;  %5295 = vmatmul.msk.bf16.gmra.mxu1 %vm366_vm4, %v7026_v49  ;;  %v1907_v46 = vrot.slane %v1905_v34, 2  ;;  %v1923_v56 = vsel %vm633_vm8, %v1641_v1, %v1767_v23  ;;  %v1943_v26 = vrot.slane %v1941_v61, 2  ;;  %v5522_v34 = vld [vmem:[%s9183_s6 + $0x20] sm:$0xf0] }
 0x23b   :  { %2040 = vst [vmem:[#allocation1 + $0x21] ss:$4 sm:$0xff] %v1850_v54  ;;  %v1887_v54 = vsel %vm633_vm8, %v1633_v63, %v1759_v6  ;;  %v1925_v36 = vrot.slane %v1923_v56, 2  ;;  %v1643_v63 = vld [vmem:[%s9184_s1 + $0x80] sm:$0xf] }
 0x23c   :  { %2042 = vst [vmem:[#allocation1 + $0x22] ss:$4 sm:$0xff] %v1853_v51  ;;  %v1904_v51 = vsel %vm627_vm5, %v1637_v30, %v1763_v31  ;;  %v1889_v2 = vrot.slane %v1887_v54, 2  ;;  %v1769_v30 = vrot.slane %v1643_v63, 2  ;;  %v5286_v54 = vld [vmem:[%s9183_s6 + $0x44] sm:$0xf0] }
 0x23d   :  { %2043 = vst [vmem:[#allocation1 + $0x23] ss:$4 sm:$0xff] %v1856_v41  ;;  %v1642_v41 = vld [vmem:[%s9184_s1 + $0x7c] sm:$0x3] }
 0x23e   :  { %v1768_v32 = vrot.slane %v1642_v41, 2  ;;  %v1931_v44 = vsel %vm627_vm5, %v1643_v63, %v1769_v30  ;;  %v1932_v6 = vsel %vm633_vm8, %v1643_v63, %v1769_v30  ;;  %v1652_v30 = vld [vmem:[%s9184_s1 + $0xa4] sm:$0x3] }
 0x23f   :  { %v7076_v14 = vld.sshfl [vmem:[#allocation1] sm:$0xff pattern:$0x73625140]  ;;  %5313 = vmatmul.msk.bf16.gmra.mxu3 %vm366_vm4, %v7026_v49 }
 0x240   :  { %2050 = vst [vmem:[#allocation1 + $0x3] ss:$4 sm:$0xff] %v1868_v20  ;;  %v1928_v11 = vsel %vm627_vm5, %v1642_v41, %v1768_v32  ;;  %v1646_v41 = vld [vmem:[%s9184_s1 + $0x8c] sm:$0x3] }
 0x241   :  { %2046 = vst [vmem:[#allocation1] ss:$4 sm:$0xff] %v1859_v47 }
 0x242   :  { %2048 = vst [vmem:[#allocation1 + $0x1] ss:$4 sm:$0xff] %v1862_v59  ;;  %v1922_v59 = vsel %vm627_vm5, %v1641_v1, %v1767_v23 }
 0x243   :  { %2049 = vst [vmem:[#allocation1 + $0x2] ss:$4 sm:$0xff] %v1865_v35  ;;  %v1644_v35 = vld [vmem:[%s9184_s1 + $0x84] sm:$0x3] }
 0x244   :  { %v7092_v42 = vld.sshfl [vmem:[#allocation1 + $0x20] sm:$0xff pattern:$0x73625140]  ;;  %v1770_v52 = vrot.slane %v1644_v35, 2 }
 0x245   :  { %2052 = vst [vmem:[#allocation1 + $0x20] ss:$4 sm:$0xff] %v1871_v9  ;;  %v1638_v9 = vld [vmem:[%s9184_s1 + $0x6c] sm:$0x3] }
 0x246   :  { %2053 = vst [vmem:[#allocation1 + $0x21] ss:$4 sm:$0xff] %v1874_v39  ;;  %v1764_v29 = vrot.slane %v1638_v9, 2  ;;  %v1913_v39 = vsel %vm627_vm5, %v1639_v37, %v1765_v40  ;;  %v1937_v31 = vsel %vm627_vm5, %v1644_v35, %v1770_v52  ;;  %v5264_v40 = vld [vmem:[%s9183_s6 + $0x8] sm:$0xf] }
 0x247   :  { %2054 = vst [vmem:[#allocation1 + $0x22] ss:$4 sm:$0xff] %v1877_v12  ;;  %v1916_v12 = vrot.slane %v1914_v3, 2  ;;  %v1649_v3 = vld [vmem:[%s9184_s1 + $0x98] sm:$0xf] }
 0x248   :  { %2056 = vst [vmem:[#allocation1 + $0x23] ss:$4 sm:$0xff] %v1880_v25  ;;  %v1910_v19 = vsel %vm627_vm5, %v1638_v9, %v1764_v29  ;;  %v1640_v25 = vld [vmem:[%s9184_s1 + $0x74] sm:$0x3]  ;;  %v5266_v9 = vld [vmem:[%s9183_s6 + $0x1c] sm:$0xf0] }
 0x249   :  { %v1766_v8 = vrot.slane %v1640_v25, 2  ;;  %v1653_v52 = vld [vmem:[%s9184_s1 + $0xa8] sm:$0xf] }
 0x24a   :  { %v7134_v5 = vld.sshfl [vmem:[#allocation1] sm:$0xff pattern:$0x73625140]  ;;  %5296 = vmatmul.msk.bf16.gmra.mxu1 %vm366_vm4, %v7040_v0 }
 0x24b   :  { %2059 = vst [vmem:[#allocation1] ss:$4 sm:$0xff] %v1883_v13  ;;  %v1919_v47 = vsel %vm627_vm5, %v1640_v25, %v1766_v8  ;;  %v1647_v13 = vld [vmem:[%s9184_s1 + $0x90] sm:$0xf]  ;;  %v1650_v25 = vld [vmem:[%s9184_s1 + $0x9c] sm:$0x3] }
 0x24c   :  { %2060 = vst [vmem:[#allocation1 + $0x1] ss:$4 sm:$0xff] %v1886_v21  ;;  %v1772_v21 = vrot.slane %v1646_v41, 2  ;;  %v1775_v8 = vrot.slane %v1649_v3, 2  ;;  %v1776_v23 = vrot.slane %v1650_v25, 2 }
 0x24d   :  { %2062 = vst [vmem:[#allocation1 + $0x2] ss:$4 sm:$0xff] %v1889_v2  ;;  %v1773_v2 = vrot.slane %v1647_v13, 2 }
 0x24e   :  { %2063 = vst [vmem:[#allocation1 + $0x3] ss:$4 sm:$0xff] %v1892_v50  ;;  %v1946_v32 = vsel %vm627_vm5, %v1646_v41, %v1772_v21  ;;  %v1959_v56 = vsel %vm633_vm8, %v1649_v3, %v1775_v8  ;;  %v1964_v63 = vsel %vm627_vm5, %v1650_v25, %v1776_v23  ;;  %v5535_v25 = vld [vmem:[%s9185_s8 + $0x38] sm:$0xff] }
 0x24f   :  { %v7123_v18 = vld.sshfl [vmem:[#allocation1 + $0x20] sm:$0xff pattern:$0x73625140]  ;;  %5314 = vmatmul.msk.bf16.gmra.mxu3 %vm366_vm4, %v7040_v0  ;;  %v1949_v50 = vsel %vm627_vm5, %v1647_v13, %v1773_v2  ;;  %v1950_v53 = vsel %vm633_vm8, %v1647_v13, %v1773_v2 }
 0x250   :  { %2064 = vst [vmem:[#allocation1 + $0x20] ss:$4 sm:$0xff] %v1895_v38  ;;  %v1934_v38 = vrot.slane %v1932_v6, 2  ;;  %v1952_v62 = vrot.slane %v1950_v53, 2  ;;  %v1779_v6 = vrot.slane %v1653_v52, 2  ;;  %4510 = vmatpush.bf16.msrb.mxu3 %v5535_v25 }
 0x251   :  { %2066 = vst [vmem:[#allocation1 + $0x21] ss:$4 sm:$0xff] %v1898_v60  ;;  %v1940_v60 = vsel %vm627_vm5, %v1645_v17, %v1771_v55  ;;  %v1651_v17 = vld [vmem:[%s9184_s1 + $0xa0] sm:$0xf] }
 0x252   :  { %2067 = vst [vmem:[#allocation1 + $0x22] ss:$4 sm:$0xff] %v1901_v33  ;;  %v5524_v33 = vld [vmem:[%s9183_s6 + $0x34] sm:$0xf]  ;;  %v1777_v55 = vrot.slane %v1651_v17, 2 }
 0x253   :  { %2068 = vst [vmem:[#allocation1 + $0x23] ss:$4 sm:$0xff] %v1904_v51  ;;  %v5289_v4 = vor.u32 %v5524_v33, %v5286_v54  ;;  %v1977_v33 = vsel %vm633_vm8, %v1653_v52, %v1779_v6 }
 0x255   :  { %v7149_v45 = vld.sshfl [vmem:[#allocation1] sm:$0xff pattern:$0x73625140]  ;;  %2513 = vmatpush.bf16.msrb.mxu0 %v5289_v4  ;;  %v1979_v4 = vrot.slane %v1977_v33, 2 }
 0x256   :  { %5302 = vmatmul.msk.bf16.vlgmr.msrb.gmra.mxu2 %vm366_vm4, %v7149_v45  ;;  %2072 = vst [vmem:[#allocation1] ss:$4 sm:$0xff] %v1907_v46  ;;  %v5519_v46 = vld [vmem:[%s9183_s6 + $0xc] sm:$0xf] }
 0x257   :  { %2073 = vst [vmem:[#allocation1 + $0x1] ss:$4 sm:$0xff] %v1910_v19  ;;  %v5269_v37 = vor.u32 %v5519_v46, %v5266_v9  ;;  %v5521_v19 = vld [vmem:[%s9183_s6 + $0x18] sm:$0xf0] }
 0x258   :  { %2074 = vst [vmem:[#allocation1 + $0x2] ss:$4 sm:$0xff] %v1913_v39  ;;  %v1648_v39 = vld [vmem:[%s9184_s1 + $0x94] sm:$0x3] }
 0x259   :  { %2076 = vst [vmem:[#allocation1 + $0x3] ss:$4 sm:$0xff] %v1916_v12  ;;  %2514 = vmatpush.bf16.msrb.mxu0 %v5269_v37  ;;  %v5265_v12 = vor.u32 %v5521_v19, %v5264_v40  ;;  %v1774_v1 = vrot.slane %v1648_v39, 2  ;;  %v9315_v37 = vmov 0 }
 0x25a   :  { %v7147_v20 = vld.sshfl [vmem:[#allocation1 + $0x20] sm:$0xff pattern:$0x73625140]  ;;  %5297 = vmatmul.msk.bf16.gmra.mxu1 %vm366_vm4, %v7050_v7  ;;  %v9316_v37 = vsel %vm7317_vm13, 4294967295, %v9315_v37 }
 0x25b   :  { %2081 = vst [vmem:[#allocation1 + $0x23] ss:$4 sm:$0xff] %v1928_v11  ;;  %v5273_v11 = vor.u32 %v5522_v34, %v5272_v43  ;;  %2415 = vmatpush.bf16.msrb.mxu1 %v5265_v12  ;;  %v1655_v43 = vld [vmem:[%s9184_s1 + $0xb0] sm:$0xf] }
 0x25c   :  { %2077 = vst [vmem:[#allocation1 + $0x20] ss:$4 sm:$0xff] %v1919_v47  ;;  %5348 = vmatmul.msk.bf16.vlgmr.msrb.gmra.mxu0 %vm366_vm4, %v7012_v22  ;;  %v1955_v47 = vsel %vm627_vm5, %v1648_v39, %v1774_v1  ;;  %v1781_v9 = vrot.slane %v1655_v43, 2 }
 0x25d   :  { %2078 = vst [vmem:[#allocation1 + $0x21] ss:$4 sm:$0xff] %v1922_v59  ;;  %2613 = vmatpush.bf16.msra.mxu2 %v5273_v11  ;;  %v1958_v59 = vsel %vm627_vm5, %v1649_v3, %v1775_v8 }
 0x25e   :  { %2080 = vst [vmem:[#allocation1 + $0x22] ss:$4 sm:$0xff] %v1925_v36  ;;  %v1961_v36 = vrot.slane %v1959_v56, 2  ;;  %v1985_v3 = vsel %vm627_vm5, %v1655_v43, %v1781_v9  ;;  %v1986_v12 = vsel %vm633_vm8, %v1655_v43, %v1781_v9 }
 0x25f   :  { %5315 = vmatmul.msk.bf16.gmra.mxu3 %vm366_vm4, %v7050_v7  ;;  %9317 = vst [vmem:[#allocation5_spill] sm:$0xff] %v9316_v37  ;;  %v1988_v1 = vrot.slane %v1986_v12, 2 }
 0x260   :  { %v7181_v48 = vld.sshfl [vmem:[#allocation1] sm:$0xff pattern:$0x73625140] }
 0x261   :  { %2084 = vst [vmem:[#allocation1] ss:$4 sm:$0xff] %v1931_v44  ;;  %v1778_v44 = vrot.slane %v1652_v30, 2 }
 0x262   :  { %2087 = vst [vmem:[#allocation1 + $0x2] ss:$4 sm:$0xff] %v1937_v31  ;;  %v1967_v31 = vsel %vm627_vm5, %v1651_v17, %v1777_v55 }
 0x263   :  { %2086 = vst [vmem:[#allocation1 + $0x1] ss:$4 sm:$0xff] %v1934_v38  ;;  %v1968_v38 = vsel %vm633_vm8, %v1651_v17, %v1777_v55 }
 0x264   :  { %2088 = vst [vmem:[#allocation1 + $0x3] ss:$4 sm:$0xff] %v1940_v60  ;;  %v1973_v60 = vsel %vm627_vm5, %v1652_v30, %v1778_v44  ;;  %v1970_v61 = vrot.slane %v1968_v38, 2  ;;  %v1657_v38 = vld [vmem:[%s9184_s1 + $0xb8] sm:$0xf] }
 0x265   :  { %v7209_v51 = vld.sshfl [vmem:[#allocation1 + $0x20] sm:$0xff pattern:$0x73625140] }
 0x266   :  { %5303 = vmatmul.msk.bf16.gmra.mxu2 %vm366_vm4, %v7147_v20  ;;  %2090 = vst [vmem:[#allocation1 + $0x20] ss:$4 sm:$0xff] %v1943_v26  ;;  %v1976_v26 = vsel %vm627_vm5, %v1653_v52, %v1779_v6 }
 0x267   :  { %2091 = vst [vmem:[#allocation1 + $0x21] ss:$4 sm:$0xff] %v1946_v32 }
 0x268   :  { %2092 = vst [vmem:[#allocation1 + $0x22] ss:$4 sm:$0xff] %v1949_v50 }
 0x269   :  { %2094 = vst [vmem:[#allocation1 + $0x23] ss:$4 sm:$0xff] %v1952_v62  ;;  %v1654_v62 = vld [vmem:[%s9184_s1 + $0xac] sm:$0x3] }
 0x26a   :  { %5298 = vmatmul.msk.bf16.gmra.mxu1 %vm366_vm4, %v7076_v14  ;;  %v1780_v46 = vrot.slane %v1654_v62, 2 }
 0x26b   :  { %v7238_v29 = vld.sshfl [vmem:[#allocation1] sm:$0xff pattern:$0x73625140] }
 0x26c   :  { %2097 = vst [vmem:[#allocation1] ss:$4 sm:$0xff] %v1955_v47  ;;  %5349 = vmatmul.msk.bf16.gmra.mxu0 %vm366_vm4, %v7026_v49  ;;  %v1982_v39 = vsel %vm627_vm5, %v1654_v62, %v1780_v46 }
 0x26d   :  { %2098 = vst [vmem:[#allocation1 + $0x1] ss:$4 sm:$0xff] %v1958_v59 }
 0x26e   :  { %2100 = vst [vmem:[#allocation1 + $0x2] ss:$4 sm:$0xff] %v1961_v36 }
 0x26f   :  { %5316 = vmatmul.msk.bf16.gmra.mxu3 %vm366_vm4, %v7076_v14  ;;  %2101 = vst [vmem:[#allocation1 + $0x3] ss:$4 sm:$0xff] %v1964_v63 }
 0x270   :  { %v7267_v35 = vld.sshfl [vmem:[#allocation1 + $0x20] sm:$0xff pattern:$0x73625140] }
 0x271   :  { %2102 = vst [vmem:[#allocation1 + $0x20] ss:$4 sm:$0xff] %v1967_v31  ;;  %v1656_v31 = vld [vmem:[%s9184_s1 + $0xb4] sm:$0x3] }
 0x272   :  { %2105 = vst [vmem:[#allocation1 + $0x22] ss:$4 sm:$0xff] %v1973_v60  ;;  %v1658_v60 = vld [vmem:[%s9184_s1 + $0xbc] sm:$0x3]  ;;  %v1782_v33 = vrot.slane %v1656_v31, 2 }
 0x273   :  { %2104 = vst [vmem:[#allocation1 + $0x21] ss:$4 sm:$0xff] %v1970_v61 }
 0x274   :  { %2106 = vst [vmem:[#allocation1 + $0x23] ss:$4 sm:$0xff] %v1976_v26 }
 0x276   :  { %5304 = vmatmul.msk.bf16.gmra.mxu2 %vm366_vm4, %v7181_v48  ;;  %v7291_v54 = vld.sshfl [vmem:[#allocation1] sm:$0xff pattern:$0x73625140] }
 0x277   :  { %2110 = vst [vmem:[#allocation1] ss:$4 sm:$0xff] %v1979_v4  ;;  %v1783_v4 = vrot.slane %v1657_v38, 2 }
 0x278   :  { %2111 = vst [vmem:[#allocation1 + $0x1] ss:$4 sm:$0xff] %v1982_v39 }
 0x279   :  { %2112 = vst [vmem:[#allocation1 + $0x2] ss:$4 sm:$0xff] %v1985_v3  ;;  %v1995_v62 = vsel %vm633_vm8, %v1657_v38, %v1783_v4  ;;  %vm7764_vm8 = vmor %vm627_vm5, %vm629_vm6 }
 0x27a   :  { %5299 = vmatmul.msk.bf16.gmra.mxu1 %vm366_vm4, %v7092_v42  ;;  %2114 = vst [vmem:[#allocation1 + $0x3] ss:$4 sm:$0xff] %v1988_v1  ;;  %v1997_v43 = vrot.slane %v1995_v62, 2  ;;  %v5534_v62 = vld [vmem:[%s9185_s8 + $0x30] sm:$0xff] }
 0x27b   :  { %v7301_v32 = vld.sshfl [vmem:[#allocation1 + $0x20] sm:$0xff pattern:$0x73625140]  ;;  %4511 = vmatpush.bf16.msrb.mxu3 %v5534_v62 }
 0x27c   :  { %5350 = vmatmul.msk.bf16.gmra.mxu0 %vm366_vm4, %v7040_v0  ;;  %2118 = vst [vmem:[#allocation1 + $0x22] ss:$4 sm:$0xff] %v1997_v43 }
 0x27f   :  { %5317 = vmatmul.msk.bf16.gmra.mxu3 %vm366_vm4, %v7092_v42 }
 0x281   :  { %v7348_v55 = vld.sshfl [vmem:[#allocation1] sm:$0xff pattern:$0x73625140] }
 0x286   :  { %5305 = vmatmul.msk.bf16.gmra.mxu2 %vm366_vm4, %v7209_v51 }
 0x28a   :  { %5300 = vmatmul.msk.bf16.gmra.mxu1 %vm366_vm4, %v7134_v5 }
 0x28c   :  { %5351 = vmatmul.msk.bf16.gmra.mxu0 %vm366_vm4, %v7050_v7 }
 0x28f   :  { %5318 = vmatmul.msk.bf16.gmra.mxu3 %vm366_vm4, %v7134_v5 }
 0x296   :  { %5306 = vmatmul.msk.bf16.gmra.mxu2 %vm366_vm4, %v7238_v29 }
 0x29a   :  { %5301 = vmatmul.msk.bf16.gmra.mxu1 %vm366_vm4, %v7123_v18 }
 0x29c   :  { %5352 = vmatmul.msk.bf16.gmra.mxu0 %vm366_vm4, %v7076_v14 }
 0x29f   :  { %5319 = vmatmul.msk.bf16.gmra.mxu3 %vm366_vm4, %v7123_v18 }
 0x2a6   :  { %5307 = vmatmul.msk.bf16.gmra.mxu2 %vm366_vm4, %v7267_v35 }
 0x2a7   :  { %v2219_v41 = vpop.f32.mrf.mxu1 }
 0x2aa   :  { %5330 = vmatmul.msk.bf16.vlgmr.msrb.gmra.mxu1 %vm366_vm4, %v7012_v22 }
 0x2ac   :  { %5353 = vmatmul.msk.bf16.gmra.mxu0 %vm366_vm4, %v7092_v42 }
 0x2af   :  { %5320 = vmatmul.msk.bf16.gmra.mxu3 %vm366_vm4, %v7149_v45  ;;  %v2221_v13 = vpop.f32.mrf.mxu1 }
 0x2b2   :  { %v2318_v21 = vpop.f32.mrf.mxu3 }
 0x2b3   :  { %v2873_v2 = vrot.slane %v2318_v21, 4 }
 0x2b5   :  { %v2945_v50 = vsel %vm631_vm10, %v2219_v41, %v2873_v2  ;;  %v7305_v53 = vsel %vm631_vm10, %v2873_v2, %v2219_v41  ;;  %v1991_v2 = vsel %vm627_vm5, %v1656_v31, %v1782_v33 }
 0x2b6   :  { %5308 = vmatmul.msk.bf16.gmra.mxu2 %vm366_vm4, %v7291_v54  ;;  %v9208_v34 = vrot.slane %v7305_v53, 4  ;;  %v5384_v11 = vrot.slane %v2945_v50, 9  ;;  %2115 = vst [vmem:[#allocation1 + $0x20] ss:$4 sm:$0xff] %v1991_v2 }
 0x2b7   :  { %v2224_v40 = vpop.f32.mrf.mxu1 }
 0x2b8   :  { %v7323_v19 = vrot.slane %v9208_v34, 5 }
 0x2ba   :  { %v3263_v8 = vsel %vm7317_vm13, %v5384_v11, %v7323_v19  ;;  %v2320_v23 = vpop.f32.mrf.mxu3  ;;  %5331 = vmatmul.msk.bf16.gmra.mxu1 %vm366_vm4, %v7026_v49 }
 0x2bb   :  { %v3428_v47 = vrot.slane %v3263_v8, 4  ;;  %v2875_v59 = vrot.slane %v2320_v23, 4 }
 0x2bc   :  { %5354 = vmatmul.msk.bf16.gmra.mxu0 %vm366_vm4, %v7134_v5 }
 0x2bd   :  { %v7338_v56 = vadd.f32 %v3428_v47, %v2945_v50  ;;  %v7341_v36 = vsel %vm631_vm10, %v2221_v13, %v2875_v59  ;;  %v7344_v63 = vsel %vm631_vm10, %v2875_v59, %v2221_v13  ;;  %v1784_v13 = vrot.slane %v1658_v60, 2 }
 0x2be   :  { %v1994_v50 = vsel %vm627_vm5, %v1657_v38, %v1783_v4 }
 0x2bf   :  { %5321 = vmatmul.msk.bf16.gmra.mxu3 %vm366_vm4, %v7147_v20  ;;  %v2226_v17 = vpop.f32.mrf.mxu1  ;;  %v2000_v11 = vsel %vm627_vm5, %v1658_v60, %v1784_v13  ;;  %2116 = vst [vmem:[#allocation1 + $0x21] ss:$4 sm:$0xff] %v1994_v50 }
 0x2c0   :  { %2119 = vst [vmem:[#allocation1 + $0x23] ss:$4 sm:$0xff] %v2000_v11 }
 0x2c2   :  { %v2323_v30 = vpop.f32.mrf.mxu3 }
 0x2c3   :  { %v2877_v52 = vrot.slane %v2323_v30, 4 }
 0x2c5   :  { %v7351_v44 = vsel %vm631_vm10, %v2224_v40, %v2877_v52  ;;  %v2960_v6 = vsel %vm631_vm10, %v2877_v52, %v2224_v40 }
 0x2c6   :  { %5309 = vmatmul.msk.bf16.gmra.mxu2 %vm366_vm4, %v7301_v32  ;;  %v9209_v61 = vrot.slane %v7351_v44, 5  ;;  %v5386_v26 = vrot.slane %v2960_v6, 9 }
 0x2c7   :  { %v2229_v41 = vpop.f32.mrf.mxu1  ;;  %v7407_v33 = vld.sshfl [vmem:[#allocation1 + $0x20] sm:$0xff pattern:$0x73625140] }
 0x2c8   :  { %v3271_v21 = vrot.slane %v9209_v61, 4  ;;  %9320 = vst [vmem:[#allocation8_spill] sm:$0xff] %v7407_v33 }
 0x2ca   :  { %v3273_v46 = vsel %vm7317_vm13, %v3271_v21, %v5386_v26  ;;  %v2325_v9 = vpop.f32.mrf.mxu3  ;;  %5332 = vmatmul.msk.bf16.gmra.mxu1 %vm366_vm4, %v7040_v0 }
 0x2cb   :  { %v3431_v40 = vrot.slane %v3273_v46, 4  ;;  %v2879_v39 = vrot.slane %v2325_v9, 4 }
 0x2cc   :  { %5355 = vmatmul.msk.bf16.gmra.mxu0 %vm366_vm4, %v7123_v18 }
 0x2cd   :  { %v7381_v12 = vadd.f32 %v3431_v40, %v7351_v44  ;;  %v2965_v25 = vsel %vm631_vm10, %v2226_v17, %v2879_v39  ;;  %v7385_v1 = vsel %vm631_vm10, %v2879_v39, %v2226_v17 }
 0x2ce   :  { %v9207_v8 = vrot.slane %v7385_v1, 4  ;;  %v5387_v23 = vrot.slane %v2965_v25, 9 }
 0x2cf   :  { %5322 = vmatmul.msk.bf16.gmra.mxu3 %vm366_vm4, %v7181_v48  ;;  %v2231_v47 = vpop.f32.mrf.mxu1 }
 0x2d0   :  { %v7392_v59 = vrot.slane %v9207_v8, 5 }
 0x2d2   :  { %v3277_v30 = vsel %vm7317_vm13, %v5387_v23, %v7392_v59  ;;  %v2328_v52 = vpop.f32.mrf.mxu3 }
 0x2d3   :  { %v3432_v6 = vrot.slane %v3277_v30, 4  ;;  %v2881_v31 = vrot.slane %v2328_v52, 4 }
 0x2d5   :  { %v7399_v38 = vadd.f32 %v3432_v6, %v2965_v25  ;;  %v7402_v60 = vsel %vm631_vm10, %v2229_v41, %v2881_v31  ;;  %v7405_v26 = vsel %vm631_vm10, %v2881_v31, %v2229_v41 }
 0x2d6   :  { %5310 = vmatmul.msk.bf16.gmra.mxu2 %vm366_vm4, %v7348_v55 }
 0x2d7   :  { %v2234_v4 = vpop.f32.mrf.mxu1 }
 0x2d9   :  { %v7378_v3 = vpop.f32.mrf.mxu2 }
 0x2da   :  { %9318 = vst [vmem:[#allocation7_spill] sm:$0xff] %v7378_v3  ;;  %v2330_v13 = vpop.f32.mrf.mxu3  ;;  %5333 = vmatmul.msk.bf16.gmra.mxu1 %vm366_vm4, %v7050_v7 }
 0x2db   :  { %v2883_v21 = vrot.slane %v2330_v13, 4 }
 0x2dc   :  { %5356 = vmatmul.msk.bf16.gmra.mxu0 %vm366_vm4, %v7149_v45 }
 0x2dd   :  { %v7418_v50 = vsel %vm631_vm10, %v2231_v47, %v2883_v21  ;;  %v2980_v41 = vsel %vm631_vm10, %v2883_v21, %v2231_v47 }
 0x2de   :  { %v9206_v43 = vrot.slane %v7418_v50, 5  ;;  %v5389_v11 = vrot.slane %v2980_v41, 9 }
 0x2df   :  { %5323 = vmatmul.msk.bf16.gmra.mxu3 %vm366_vm4, %v7209_v51  ;;  %v2236_v46 = vpop.f32.mrf.mxu1 }
 0x2e0   :  { %v3285_v9 = vrot.slane %v9206_v43, 4 }
 0x2e1   :  { %v7397_v17 = vpop.f32.mrf.mxu2 }
 0x2e2   :  { %9319 = vst [vmem:[#allocation10_spill] sm:$0xff] %v7397_v17  ;;  %v3287_v40 = vsel %vm7317_vm13, %v3285_v9, %v5389_v11  ;;  %v2333_v39 = vpop.f32.mrf.mxu3 }
 0x2e3   :  { %v3435_v25 = vrot.slane %v3287_v40, 4  ;;  %v2885_v23 = vrot.slane %v2333_v39, 4 }
 0x2e5   :  { %v7434_v30 = vadd.f32 %v3435_v25, %v7418_v50  ;;  %v2985_v52 = vsel %vm631_vm10, %v2234_v4, %v2885_v23  ;;  %v7438_v6 = vsel %vm631_vm10, %v2885_v23, %v2234_v4 }
 0x2e6   :  { %5311 = vmatmul.msk.bf16.gmra.mxu2 %vm366_vm4, %v7407_v33  ;;  %v9205_v31 = vrot.slane %v7438_v6, 4  ;;  %v5390_v13 = vrot.slane %v2985_v52, 9 }
 0x2e7   :  { %v2239_v21 = vpop.f32.mrf.mxu1 }
 0x2e8   :  { %v7445_v41 = vrot.slane %v9205_v31, 5 }
 0x2e9   :  { %v7415_v2 = vpop.f32.mrf.mxu2 }
 0x2ea   :  { %9321 = vst [vmem:[#allocation3_spill] sm:$0xff] %v7415_v2  ;;  %v3291_v62 = vsel %vm7317_vm13, %v5390_v13, %v7445_v41  ;;  %v2335_v4 = vpop.f32.mrf.mxu3  ;;  %5334 = vmatmul.msk.bf16.gmra.mxu1 %vm366_vm4, %v7076_v14 }
 0x2eb   :  { %v3436_v11 = vrot.slane %v3291_v62, 4  ;;  %v2887_v9 = vrot.slane %v2335_v4, 4 }
 0x2ec   :  { %5357 = vmatmul.msk.bf16.gmra.mxu0 %vm366_vm4, %v7147_v20 }
 0x2ed   :  { %v7456_v39 = vadd.f32 %v3436_v11, %v2985_v52  ;;  %v7459_v25 = vsel %vm631_vm10, %v2236_v46, %v2887_v9  ;;  %v7462_v23 = vsel %vm631_vm10, %v2887_v9, %v2236_v46 }
 0x2ef   :  { %5324 = vmatmul.msk.bf16.gmra.mxu3 %vm366_vm4, %v7238_v29 }
 0x2f1   :  { %v7431_v47 = vpop.f32.mrf.mxu2 }
 0x2f2   :  { %9322 = vst [vmem:[#allocation6_spill] sm:$0xff] %v7431_v47  ;;  %v2338_v13 = vpop.f32.mrf.mxu3 }
 0x2f3   :  { %v2889_v31 = vrot.slane %v2338_v13, 4 }
 0x2f5   :  { %v7469_v62 = vsel %vm631_vm10, %v2239_v21, %v2889_v31  ;;  %v3000_v52 = vsel %vm631_vm10, %v2889_v31, %v2239_v21 }
 0x2f6   :  { %5366 = vmatmul.msk.bf16.vlgmr.msra.gmra.mxu2 %vm366_vm4, %v7012_v22  ;;  %v2241_v22 = vpop.f32.mrf.mxu1  ;;  %v9210_v4 = vrot.slane %v7469_v62, 5  ;;  %v5392_v11 = vrot.slane %v3000_v52, 9 }
 0x2f8   :  { %v3299_v9 = vrot.slane %v9210_v4, 4 }
 0x2f9   :  { %v7454_v40 = vpop.f32.mrf.mxu2 }
 0x2fa   :  { %9323 = vst [vmem:[#allocation2_spill] sm:$0xff] %v7454_v40  ;;  %v3301_v13 = vsel %vm7317_vm13, %v3299_v9, %v5392_v11  ;;  %v2340_v8 = vpop.f32.mrf.mxu3  ;;  %5335 = vmatmul.msk.bf16.gmra.mxu1 %vm366_vm4, %v7092_v42 }
 0x2fb   :  { %v3439_v31 = vrot.slane %v3301_v13, 4  ;;  %v2891_v21 = vrot.slane %v2340_v8, 4 }
 0x2fc   :  { %5358 = vmatmul.msk.bf16.gmra.mxu0 %vm366_vm4, %v7181_v48 }
 0x2fd   :  { %v7486_v34 = vadd.f32 %v3439_v31, %v7469_v62  ;;  %v3005_v61 = vsel %vm631_vm10, %v2241_v22, %v2891_v21  ;;  %v7490_v4 = vsel %vm631_vm10, %v2891_v21, %v2241_v22  ;;  %v5533_v31 = vld [vmem:[%s9185_s8 + $0x28] sm:$0xff]  ;;  %v3264_v22 = vrot.slane %v7323_v19, 4 }
 0x2fe   :  { %v2244_v46 = vpop.f32.mrf.mxu1  ;;  %v9211_v11 = vrot.slane %v7490_v4, 4  ;;  %v5393_v9 = vrot.slane %v3005_v61, 9  ;;  %v3265_v21 = vrot.slane %v7341_v36, 5  ;;  %4512 = vmatpush.bf16.msrb.mxu3 %v5533_v31 }
 0x2ff   :  { %5325 = vmatmul.msk.bf16.gmra.mxu3 %vm366_vm4, %v7267_v35 }
 0x300   :  { %v7498_v8 = vrot.slane %v9211_v11, 5  ;;  %v3266_v36 = vsel %vm7317_vm13, %v3264_v22, %v3265_v21 }
 0x301   :  { %v7466_v43 = vpop.f32.mrf.mxu2 }
 0x302   :  { %9324 = vst [vmem:[#allocation17_spill] sm:$0xff] %v7466_v43  ;;  %v3305_v10 = vsel %vm7317_vm13, %v5393_v9, %v7498_v8  ;;  %v2343_v15 = vpop.f32.mrf.mxu3  ;;  %v9328_v9 = vrot.slane %v7351_v44, 5  ;;  %v9346_v43 = vrot.slane %v7490_v4, 4 }
 0x303   :  { %v3440_v57 = vrot.slane %v3305_v10, 4  ;;  %v2893_v24 = vrot.slane %v2343_v15, 4 }
 0x305   :  { %v7510_v11 = vadd.f32 %v3440_v57, %v3005_v61  ;;  %v7513_v16 = vsel %vm631_vm10, %v2244_v46, %v2893_v24  ;;  %v7516_v19 = vsel %vm631_vm10, %v2893_v24, %v2244_v46  ;;  %v3429_v57 = vrot.slane %v3266_v36, 4 }
 0x306   :  { %5367 = vmatmul.msk.bf16.gmra.mxu2 %vm366_vm4, %v7026_v49  ;;  %v2955_v49 = vrot.slane %v7344_v63, 4  ;;  %v2246_v13 = vpop.f32.mrf.mxu1  ;;  %v9329_v24 = vrot.slane %v7305_v53, 4 }
 0x307   :  { %9327 = vst [vmem:[#allocation20_spill] sm:$0xff] %v7510_v11 }
 0x308   :  { %v5385_v63 = vrot.slane %v2955_v49, 9  ;;  %v7530_v46 = vadd.f32 %v3429_v57, %v9329_v24 }
 0x309   :  { %v7483_v52 = vpop.f32.mrf.mxu2 }
 0x30a   :  { %9325 = vst [vmem:[#allocation18_spill] sm:$0xff] %v7483_v52  ;;  %v3270_v15 = vsel %vm7317_vm13, %v5385_v63, %v9328_v9  ;;  %v2345_v58 = vpop.f32.mrf.mxu3  ;;  %5336 = vmatmul.msk.bf16.gmra.mxu1 %vm366_vm4, %v7134_v5  ;;  %v3279_v9 = vrot.slane %v7402_v60, 5 }
 0x30b   :  { %v3430_v61 = vrot.slane %v3270_v15, 4  ;;  %v2895_v44 = vrot.slane %v2345_v58, 4  ;;  %v3278_v58 = vrot.slane %v7392_v59, 4 }
 0x30c   :  { %5359 = vmatmul.msk.bf16.gmra.mxu0 %vm366_vm4, %v7209_v51 }
 0x30d   :  { %v7532_v31 = vadd.f32 %v3430_v61, %v2955_v49  ;;  %v7539_v21 = vsel %vm631_vm10, %v2246_v13, %v2895_v44  ;;  %v3020_v63 = vsel %vm631_vm10, %v2895_v44, %v2246_v13 }
 0x30e   :  { %v2249_v10 = vpop.f32.mrf.mxu1  ;;  %v5395_v36 = vrot.slane %v3020_v63, 9 }
 0x30f   :  { %5326 = vmatmul.msk.bf16.gmra.mxu3 %vm366_vm4, %v7291_v54 }
 0x311   :  { %v7508_v28 = vpop.f32.mrf.mxu2 }
 0x312   :  { %9326 = vst [vmem:[#allocation19_spill] sm:$0xff] %v7508_v28  ;;  %v2348_v57 = vpop.f32.mrf.mxu3 }
 0x313   :  { %v2897_v61 = vrot.slane %v2348_v57, 4 }
 0x315   :  { %v3025_v63 = vsel %vm631_vm10, %v2249_v10, %v2897_v61  ;;  %v7560_v27 = vsel %vm631_vm10, %v2897_v61, %v2249_v10  ;;  %v9333_v10 = vrot.slane %v7385_v1, 4 }
 0x316   :  { %5368 = vmatmul.msk.bf16.gmra.mxu2 %vm366_vm4, %v7040_v0  ;;  %v9212_v0 = vrot.slane %v7539_v21, 5  ;;  %v7545_v53 = vpop.f32.mrf.mxu1  ;;  %v9214_v59 = vrot.slane %v7560_v27, 4  ;;  %v5396_v60 = vrot.slane %v3025_v63, 9 }
 0x318   :  { %v3313_v49 = vrot.slane %v9212_v0, 4  ;;  %v7562_v0 = vpop.f32.mrf.mxu0  ;;  %v7571_v57 = vrot.slane %v9214_v59, 5 }
 0x319   :  { %v7536_v22 = vpop.f32.mrf.mxu2 }
 0x31a   :  { %9330 = vst [vmem:[#allocation21_spill] sm:$0xff] %v7536_v22  ;;  %v3315_v15 = vsel %vm7317_vm13, %v3313_v49, %v5395_v36  ;;  %v3280_v36 = vsel %vm7317_vm13, %v3278_v58, %v3279_v9  ;;  %v3319_v61 = vsel %vm7317_vm13, %v5396_v60, %v7571_v57  ;;  %5337 = vmatmul.msk.bf16.gmra.mxu1 %vm366_vm4, %v7123_v18 }
 0x31b   :  { %v3443_v13 = vrot.slane %v3315_v15, 4  ;;  %v3433_v15 = vrot.slane %v3280_v36, 4  ;;  %v3444_v58 = vrot.slane %v3319_v61, 4 }
 0x31d   :  { %v7556_v44 = vadd.f32 %v3443_v13, %v7539_v21  ;;  %v7577_v13 = vadd.f32 %v3433_v15, %v9333_v10  ;;  %v7588_v36 = vadd.f32 %v3444_v58, %v3025_v63 }
 0x31e   :  { %v2254_v49 = vpop.f32.mrf.mxu1 }
 0x31f   :  { %9332 = vst [vmem:[#allocation23_spill] sm:$0xff] %v7556_v44  ;;  %5327 = vmatmul.msk.bf16.gmra.mxu3 %vm366_vm4, %v7301_v32 }
 0x320   :  { %9335 = vst [vmem:[#allocation25_spill] sm:$0xff] %v7588_v36  ;;  %v7590_v59 = vpop.f32.mrf.mxu0  ;;  %5360 = vmatmul.msk.bf16.gmra.mxu0 %vm366_vm4, %v7238_v29 }
 0x321   :  { %v7553_v24 = vpop.f32.mrf.mxu2 }
 0x322   :  { %9331 = vst [vmem:[#allocation22_spill] sm:$0xff] %v7553_v24  ;;  %v7582_v24 = vpop.f32.mrf.mxu3 }
 0x326   :  { %5369 = vmatmul.msk.bf16.gmra.mxu2 %vm366_vm4, %v7050_v7  ;;  %v2975_v7 = vrot.slane %v7405_v26, 4  ;;  %v7595_v1 = vpop.f32.mrf.mxu1  ;;  %v5532_v26 = vld [vmem:[%s9185_s8 + $0x20] sm:$0xff] }
 0x327   :  { %4513 = vmatpush.bf16.msrb.mxu3 %v5532_v26 }
 0x328   :  { %v5388_v60 = vrot.slane %v2975_v7, 9  ;;  %v7603_v58 = vpop.f32.mrf.mxu0 }
 0x329   :  { %v7586_v9 = vpop.f32.mrf.mxu2 }
 0x32a   :  { %9334 = vst [vmem:[#allocation24_spill] sm:$0xff] %v7586_v9  ;;  %v2353_v15 = vpop.f32.mrf.mxu3  ;;  %5338 = vmatmul.msk.bf16.gmra.mxu1 %vm366_vm4, %v7149_v45 }
 0x32b   :  { %v2901_v10 = vrot.slane %v2353_v15, 4  ;;  %v9337_v15 = vrot.slane %v7418_v50, 5 }
 0x32d   :  { %v7600_v61 = vsel %vm631_vm10, %v2254_v49, %v2901_v10  ;;  %v3040_v63 = vsel %vm631_vm10, %v2901_v10, %v2254_v49 }
 0x32e   :  { %v9220_v9 = vrot.slane %v7600_v61, 5  ;;  %v5398_v52 = vrot.slane %v3040_v63, 9  ;;  %v7615_v28 = vpop.f32.mrf.mxu1 }
 0x32f   :  { %5328 = vmatmul.msk.bf16.gmra.mxu3 %vm366_vm4, %v7348_v55 }
 0x330   :  { %v3327_v10 = vrot.slane %v9220_v9, 4 }
 0x331   :  { %v7597_v22 = vpop.f32.mrf.mxu2 }
 0x332   :  { %9336 = vst [vmem:[#allocation26_spill] sm:$0xff] %v7597_v22  ;;  %v3284_v22 = vsel %vm7317_vm13, %v5388_v60, %v9337_v15  ;;  %v3329_v63 = vsel %vm7317_vm13, %v3327_v10, %v5398_v52  ;;  %v2995_v15 = vrot.slane %v7462_v23, 4  ;;  %v3292_v52 = vrot.slane %v7445_v41, 4 }
 0x333   :  { %v3434_v49 = vrot.slane %v3284_v22, 4  ;;  %v3447_v50 = vrot.slane %v3329_v63, 4  ;;  %v7632_v22 = vpop.f32.mrf.mxu0  ;;  %5361 = vmatmul.msk.bf16.gmra.mxu0 %vm366_vm4, %v7267_v35 }
 0x335   :  { %v7621_v36 = vadd.f32 %v3434_v49, %v2975_v7  ;;  %v7630_v26 = vadd.f32 %v3447_v50, %v7600_v61  ;;  %v3293_v7 = vrot.slane %v7459_v25, 5  ;;  %v5391_v49 = vrot.slane %v2995_v15, 9 }
 0x336   :  { %5370 = vmatmul.msk.bf16.gmra.mxu2 %vm366_vm4, %v7076_v14  ;;  %v7637_v14 = vpop.f32.mrf.mxu1 }
 0x337   :  { %9339 = vst [vmem:[#allocation28_spill] sm:$0xff] %v7630_v26  ;;  %v3294_v23 = vsel %vm7317_vm13, %v3292_v52, %v3293_v7 }
 0x338   :  { %v3437_v9 = vrot.slane %v3294_v23, 4  ;;  %v7667_v23 = vpop.f32.mrf.mxu3 }
 0x339   :  { %v7627_v60 = vpop.f32.mrf.mxu2 }
 0x33a   :  { %9338 = vst [vmem:[#allocation27_spill] sm:$0xff] %v7627_v60  ;;  %v9341_v60 = vrot.slane %v7469_v62, 5  ;;  %5339 = vmatmul.msk.bf16.gmra.mxu1 %vm366_vm4, %v7147_v20 }
 0x33b   :  { %v7643_v63 = vpop.f32.mrf.mxu0 }
 0x33c   :  { %v3298_v41 = vsel %vm7317_vm13, %v5391_v49, %v9341_v60  ;;  %v3307_v60 = vrot.slane %v7513_v16, 5 }
 0x33d   :  { %v3438_v25 = vrot.slane %v3298_v41, 4 }
 0x33e   :  { %v7649_v50 = vpop.f32.mrf.mxu1 }
 0x33f   :  { %v7663_v52 = vadd.f32 %v3438_v25, %v2995_v15  ;;  %5329 = vmatmul.msk.bf16.gmra.mxu3 %vm366_vm4, %v7407_v33 }
 0x341   :  { %v7641_v10 = vpop.f32.mrf.mxu2 }
 0x342   :  { %9340 = vst [vmem:[#allocation29_spill] sm:$0xff] %v7641_v10  ;;  %v9342_v10 = vrot.slane %v7438_v6, 4  ;;  %v9223_v6 = vrot.slane %v7667_v23, 4 }
 0x343   :  { %v7669_v62 = vpop.f32.mrf.mxu0  ;;  %5362 = vmatmul.msk.bf16.gmra.mxu0 %vm366_vm4, %v7291_v54 }
 0x344   :  { %v7659_v26 = vadd.f32 %v3437_v9, %v9342_v10  ;;  %v3306_v9 = vrot.slane %v7498_v8, 4  ;;  %v3047_v15 = vsel %vm631_vm10, %v9223_v6, %v7595_v1  ;;  %v7684_v10 = vpop.f32.mrf.mxu3  ;;  %v5531_v6 = vld [vmem:[%s9185_s8 + $0x18] sm:$0xff] }
 0x345   :  { %9345 = vst [vmem:[#allocation32_spill] sm:$0xff] %v7684_v10  ;;  %v3048_v8 = vrot.slane %v3047_v15, 4  ;;  %4514 = vmatpush.bf16.msrb.mxu3 %v5531_v6 }
 0x346   :  { %5371 = vmatmul.msk.bf16.gmra.mxu2 %vm366_vm4, %v7092_v42  ;;  %v7673_v42 = vpop.f32.mrf.mxu1  ;;  %v3308_v25 = vsel %vm7317_vm13, %v3306_v9, %v3307_v60 }
 0x349   :  { %v7665_v7 = vpop.f32.mrf.mxu2 }
 0x34a   :  { %9343 = vst [vmem:[#allocation30_spill] sm:$0xff] %v7665_v7  ;;  %v9230_v7 = vrot.slane %v7684_v10, 4  ;;  %5340 = vmatmul.msk.bf16.gmra.mxu1 %vm366_vm4, %v7181_v48  ;;  %v2899_v10 = vrot.slane %v7582_v24, 4 }
 0x34b   :  { %v7694_v16 = vpop.f32.mrf.mxu0 }
 0x34c   :  { %v3052_v15 = vsel %vm631_vm10, %v7378_v3, %v9230_v7 }
 0x34d   :  { %v3335_v6 = vrot.slane %v3052_v15, 5 }
 0x34e   :  { %v7688_v41 = vpop.f32.mrf.mxu1 }
 0x351   :  { %v7678_v49 = vpop.f32.mrf.mxu2 }
 0x352   :  { %9344 = vst [vmem:[#allocation31_spill] sm:$0xff] %v7678_v49  ;;  %v3441_v49 = vrot.slane %v3308_v25, 4  ;;  %v3015_v25 = vrot.slane %v7516_v19, 4  ;;  %v9351_v19 = vrot.slane %v7539_v21, 5 }
 0x353   :  { %v7718_v40 = vpop.f32.mrf.mxu0  ;;  %5363 = vmatmul.msk.bf16.gmra.mxu0 %vm366_vm4, %v7301_v32 }
 0x354   :  { %v7704_v9 = vadd.f32 %v3441_v49, %v9346_v43  ;;  %v5394_v43 = vrot.slane %v3015_v25, 9 }
 0x356   :  { %5372 = vmatmul.msk.bf16.gmra.mxu2 %vm366_vm4, %v7134_v5  ;;  %9347 = vst [vmem:[#allocation33_spill] sm:$0xff] %v7704_v9  ;;  %v7708_v5 = vrot.slane %v3048_v8, 5  ;;  %v7715_v47 = vpop.f32.mrf.mxu1  ;;  %v3312_v15 = vsel %vm7317_vm13, %v5394_v43, %v9351_v19  ;;  %v7748_v43 = vsel %vm631_vm10, %v2899_v10, %v7545_v53 }
 0x358   :  { %9349 = vst [vmem:[#allocation35_spill] sm:$0xff] %v7708_v5  ;;  %v3334_v44 = vrot.slane %v7708_v5, 4 }
 0x359   :  { %v7706_v60 = vpop.f32.mrf.mxu2 }
 0x35a   :  { %9348 = vst [vmem:[#allocation34_spill] sm:$0xff] %v7706_v60  ;;  %v3336_v49 = vsel %vm7317_vm13, %v3334_v44, %v3335_v6  ;;  %v2874_v60 = vrot.slane %v7562_v0, 4  ;;  %5341 = vmatmul.msk.bf16.gmra.mxu1 %vm366_vm4, %v7209_v51  ;;  %v7742_v6 = vpop.f32.mrf.mxu3 }
 0x35b   :  { %v3449_v9 = vrot.slane %v3336_v49, 4  ;;  %v7750_v24 = vpop.f32.mrf.mxu0 }
 0x35c   :  { %v2949_v0 = vsel %vm631_vm10, %v2874_v60, %v7615_v28  ;;  %v2946_v19 = vsel %vm631_vm10, %v7615_v28, %v2874_v60 }
 0x35d   :  { %v7740_v44 = vadd.f32 %v3449_v9, %v3048_v8  ;;  %v2950_v49 = vrot.slane %v2949_v0, 4  ;;  %v3032_v9 = vsel %vm631_vm10, %v7545_v53, %v2899_v10  ;;  %v5444_v0 = vrot.slane %v2946_v19, 11 }
 0x35e   :  { %v7727_v7 = vpop.f32.mrf.mxu1  ;;  %v3320_v53 = vrot.slane %v7571_v57, 4  ;;  %v3321_v10 = vrot.slane %v3032_v9, 5  ;;  %v2878_v9 = vrot.slane %v7603_v58, 4 }
 0x35f   :  { %9352 = vst [vmem:[#allocation37_spill] sm:$0xff] %v7740_v44 }
 0x361   :  { %v7720_v4 = vpop.f32.mrf.mxu2 }
 0x362   :  { %9350 = vst [vmem:[#allocation36_spill] sm:$0xff] %v7720_v4  ;;  %v3442_v4 = vrot.slane %v3312_v15, 4  ;;  %v3035_v15 = vrot.slane %v7748_v43, 4 }
 0x363   :  { %v7788_v11 = vpop.f32.mrf.mxu0  ;;  %5364 = vmatmul.msk.bf16.gmra.mxu0 %vm366_vm4, %v7348_v55 }
 0x366   :  { %5373 = vmatmul.msk.bf16.gmra.mxu2 %vm366_vm4, %v7123_v18  ;;  %v7752_v18 = vadd.f32 %v3442_v4, %v3015_v25  ;;  %v7757_v8 = vpop.f32.mrf.mxu1  ;;  %v5420_v25 = vrot.slane %v2946_v19, 10  ;;  %v3575_v4 = vrot.slane %v2950_v49, 6  ;;  %v7781_v19 = vpop.f32.mrf.mxu3 }
 0x367   :  { %9360 = vst [vmem:[#allocation41_spill] sm:$0xff] %v7781_v19  ;;  %v3322_v19 = vsel %vm7317_vm13, %v3320_v53, %v3321_v10 }
 0x368   :  { %9354 = vst [vmem:[#allocation39_spill] sm:$0xff] %v7752_v18  ;;  %v3840_v18 = vrot.slane %v2950_v49, 7  ;;  %v3576_v3 = vsel %vm7764_vm8, %v5420_v25, %v3575_v4  ;;  %v3577_v5 = vrot.slane %v3575_v4, 4  ;;  %v9361_v4 = vrot.slane %v7600_v61, 5 }
 0x369   :  { %v7744_v21 = vpop.f32.mrf.mxu2  ;;  %v3789_v58 = vadd.f32 %v3576_v3, %v7338_v56  ;;  %v3445_v10 = vrot.slane %v3322_v19, 4 }
 0x36a   :  { %9353 = vst [vmem:[#allocation38_spill] sm:$0xff] %v7744_v21  ;;  %v2876_v21 = vrot.slane %v7590_v59, 4  ;;  %v5397_v59 = vrot.slane %v3035_v15, 9  ;;  %v3841_v49 = vsel %vm7770_vm15, %v5444_v0, %v3840_v18  ;;  %v3842_v2 = vrot.slane %v3840_v18, 4  ;;  %5342 = vmatmul.msk.bf16.gmra.mxu1 %vm366_vm4, %v7238_v29 }
 0x36b   :  { %v2959_v0 = vsel %vm631_vm10, %v7649_v50, %v2878_v9 }
 0x36c   :  { %v2953_v43 = vsel %vm631_vm10, %v7637_v14, %v2876_v21  ;;  %v2956_v57 = vsel %vm631_vm10, %v2876_v21, %v7637_v14  ;;  %v3326_v18 = vsel %vm7317_vm13, %v5397_v59, %v9361_v4  ;;  %v4006_v14 = vrot.slane %v3841_v49, 4  ;;  %v7816_v49 = vld [vmem:[%s9186_s7] ss:$0 sm:$0xff]  ;;  %v5530_v4 = vld [vmem:[%s9185_s8 + $0x10] sm:$0xff] }
 0x36d   :  { %v3843_v17 = vrot.slane %v2953_v43, 7  ;;  %v2957_v21 = vrot.slane %v2956_v57, 4  ;;  %v3446_v56 = vrot.slane %v3326_v18, 4  ;;  %v3582_v57 = vrot.slane %v2959_v0, 6  ;;  %4515 = vmatpush.bf16.msrb.mxu3 %v5530_v4 }
 0x36e   :  { %v7792_v25 = vpop.f32.mrf.mxu1  ;;  %v4102_v59 = vadd.f32 %v4006_v14, %v3789_v58  ;;  %v7823_v58 = vpop.f32.mrf.mxu3  ;;  %v7839_v4 = vrot.slane %v7816_v49, 4 }
 0x36f   :  { %v5421_v19 = vrot.slane %v2957_v21, 10  ;;  %v5445_v18 = vrot.slane %v2957_v21, 11 }
 0x371   :  { %v7775_v60 = vpop.f32.mrf.mxu2 }
 0x372   :  { %9359 = vst [vmem:[#allocation40_spill] sm:$0xff] %v7775_v60  ;;  %v3578_v60 = vrot.slane %v2953_v43, 6  ;;  %v2962_v43 = vsel %vm631_vm10, %v2878_v9, %v7649_v50  ;;  %v3847_v9 = vrot.slane %v2959_v0, 7 }
 0x373   :  { %v2963_v50 = vrot.slane %v2962_v43, 4  ;;  %v9362_v43 = vrot.slane %v7560_v27, 4 }
 0x374   :  { %v3579_v53 = vsel %vm7764_vm8, %v3577_v5, %v3578_v60  ;;  %v2880_v5 = vrot.slane %v7632_v22, 4  ;;  %v7834_v22 = vpop.f32.mrf.mxu0 }
 0x375   :  { %v7829_v0 = vadd.f32 %v3445_v10, %v9362_v43  ;;  %v3848_v10 = vsel %vm7770_vm15, %v5445_v18, %v3847_v9 }
 0x376   :  { %5374 = vmatmul.msk.bf16.gmra.mxu2 %vm366_vm4, %v7149_v45  ;;  %v3844_v45 = vsel %vm7770_vm15, %v3842_v2, %v3843_v17  ;;  %v3790_v17 = vadd.f32 %v3579_v53, %v7530_v46  ;;  %v7825_v14 = vpop.f32.mrf.mxu1  ;;  %v3585_v46 = vrot.slane %v2963_v50, 6  ;;  %v3849_v53 = vrot.slane %v3847_v9, 4 }
 0x377   :  { %v4007_v2 = vrot.slane %v3844_v45, 4  ;;  %v3850_v45 = vrot.slane %v2963_v50, 7  ;;  %v2969_v21 = vsel %vm631_vm10, %v2880_v5, %v7673_v42 }
 0x378   :  { %v2970_v50 = vrot.slane %v2969_v21, 4 }
 0x379   :  { %v2615_v61 = vpop.f32.mrf.mxu2  ;;  %v3851_v43 = vsel %vm7770_vm15, %v3849_v53, %v3850_v45  ;;  %v7864_v45 = vpop.f32.mrf.mxu3 }
 0x37a   :  { %v2951_v3 = vrot.slane %v2615_v61, 4  ;;  %v7831_v61 = vadd.f32 %v3446_v56, %v3035_v15  ;;  %v3583_v15 = vsel %vm7764_vm8, %v5421_v19, %v3582_v57  ;;  %v2882_v19 = vrot.slane %v7643_v63, 4  ;;  %5343 = vmatmul.msk.bf16.gmra.mxu1 %vm366_vm4, %v7267_v35 }
 0x37b   :  { %v3854_v53 = vrot.slane %v2970_v50, 7 }
 0x37c   :  { %v4150_v60 = vadd.f32 %v4102_v59, %v2951_v3  ;;  %9363 = vst [vmem:[#allocation42_spill] sm:$0xff] %v7831_v61  ;;  %v3584_v3 = vrot.slane %v3582_v57, 4  ;;  %v4103_v59 = vadd.f32 %v4007_v2, %v3790_v17  ;;  %v3791_v2 = vadd.f32 %v3583_v15, %v7532_v31  ;;  %v5529_v31 = vld [vmem:[%s9185_s8 + $0x8] sm:$0xff]  ;;  %v7868_v63 = vpop.f32.mrf.mxu0  ;;  %5365 = vmatmul.msk.bf16.gmra.mxu0 %vm366_vm4, %v7407_v33 }
 0x37d   :  { %v4008_v61 = vrot.slane %v3848_v10, 4  ;;  %4516 = vmatpush.bf16.msrb.mxu3 %v5529_v31 }
 0x37e   :  { %v4203_v37 = vadd.f32 %v7816_v49, %v4150_v60  ;;  %v3586_v60 = vsel %vm7764_vm8, %v3584_v3, %v3585_v46  ;;  %v7855_v57 = vpop.f32.mrf.mxu1  ;;  %v3589_v3 = vrot.slane %v2970_v50, 6 }
 0x37f   :  { %v3792_v18 = vadd.f32 %v3586_v60, %v7381_v12  ;;  %v5528_v12 = vld [vmem:[%s9185_s8] sm:$0xff] }
 0x380   :  { %5649 = vtanh.f32 %v4203_v37  ;;  %v2966_v37 = vsel %vm631_vm10, %v7673_v42, %v2880_v5  ;;  %v4009_v42 = vrot.slane %v3851_v43, 4  ;;  %v3591_v43 = vrot.slane %v3589_v3, 4 }
 0x381   :  { %v2617_v27 = vpop.f32.mrf.mxu2  ;;  %v5422_v5 = vrot.slane %v2966_v37, 10  ;;  %v5446_v46 = vrot.slane %v2966_v37, 11  ;;  %4517 = vmatpush.bf16.msrb.mxu3 %v5528_v12 }
 0x382   :  { %v4151_v56 = vadd.f32 %v4103_v59, %v2617_v27  ;;  %v2973_v59 = vsel %vm631_vm10, %v7688_v41, %v2882_v19  ;;  %v4105_v15 = vadd.f32 %v4009_v42, %v3792_v18 }
 0x383   :  { %v3590_v60 = vsel %vm7764_vm8, %v5422_v5, %v3589_v3  ;;  %v3592_v18 = vrot.slane %v2973_v59, 6  ;;  %v3857_v42 = vrot.slane %v2973_v59, 7 }
 0x384   :  { %v4204_v17 = vadd.f32 %v7839_v4, %v4151_v56  ;;  %v2884_v56 = vrot.slane %v7669_v62, 4  ;;  %v3793_v5 = vadd.f32 %v3590_v60, %v7399_v38  ;;  %v7897_v38 = vpop.f32.mrf.mxu0 }
 0x385   :  { %v3593_v12 = vsel %vm7764_vm8, %v3591_v43, %v3592_v18 }
 0x386   :  { %v5650_v9 = vpop.eup %5649  ;;  %5651 = vtanh.f32 %v4204_v17  ;;  %5375 = vmatmul.msk.bf16.gmra.mxu2 %vm366_vm4, %v7147_v20  ;;  %v4104_v20 = vadd.f32 %v4008_v61, %v3791_v2  ;;  %v3855_v61 = vsel %vm7770_vm15, %v5446_v46, %v3854_v53  ;;  %v3856_v2 = vrot.slane %v3854_v53, 4  ;;  %v7883_v62 = vpop.f32.mrf.mxu1 }
 0x387   :  { %4347 = vst [vmem:[#allocation1] ss:$2 sm:$0xff] %v5650_v9  ;;  %v2976_v9 = vsel %vm631_vm10, %v2882_v19, %v7688_v41  ;;  %v4010_v46 = vrot.slane %v3855_v61, 4  ;;  %v2979_v3 = vsel %vm631_vm10, %v7715_v47, %v2884_v56  ;;  %v2982_v53 = vsel %vm631_vm10, %v2884_v56, %v7715_v47  ;;  %v7891_v41 = vpop.f32.mrf.mxu3 }
 0x388   :  { %v3596_v59 = vrot.slane %v2979_v3, 6  ;;  %v3861_v60 = vrot.slane %v2979_v3, 7  ;;  %v2886_v47 = vrot.slane %v7694_v16, 4 }
 0x389   :  { %v2620_v21 = vpop.f32.mrf.mxu2 }
 0x38a   :  { %v2964_v27 = vrot.slane %v2620_v21, 4  ;;  %v4152_v10 = vadd.f32 %v4104_v20, %v2620_v21  ;;  %v2977_v20 = vrot.slane %v2976_v9, 4  ;;  %v3858_v21 = vsel %vm7770_vm15, %v3856_v2, %v3857_v42  ;;  %5344 = vmatmul.msk.bf16.gmra.mxu1 %vm366_vm4, %v7291_v54 }
 0x38b   :  { %v3598_v9 = vrot.slane %v3596_v59, 4 }
 0x38c   :  { %v5652_v50 = vpop.eup %5651  ;;  %v4153_v37 = vadd.f32 %v4105_v15, %v2964_v27  ;;  %v4205_v17 = vadd.f32 %v7816_v49, %v4152_v10  ;;  %v4106_v15 = vadd.f32 %v4010_v46, %v3793_v5  ;;  %v2983_v10 = vrot.slane %v2982_v53, 4 }
 0x38d   :  { %4349 = vst [vmem:[#allocation1 + $0x1] ss:$2 sm:$0xff] %v5652_v50  ;;  %v3794_v50 = vadd.f32 %v3593_v12, %v7577_v13  ;;  %v5423_v43 = vrot.slane %v2977_v20, 10  ;;  %v2989_v13 = vsel %vm631_vm10, %v2886_v47, %v7727_v7 }
 0x38e   :  { %v4206_v31 = vadd.f32 %v7839_v4, %v4153_v37  ;;  %5653 = vtanh.f32 %v4205_v17  ;;  %v4011_v37 = vrot.slane %v3858_v21, 4  ;;  %v5447_v17 = vrot.slane %v2977_v20, 11  ;;  %v7904_v42 = vpop.f32.mrf.mxu1 }
 0x38f   :  { %v3599_v16 = vrot.slane %v2983_v10, 6  ;;  %v3864_v5 = vrot.slane %v2983_v10, 7  ;;  %v3597_v53 = vsel %vm7764_vm8, %v5423_v43, %v3596_v59  ;;  %v7924_v10 = vpop.f32.mrf.mxu0 }
 0x390   :  { %5655 = vtanh.f32 %v4206_v31  ;;  %v3863_v31 = vrot.slane %v3861_v60, 4  ;;  %v4107_v46 = vadd.f32 %v4011_v37, %v3794_v50  ;;  %v3862_v20 = vsel %vm7770_vm15, %v5447_v17, %v3861_v60 }
 0x391   :  { %v2622_v19 = vpop.f32.mrf.mxu2  ;;  %v3600_v21 = vsel %vm7764_vm8, %v3598_v9, %v3599_v16  ;;  %v3795_v59 = vadd.f32 %v3597_v53, %v7621_v36  ;;  %v2888_v60 = vrot.slane %v7718_v40, 4  ;;  %v2890_v53 = vrot.slane %v7750_v24, 4 }
 0x392   :  { %v2971_v27 = vrot.slane %v2622_v19, 4  ;;  %v2990_v19 = vrot.slane %v2989_v13, 4  ;;  %v3796_v43 = vadd.f32 %v3600_v21, %v7434_v30 }
 0x393   :  { %v2993_v40 = vsel %vm631_vm10, %v7757_v8, %v2888_v60 }
 0x394   :  { %v5654_v56 = vpop.eup %5653  ;;  %v4154_v61 = vadd.f32 %v4106_v15, %v2971_v27  ;;  %v7920_v27 = vpop.f32.mrf.mxu3  ;;  %v3865_v15 = vsel %vm7770_vm15, %v3863_v31, %v3864_v5  ;;  %v3603_v50 = vrot.slane %v2990_v19, 6  ;;  %v3868_v9 = vrot.slane %v2990_v19, 7 }
 0x395   :  { %4351 = vst [vmem:[#allocation1 + $0x10] ss:$2 sm:$0xff] %v5654_v56  ;;  %v4012_v56 = vrot.slane %v3862_v20, 4  ;;  %v4013_v17 = vrot.slane %v3865_v15, 4 }
 0x396   :  { %v5656_v2 = vpop.eup %5655  ;;  %v4207_v18 = vadd.f32 %v7816_v49, %v4154_v61  ;;  %5376 = vmatmul.msk.bf16.gmra.mxu2 %vm366_vm4, %v7181_v48  ;;  %v2986_v48 = vsel %vm631_vm10, %v7727_v7, %v2886_v47  ;;  %v7930_v16 = vpop.f32.mrf.mxu1  ;;  %v3870_v15 = vrot.slane %v3868_v9, 4 }
 0x397   :  { %4353 = vst [vmem:[#allocation1 + $0x11] ss:$2 sm:$0xff] %v5656_v2  ;;  %v5424_v61 = vrot.slane %v2986_v48, 10  ;;  %v5448_v37 = vrot.slane %v2986_v48, 11  ;;  %v4108_v36 = vadd.f32 %v4012_v56, %v3795_v59  ;;  %v3605_v48 = vrot.slane %v3603_v50, 4  ;;  %v7946_v24 = vpop.f32.mrf.mxu0 }
 0x398   :  { %5657 = vtanh.f32 %v4207_v18  ;;  %v4362_v18 = vld.sshfl [vmem:[#allocation1] sm:$0xff pattern:$0x75316420]  ;;  %v2996_v59 = vsel %vm631_vm10, %v2888_v60, %v7757_v8  ;;  %v3606_v56 = vrot.slane %v2993_v40, 6  ;;  %v3002_v8 = vsel %vm631_vm10, %v2890_v53, %v7792_v25 }
 0x399   :  { %v2625_v3 = vpop.f32.mrf.mxu2  ;;  %v3604_v30 = vsel %vm7764_vm8, %v5424_v61, %v3603_v50  ;;  %v3869_v20 = vsel %vm7770_vm15, %v5448_v37, %v3868_v9  ;;  %v2997_v60 = vrot.slane %v2996_v59, 4 }
 0x39a   :  { %v4155_v12 = vadd.f32 %v4107_v46, %v2625_v3  ;;  %v4109_v46 = vadd.f32 %v4013_v17, %v3796_v43  ;;  %v3797_v50 = vadd.f32 %v3604_v30, %v7456_v39  ;;  %v4014_v37 = vrot.slane %v3869_v20, 4  ;;  %5345 = vmatmul.msk.bf16.gmra.mxu1 %vm366_vm4, %v7301_v32 }
 0x39b   :  { %v2999_v43 = vsel %vm631_vm10, %v7792_v25, %v2890_v53  ;;  %v2892_v25 = vrot.slane %v7788_v11, 4  ;;  %v5425_v30 = vrot.slane %v2997_v60, 10  ;;  %v5449_v53 = vrot.slane %v2997_v60, 11 }
 0x39c   :  { %v4208_v7 = vadd.f32 %v7839_v4, %v4155_v12  ;;  %v7944_v61 = vpop.f32.mrf.mxu3  ;;  %v3610_v39 = vrot.slane %v2999_v43, 6 }
 0x39d   :  { %v3009_v11 = vsel %vm631_vm10, %v2892_v25, %v7825_v14 }
 0x39e   :  { %v5658_v47 = vpop.eup %5657  ;;  %v4363_v2 = vld.sshfl [vmem:[#allocation1 + $0x10] sm:$0xff pattern:$0x75316420]  ;;  %5659 = vtanh.f32 %v4208_v7  ;;  %v3871_v7 = vrot.slane %v2993_v40, 7  ;;  %v7962_v9 = vpop.f32.mrf.mxu1 }
 0x39f   :  { %4355 = vst [vmem:[#allocation1 + $0x20] ss:$2 sm:$0xff] %v5658_v47  ;;  %v4450_v31 = vpack.c.bf16 %v4363_v2, %v4362_v18  ;;  %v3607_v2 = vsel %vm7764_vm8, %v3605_v48, %v3606_v56  ;;  %v3612_v48 = vrot.slane %v3610_v39, 4  ;;  %v7971_v56 = vpop.f32.mrf.mxu0 }
 0x3a1   :  { %v2627_v5 = vpop.f32.mrf.mxu2  ;;  %4518 = vmatmul.bf16.vlgmr.msrb.gmra.mxu3 %v4450_v31  ;;  %v3003_v31 = vrot.slane %v3002_v8, 4 }
 0x3a2   :  { %v2984_v13 = vrot.slane %v2627_v5, 4  ;;  %v4156_v3 = vadd.f32 %v4108_v36, %v2627_v5  ;;  %v4110_v36 = vadd.f32 %v4014_v37, %v3797_v50  ;;  %v3875_v5 = vrot.slane %v2999_v43, 7 }
 0x3a3   :  { %v3006_v37 = vsel %vm631_vm10, %v7825_v14, %v2892_v25  ;;  %v3010_v43 = vrot.slane %v3009_v11, 4 }
 0x3a4   :  { %v4157_v19 = vadd.f32 %v4109_v46, %v2984_v13  ;;  %v4209_v12 = vadd.f32 %v7816_v49, %v4156_v3  ;;  %v5660_v21 = vpop.eup %5659  ;;  %v3798_v46 = vadd.f32 %v3607_v2, %v7659_v26  ;;  %v7967_v59 = vpop.f32.mrf.mxu3  ;;  %v3876_v50 = vsel %vm7770_vm15, %v5449_v53, %v3875_v5 }
 0x3a5   :  { %4357 = vst [vmem:[#allocation1 + $0x21] ss:$2 sm:$0xff] %v5660_v21  ;;  %v3877_v21 = vrot.slane %v3875_v5, 4  ;;  %v5426_v14 = vrot.slane %v3006_v37, 10 }
 0x3a6   :  { %v4210_v47 = vadd.f32 %v7839_v4, %v4157_v19  ;;  %5661 = vtanh.f32 %v4209_v12  ;;  %5377 = vmatmul.msk.bf16.gmra.mxu2 %vm366_vm4, %v7209_v51  ;;  %v3872_v51 = vsel %vm7770_vm15, %v3870_v15, %v3871_v7  ;;  %v3613_v12 = vrot.slane %v3003_v31, 6  ;;  %v7983_v2 = vpop.f32.mrf.mxu1 }
 0x3a7   :  { %v4015_v3 = vrot.slane %v3872_v51, 4  ;;  %v3878_v15 = vrot.slane %v3003_v31, 7  ;;  %v2894_v31 = vrot.slane %v7834_v22, 4 }
 0x3a8   :  { %5663 = vtanh.f32 %v4210_v47  ;;  %v3611_v47 = vsel %vm7764_vm8, %v5425_v30, %v3610_v39  ;;  %v3614_v60 = vsel %vm7764_vm8, %v3612_v48, %v3613_v12  ;;  %v9364_v39 = vrot.slane %v7667_v23, 4 }
 0x3a9   :  { %v2630_v17 = vpop.f32.mrf.mxu2  ;;  %v4111_v26 = vadd.f32 %v4015_v3, %v3798_v46  ;;  %v3799_v51 = vadd.f32 %v3611_v47, %v7663_v52  ;;  %v3800_v52 = vadd.f32 %v3614_v60, %v7486_v34  ;;  %v3882_v23 = vrot.slane %v3010_v43, 7 }
 0x3aa   :  { %v2991_v18 = vrot.slane %v2630_v17, 4  ;;  %v3879_v17 = vsel %vm7770_vm15, %v3877_v21, %v3878_v15  ;;  %v2907_v30 = vrot.slane %v7742_v6, 4  ;;  %5346 = vmatmul.msk.bf16.gmra.mxu1 %vm366_vm4, %v7348_v55  ;;  %v3013_v34 = vsel %vm631_vm10, %v7855_v57, %v2894_v31  ;;  %v9365_v6 = vld [vmem:[#allocation41_spill] sm:$0xff] }
 0x3ab   :  { %v4017_v46 = vrot.slane %v3879_v17, 4  ;;  %v2909_v11 = vrot.slane %v9365_v6, 4 }
 0x3ac   :  { %v5662_v40 = vpop.eup %5661  ;;  %v4158_v13 = vadd.f32 %v4110_v36, %v2991_v18  ;;  %v4016_v18 = vrot.slane %v3876_v50, 4  ;;  %v7990_v36 = vsel %vm631_vm10, %v7595_v1, %v9364_v39  ;;  %v4364_v1 = vld.sshfl [vmem:[#allocation1 + $0x20] sm:$0xff pattern:$0x75316420]  ;;  %v8001_v48 = vpop.f32.mrf.mxu3  ;;  %v9366_v50 = vld [vmem:[#allocation10_spill] sm:$0xff]  ;;  %v3885_v39 = vrot.slane %v3013_v34, 7 }
 0x3ad   :  { %4359 = vst [vmem:[#allocation1 + $0x30] ss:$2 sm:$0xff] %v5662_v40  ;;  %v3617_v40 = vrot.slane %v3010_v43, 6  ;;  %v4113_v21 = vadd.f32 %v4017_v46, %v3800_v52 }
 0x3ae   :  { %v5664_v20 = vpop.eup %5663  ;;  %v4211_v19 = vadd.f32 %v7816_v49, %v4158_v13  ;;  %v5450_v13 = vrot.slane %v3006_v37, 11  ;;  %v4112_v22 = vadd.f32 %v4016_v18, %v3799_v51  ;;  %v8015_v37 = vsel %vm631_vm10, %v9366_v50, %v2907_v30 }
 0x3af   :  { %4361 = vst [vmem:[#allocation1 + $0x31] ss:$2 sm:$0xff] %v5664_v20  ;;  %v5399_v20 = vrot.slane %v7990_v36, 9  ;;  %v3619_v43 = vrot.slane %v3617_v40, 4  ;;  %v3884_v51 = vrot.slane %v3882_v23, 4  ;;  %v3016_v18 = vsel %vm631_vm10, %v2894_v31, %v7855_v57 }
 0x3b0   :  { %5665 = vtanh.f32 %v4211_v19  ;;  %v8005_v19 = vpop.f32.mrf.mxu0  ;;  %v3883_v47 = vsel %vm7770_vm15, %v5450_v13, %v3882_v23  ;;  %v9369_v23 = vld [vmem:[#allocation35_spill] sm:$0xff] }
 0x3b1   :  { %v2632_v7 = vpop.f32.mrf.mxu2  ;;  %v4018_v52 = vrot.slane %v3883_v47, 4  ;;  %v8033_v31 = vsel %vm7317_vm13, %v5399_v20, %v9369_v23  ;;  %v9371_v47 = vld [vmem:[#allocation7_spill] sm:$0xff] }
 0x3b2   :  { %v4159_v8 = vadd.f32 %v4111_v26, %v2632_v7  ;;  %v2896_v26 = vrot.slane %v7868_v63, 4  ;;  %v3618_v7 = vsel %vm7764_vm8, %v5426_v14, %v3617_v40  ;;  %v3620_v63 = vrot.slane %v3013_v34, 6  ;;  %v8020_v14 = vpop.f32.mrf.mxu1  ;;  %v9368_v40 = vld [vmem:[#allocation3_spill] sm:$0xff] }
 0x3b3   :  { %v8026_v46 = vsel %vm631_vm10, %v2909_v11, %v9368_v40 }
 0x3b4   :  { %v4212_v5 = vadd.f32 %v7839_v4, %v4159_v8  ;;  %v9241_v20 = vrot.slane %v8026_v46, 4 }
 0x3b6   :  { %v5666_v25 = vpop.eup %5665  ;;  %5378 = vmatmul.msk.bf16.gmra.mxu2 %vm366_vm4, %v7238_v29  ;;  %v4365_v3 = vld.sshfl [vmem:[#allocation1 + $0x30] sm:$0xff pattern:$0x75316420]  ;;  %5667 = vtanh.f32 %v4212_v5 }
 0x3b7   :  { %4366 = vst [vmem:[#allocation1] ss:$2 sm:$0xff] %v5666_v25  ;;  %v4451_v53 = vpack.c.bf16 %v4365_v3, %v4364_v1  ;;  %v9367_v25 = vld [vmem:[#allocation20_spill] sm:$0xff]  ;;  %v3019_v3 = vsel %vm631_vm10, %v7883_v62, %v2896_v26  ;;  %v9242_v1 = vrot.slane %v8015_v37, 5 }
 0x3b8   :  { %v3801_v13 = vadd.f32 %v3618_v7, %v9367_v25 }
 0x3b9   :  { %v2635_v29 = vpop.f32.mrf.mxu2  ;;  %4523 = vmatmul.bf16.gmra.mxu3 %v4451_v53  ;;  %v3060_v53 = vsel %vm631_vm10, %v2907_v30, %v9366_v50  ;;  %v8051_v30 = vpop.f32.mrf.mxu3 }
 0x3ba   :  { %v3004_v12 = vrot.slane %v2635_v29, 4  ;;  %v4160_v15 = vadd.f32 %v4112_v22, %v2635_v29  ;;  %v3022_v22 = vsel %vm631_vm10, %v2896_v26, %v7883_v62  ;;  %v3017_v29 = vrot.slane %v3016_v18, 4  ;;  %v8056_v18 = vpop.f32.mrf.mxu0  ;;  %5347 = vmatmul.msk.bf16.gmra.mxu1 %vm366_vm4, %v7407_v33 }
 0x3bb   :  { %v4114_v7 = vadd.f32 %v4018_v52, %v3801_v13  ;;  %v3023_v50 = vrot.slane %v3022_v22, 4  ;;  %v5401_v13 = vrot.slane %v3060_v53, 9  ;;  %v8061_v52 = vsel %vm631_vm10, %v9368_v40, %v2909_v11 }
 0x3bc   :  { %v4161_v8 = vadd.f32 %v4113_v21, %v3004_v12  ;;  %v4213_v60 = vadd.f32 %v7816_v49, %v4160_v15  ;;  %v5668_v17 = vpop.eup %5667  ;;  %v3621_v12 = vsel %vm7764_vm8, %v3619_v43, %v3620_v63  ;;  %v3886_v21 = vsel %vm7770_vm15, %v3884_v51, %v3885_v39  ;;  %v9374_v39 = vld [vmem:[#allocation33_spill] sm:$0xff] }
 0x3bd   :  { %4367 = vst [vmem:[#allocation1 + $0x1] ss:$2 sm:$0xff] %v5668_v17  ;;  %v3624_v15 = vrot.slane %v3019_v3, 6  ;;  %v2898_v43 = vrot.slane %v7897_v38, 4  ;;  %v3341_v51 = vrot.slane %v9242_v1, 4  ;;  %v4019_v25 = vrot.slane %v3886_v21, 4 }
 0x3be   :  { %v4214_v5 = vadd.f32 %v7839_v4, %v4161_v8  ;;  %5669 = vtanh.f32 %v4213_v60  ;;  %v9372_v8 = vld [vmem:[#allocation32_spill] sm:$0xff]  ;;  %v3889_v60 = vrot.slane %v3019_v3, 7  ;;  %v5427_v23 = vrot.slane %v3017_v29, 10 }
 0x3bf   :  { %v9373_v62 = vrot.slane %v9372_v8, 4  ;;  %v5451_v22 = vrot.slane %v3017_v29, 11  ;;  %v8065_v38 = vrot.slane %v9241_v20, 5  ;;  %v3627_v53 = vrot.slane %v3023_v50, 6 }
 0x3c0   :  { %5671 = vtanh.f32 %v4214_v5  ;;  %v3802_v5 = vadd.f32 %v3621_v12, %v9374_v39  ;;  %v3891_v12 = vrot.slane %v3889_v60, 4  ;;  %v3892_v11 = vrot.slane %v3023_v50, 7 }
 0x3c1   :  { %v2637_v34 = vpop.f32.mrf.mxu2  ;;  %v8049_v26 = vsel %vm631_vm10, %v9373_v62, %v9371_v47  ;;  %v3626_v47 = vrot.slane %v3624_v15, 4  ;;  %v3029_v40 = vsel %vm631_vm10, %v2898_v43, %v7904_v42  ;;  %v3448_v29 = vrot.slane %v8033_v31, 4 }
 0x3c2   :  { %v3011_v6 = vrot.slane %v2637_v34, 4  ;;  %v2913_v34 = vrot.slane %v7864_v45, 4  ;;  %v3343_v21 = vsel %vm7317_vm13, %v3341_v51, %v5401_v13  ;;  %v4115_v45 = vadd.f32 %v4019_v25, %v3802_v5 }
 0x3c3   :  { %v5402_v8 = vrot.slane %v8061_v52, 9  ;;  %v3625_v50 = vsel %vm7764_vm8, %v5427_v23, %v3624_v15  ;;  %v3890_v31 = vsel %vm7770_vm15, %v5451_v22, %v3889_v60  ;;  %v3030_v39 = vrot.slane %v3029_v40, 4  ;;  %v8106_v40 = vpop.f32.mrf.mxu3 }
 0x3c4   :  { %v5670_v17 = vpop.eup %5669  ;;  %v4162_v63 = vadd.f32 %v4114_v7, %v3011_v6  ;;  %v8076_v7 = vpop.f32.mrf.mxu1  ;;  %v3451_v25 = vrot.slane %v3343_v21, 4  ;;  %v3628_v15 = vsel %vm7764_vm8, %v3626_v47, %v3627_v53  ;;  %v3893_v60 = vsel %vm7770_vm15, %v3891_v12, %v3892_v11 }
 0x3c5   :  { %4368 = vst [vmem:[#allocation1 + $0x10] ss:$2 sm:$0xff] %v5670_v17  ;;  %v9375_v17 = vld [vmem:[#allocation2_spill] sm:$0xff]  ;;  %v3347_v13 = vsel %vm7317_vm13, %v5402_v8, %v8065_v38  ;;  %v2911_v23 = vrot.slane %v7823_v58, 4  ;;  %v3631_v12 = vrot.slane %v3030_v39, 6  ;;  %v8110_v58 = vpop.f32.mrf.mxu0  ;;  %v9377_v8 = vld [vmem:[#allocation23_spill] sm:$0xff] }
 0x3c6   :  { %v5672_v3 = vpop.eup %5671  ;;  %v4215_v6 = vadd.f32 %v7816_v49, %v4162_v63  ;;  %5379 = vmatmul.msk.bf16.gmra.mxu2 %vm366_vm4, %v7267_v35  ;;  %v9243_v35 = vrot.slane %v8049_v26, 4  ;;  %v8088_v51 = vsel %vm631_vm10, %v9375_v17, %v2913_v34  ;;  %v3026_v63 = vsel %vm631_vm10, %v7904_v42, %v2898_v43  ;;  %v9376_v42 = vld [vmem:[#allocation39_spill] sm:$0xff] }
 0x3c7   :  { %4369 = vst [vmem:[#allocation1 + $0x11] ss:$2 sm:$0xff] %v5672_v3  ;;  %v8102_v22 = vsel %vm631_vm10, %v2913_v34, %v9375_v17  ;;  %v3803_v43 = vadd.f32 %v3625_v50, %v9376_v42  ;;  %v4020_v3 = vrot.slane %v3890_v31, 4  ;;  %v5428_v21 = vrot.slane %v3026_v63, 10 }
 0x3c8   :  { %5673 = vtanh.f32 %v4215_v6  ;;  %v9245_v6 = vrot.slane %v8088_v51, 5  ;;  %v5452_v11 = vrot.slane %v3026_v63, 11  ;;  %v3804_v34 = vadd.f32 %v3628_v15, %v9377_v8  ;;  %v4374_v42 = vld.sshfl [vmem:[#allocation1] sm:$0xff pattern:$0x75316420] }
 0x3c9   :  { %v2640_v62 = vpop.f32.mrf.mxu2  ;;  %v8114_v50 = vadd.f32 %v3448_v29, %v7990_v36  ;;  %v3896_v31 = vrot.slane %v3030_v39, 7  ;;  %v4116_v63 = vadd.f32 %v4020_v3, %v3803_v43  ;;  %v8122_v1 = vadd.f32 %v3451_v25, %v8015_v37 }
 0x3ca   :  { %v4163_v5 = vadd.f32 %v4115_v45, %v2640_v62  ;;  %v2900_v45 = vrot.slane %v7924_v10, 4  ;;  %v4021_v62 = vrot.slane %v3893_v60, 4  ;;  %v8118_v10 = vrot.slane %v9243_v35, 9  ;;  %v9378_v60 = vld [vmem:[#allocation6_spill] sm:$0xff] }
 0x3cb   :  { %v3452_v15 = vrot.slane %v3347_v13, 4  ;;  %v8126_v36 = vsel %vm631_vm10, %v2911_v23, %v9378_v60  ;;  %v5404_v29 = vrot.slane %v8102_v22, 9  ;;  %v3355_v25 = vrot.slane %v9245_v6, 4 }
 0x3cc   :  { %v4216_v47 = vadd.f32 %v7839_v4, %v4163_v5  ;;  %v2915_v5 = vrot.slane %v7891_v41, 4  ;;  %v4117_v41 = vadd.f32 %v4021_v62, %v3804_v34  ;;  %v3632_v13 = vsel %vm7764_vm8, %v5428_v21, %v3631_v12 }
 0x3cd   :  { %v2902_v3 = vrot.slane %v7946_v24, 4  ;;  %v3897_v22 = vsel %vm7770_vm15, %v5452_v11, %v3896_v31  ;;  %v3633_v35 = vrot.slane %v3631_v12, 4  ;;  %v3898_v62 = vrot.slane %v3896_v31, 4  ;;  %v9380_v11 = vld [vmem:[#allocation25_spill] sm:$0xff]  ;;  %v8155_v31 = vpop.f32.mrf.mxu3 }
 0x3ce   :  { %v5674_v53 = vpop.eup %5673  ;;  %v4375_v17 = vld.sshfl [vmem:[#allocation1 + $0x10] sm:$0xff pattern:$0x75316420]  ;;  %5675 = vtanh.f32 %v4216_v47  ;;  %v3033_v47 = vsel %vm631_vm10, %v7930_v16, %v2900_v45  ;;  %v3805_v6 = vadd.f32 %v3632_v13, %v9380_v11  ;;  %v4022_v12 = vrot.slane %v3897_v22, 4 }
 0x3cf   :  { %4370 = vst [vmem:[#allocation1 + $0x20] ss:$2 sm:$0xff] %v5674_v53  ;;  %v4452_v20 = vpack.c.bf16 %v4375_v17, %v4374_v42  ;;  %v8131_v53 = vpop.f32.mrf.mxu1  ;;  %v9379_v17 = vld [vmem:[#allocation17_spill] sm:$0xff]  ;;  %v3899_v21 = vrot.slane %v3033_v47, 7  ;;  %v2904_v11 = vrot.slane %v7971_v56, 4  ;;  %v2919_v56 = vrot.slane %v7944_v61, 4 }
 0x3d0   :  { %v8142_v42 = vsel %vm631_vm10, %v2915_v5, %v9379_v17 }
 0x3d1   :  { %v2642_v39 = vpop.f32.mrf.mxu2  ;;  %4528 = vmatmul.bf16.gmra.mxu3 %v4452_v20  ;;  %v3049_v61 = vsel %vm631_vm10, %v2904_v11, %v7983_v2 }
 0x3d2   :  { %v3024_v8 = vrot.slane %v2642_v39, 4  ;;  %v4164_v43 = vadd.f32 %v4116_v63, %v2642_v39  ;;  %v3036_v63 = vsel %vm631_vm10, %v2900_v45, %v7930_v16  ;;  %v3634_v39 = vrot.slane %v3033_v47, 6 }
 0x3d3   :  { %v3039_v16 = vsel %vm631_vm10, %v7962_v9, %v2902_v3  ;;  %v8163_v45 = vsel %vm631_vm10, %v9378_v60, %v2911_v23  ;;  %v3357_v47 = vsel %vm7317_vm13, %v3355_v25, %v5404_v29  ;;  %v8178_v25 = vsel %vm631_vm10, %v9379_v17, %v2915_v5 }
 0x3d4   :  { %v4165_v33 = vadd.f32 %v4117_v41, %v3024_v8  ;;  %v4217_v34 = vadd.f32 %v7816_v49, %v4164_v43  ;;  %v5676_v20 = vpop.eup %5675  ;;  %v8153_v41 = vadd.f32 %v3452_v15, %v8061_v52  ;;  %v8168_v43 = vpop.f32.mrf.mxu0  ;;  %v9246_v52 = vrot.slane %v8142_v42, 4 }
 0x3d5   :  { %4371 = vst [vmem:[#allocation1 + $0x21] ss:$2 sm:$0xff] %v5676_v20  ;;  %v3037_v15 = vrot.slane %v3036_v63, 4  ;;  %v3635_v22 = vsel %vm7764_vm8, %v3633_v35, %v3634_v39  ;;  %v3903_v60 = vrot.slane %v3039_v16, 7  ;;  %v3455_v29 = vrot.slane %v3357_v47, 4 }
 0x3d6   :  { %v4218_v24 = vadd.f32 %v7839_v4, %v4165_v33  ;;  %5677 = vtanh.f32 %v4217_v34  ;;  %5380 = vmatmul.msk.bf16.gmra.mxu2 %vm366_vm4, %v7291_v54  ;;  %v3042_v33 = vsel %vm631_vm10, %v2902_v3, %v7962_v9  ;;  %v9247_v54 = vrot.slane %v8126_v36, 4 }
 0x3d7   :  { %v3900_v9 = vsel %vm7770_vm15, %v3898_v62, %v3899_v21  ;;  %v3043_v23 = vrot.slane %v3042_v33, 4  ;;  %v4118_v34 = vadd.f32 %v4022_v12, %v3805_v6  ;;  %v8181_v8 = vpop.f32.mrf.mxu1  ;;  %v3806_v62 = vadd.f32 %v3635_v22, %v7829_v0 }
 0x3d8   :  { %5679 = vtanh.f32 %v4218_v24  ;;  %v3638_v24 = vrot.slane %v3039_v16, 6  ;;  %v4023_v39 = vrot.slane %v3900_v9, 4  ;;  %v8186_v6 = vrot.slane %v9247_v54, 9  ;;  %v9384_v54 = vld [vmem:[#allocation42_spill] sm:$0xff] }
 0x3d9   :  { %v2645_v13 = vpop.f32.mrf.mxu2  ;;  %v8190_v21 = vrot.slane %v9246_v52, 5  ;;  %v5429_v5 = vrot.slane %v3037_v15, 10  ;;  %v5453_v17 = vrot.slane %v3037_v15, 11  ;;  %v3905_v16 = vrot.slane %v3903_v60, 4 }
 0x3da   :  { %v3031_v3 = vrot.slane %v2645_v13, 4  ;;  %v3906_v33 = vrot.slane %v3043_v23, 7  ;;  %v5405_v0 = vrot.slane %v8178_v25, 9  ;;  %v3640_v13 = vrot.slane %v3638_v24, 4 }
 0x3db   :  { %v3641_v22 = vrot.slane %v3043_v23, 6  ;;  %v9381_v9 = vrot.slane %v8015_v37, 5  ;;  %v8201_v15 = vadd.f32 %v3455_v29, %v8088_v51  ;;  %v2917_v23 = vrot.slane %v7920_v27, 4 }
 0x3dc   :  { %v5678_v63 = vpop.eup %5677  ;;  %v4166_v35 = vadd.f32 %v4118_v34, %v3031_v3  ;;  %v4119_v34 = vadd.f32 %v4023_v39, %v3806_v62  ;;  %v3904_v29 = vsel %vm7770_vm15, %v5453_v17, %v3903_v60  ;;  %v3046_v62 = vsel %vm631_vm10, %v7983_v2, %v2904_v11  ;;  %v8221_v39 = vpop.f32.mrf.mxu0 }
 0x3dd   :  { %4372 = vst [vmem:[#allocation1 + $0x30] ss:$2 sm:$0xff] %v5678_v63  ;;  %v3340_v3 = vsel %vm7317_vm13, %v8118_v10, %v9381_v9  ;;  %v3361_v63 = vsel %vm7317_vm13, %v5405_v0, %v8190_v21  ;;  %v3639_v10 = vsel %vm7764_vm8, %v5429_v5, %v3638_v24  ;;  %v3907_v27 = vsel %vm7770_vm15, %v3905_v16, %v3906_v33  ;;  %v9385_v33 = vld [vmem:[#allocation18_spill] sm:$0xff] }
 0x3de   :  { %v5680_v12 = vpop.eup %5679  ;;  %v4219_v47 = vadd.f32 %v7816_v49, %v4166_v35  ;;  %9382 = vst [vmem:[#allocation41_spill] sm:$0xff] %v8201_v15  ;;  %v8209_v35 = vpop.f32.mrf.mxu3  ;;  %v3642_v24 = vsel %vm7764_vm8, %v3640_v13, %v3641_v22  ;;  %v3050_v5 = vrot.slane %v3049_v61, 4  ;;  %v3450_v60 = vrot.slane %v3340_v3, 4  ;;  %v4376_v61 = vld.sshfl [vmem:[#allocation1 + $0x20] sm:$0xff pattern:$0x75316420] }
 0x3df   :  { %4373 = vst [vmem:[#allocation1 + $0x31] ss:$2 sm:$0xff] %v5680_v12  ;;  %v9383_v12 = vld [vmem:[#allocation19_spill] sm:$0xff]  ;;  %v3456_v17 = vrot.slane %v3361_v63, 4  ;;  %v3807_v20 = vadd.f32 %v3639_v10, %v9384_v54  ;;  %v4024_v15 = vrot.slane %v3904_v29, 4  ;;  %v5430_v11 = vrot.slane %v3046_v62, 10  ;;  %v8238_v22 = vpop.f32.mrf.mxu1 }
 0x3e0   :  { %5681 = vtanh.f32 %v4219_v47  ;;  %v8217_v9 = vsel %vm631_vm10, %v9383_v12, %v2919_v56  ;;  %v8234_v0 = vsel %vm631_vm10, %v2917_v23, %v9385_v33  ;;  %v3100_v13 = vsel %vm631_vm10, %v2919_v56, %v9383_v12  ;;  %v9386_v54 = vld [vmem:[#allocation28_spill] sm:$0xff] }
 0x3e1   :  { %v2647_v37 = vpop.f32.mrf.mxu2  ;;  %v3808_v3 = vadd.f32 %v3642_v24, %v9386_v54  ;;  %v5454_v10 = vrot.slane %v3046_v62, 11  ;;  %v3910_v29 = vrot.slane %v3050_v5, 7  ;;  %v2921_v56 = vrot.slane %v7967_v59, 4 }
 0x3e2   :  { %v4167_v47 = vadd.f32 %v4119_v34, %v2647_v37  ;;  %v2906_v34 = vrot.slane %v8005_v19, 4  ;;  %v4025_v37 = vrot.slane %v3907_v27, 4  ;;  %v3645_v19 = vrot.slane %v3050_v5, 6 }
 0x3e3   :  { %v8244_v27 = vadd.f32 %v3456_v17, %v8178_v25  ;;  %v4120_v12 = vadd.f32 %v4024_v15, %v3807_v20  ;;  %v9249_v24 = vrot.slane %v8234_v0, 4  ;;  %v5407_v62 = vrot.slane %v3100_v13, 9 }
 0x3e4   :  { %v4220_v52 = vadd.f32 %v7839_v4, %v4167_v47  ;;  %v9389_v25 = vrot.slane %v8065_v38, 4  ;;  %v4121_v15 = vadd.f32 %v4025_v37, %v3808_v3  ;;  %v2908_v38 = vrot.slane %v8056_v18, 4  ;;  %v8279_v3 = vpop.f32.mrf.mxu0 }
 0x3e5   :  { %v3911_v13 = vsel %vm7770_vm15, %v5454_v10, %v3910_v29  ;;  %v3647_v37 = vrot.slane %v3645_v19, 4 }
 0x3e6   :  { %v5682_v16 = vpop.eup %5681  ;;  %5683 = vtanh.f32 %v4220_v52  ;;  %5381 = vmatmul.msk.bf16.gmra.mxu2 %vm366_vm4, %v7301_v32  ;;  %v4377_v63 = vld.sshfl [vmem:[#allocation1 + $0x30] sm:$0xff pattern:$0x75316420]  ;;  %v9387_v52 = vrot.slane %v8049_v26, 4  ;;  %v8253_v32 = vsel %vm631_vm10, %v9385_v33, %v2917_v23  ;;  %v3053_v26 = vsel %vm631_vm10, %v8020_v14, %v2906_v34  ;;  %v8268_v33 = vpop.f32.mrf.mxu3 }
 0x3e7   :  { %4378 = vst [vmem:[#allocation1] ss:$2 sm:$0xff] %v5682_v16  ;;  %v4453_v47 = vpack.c.bf16 %v4377_v63, %v4376_v61  ;;  %v9388_v16 = vrot.slane %v8163_v45, 5  ;;  %v3646_v45 = vsel %vm7764_vm8, %v5430_v11, %v3645_v19  ;;  %v9391_v61 = vld [vmem:[#allocation21_spill] sm:$0xff]  ;;  %v3056_v11 = vsel %vm631_vm10, %v2906_v34, %v8020_v14 }
 0x3e8   :  { %v8249_v2 = vadd.f32 %v3450_v60, %v9387_v52  ;;  %v9390_v60 = vrot.slane %v8217_v9, 5  ;;  %v8277_v63 = vsel %vm631_vm10, %v2921_v56, %v9391_v61  ;;  %v3912_v52 = vrot.slane %v3910_v29, 4 }
 0x3e9   :  { %v2650_v5 = vpop.f32.mrf.mxu2  ;;  %4533 = vmatmul.bf16.gmra.mxu3 %v4453_v47  ;;  %v8262_v59 = vsel %vm7317_vm13, %v9389_v25, %v9388_v16  ;;  %v3913_v18 = vrot.slane %v3053_v26, 7  ;;  %v3809_v16 = vadd.f32 %v3646_v45, %v8114_v50  ;;  %v4026_v25 = vrot.slane %v3911_v13, 4  ;;  %v8300_v50 = vpop.f32.mrf.mxu1 }
 0x3ea   :  { %v3044_v20 = vrot.slane %v2650_v5, 4  ;;  %v4168_v23 = vadd.f32 %v4120_v12, %v2650_v5  ;;  %v3369_v17 = vrot.slane %v9390_v60, 4  ;;  %v3648_v5 = vrot.slane %v3053_v26, 6 }
 0x3eb   :  { %v3363_v19 = vrot.slane %v8253_v32, 5  ;;  %v9248_v60 = vrot.slane %v8277_v63, 4  ;;  %v3062_v29 = vsel %vm631_vm10, %v2908_v38, %v8076_v7  ;;  %v8294_v14 = vrot.slane %v9249_v24, 9 }
 0x3ec   :  { %v5684_v54 = vpop.eup %5683  ;;  %v4169_v47 = vadd.f32 %v4121_v15, %v3044_v20  ;;  %v4221_v12 = vadd.f32 %v7816_v49, %v4168_v23  ;;  %v3059_v49 = vsel %vm631_vm10, %v8076_v7, %v2908_v38  ;;  %v8298_v34 = vsel %vm7317_vm13, %v3369_v17, %v5407_v62 }
 0x3ed   :  { %4379 = vst [vmem:[#allocation1 + $0x1] ss:$2 sm:$0xff] %v5684_v54  ;;  %v3453_v26 = vrot.slane %v8262_v59, 4  ;;  %v8305_v20 = vsel %vm631_vm10, %v9391_v61, %v2921_v56  ;;  %v3057_v15 = vrot.slane %v3056_v11, 4  ;;  %v3649_v7 = vsel %vm7764_vm8, %v3647_v37, %v3648_v5  ;;  %v9392_v11 = vld [vmem:[#allocation37_spill] sm:$0xff] }
 0x3ee   :  { %v4222_v10 = vadd.f32 %v7839_v4, %v4169_v47  ;;  %5685 = vtanh.f32 %v4221_v12  ;;  %v3914_v45 = vsel %vm7770_vm15, %v3912_v52, %v3913_v18  ;;  %v3063_v38 = vrot.slane %v3062_v29, 4 }
 0x3ef   :  { %v3917_v62 = vrot.slane %v3059_v49, 7  ;;  %v4122_v13 = vadd.f32 %v4026_v25, %v3809_v16  ;;  %v3459_v54 = vrot.slane %v8298_v34, 4  ;;  %v8314_v59 = vrot.slane %v9248_v60, 5  ;;  %v8321_v16 = vpop.f32.mrf.mxu3 }
 0x3f0   :  { %5687 = vtanh.f32 %v4222_v10  ;;  %v2923_v56 = vrot.slane %v8001_v48, 4  ;;  %v3652_v61 = vrot.slane %v3059_v49, 6  ;;  %v2910_v12 = vrot.slane %v8110_v58, 4  ;;  %v8323_v49 = vpop.f32.mrf.mxu0  ;;  %v8328_v58 = vld [vmem:[%s9186_s7] ss:$0 sm:$0xff] }
 0x3f1   :  { %v2652_v23 = vpop.f32.mrf.mxu2  ;;  %v3810_v5 = vadd.f32 %v3649_v7, %v9392_v11  ;;  %v4027_v52 = vrot.slane %v3914_v45, 4  ;;  %v5408_v18 = vrot.slane %v8305_v20, 9  ;;  %v2925_v10 = vrot.slane %v8051_v30, 4  ;;  %v9394_v11 = vld [vmem:[#allocation22_spill] sm:$0xff] }
 0x3f2   :  { %v3051_v17 = vrot.slane %v2652_v23, 4  ;;  %v5431_v25 = vrot.slane %v3057_v15, 10  ;;  %v5455_v29 = vrot.slane %v3057_v15, 11  ;;  %v3919_v23 = vrot.slane %v3917_v62, 4 }
 0x3f3   :  { %v3920_v48 = vrot.slane %v3063_v38, 7  ;;  %v9393_v30 = vrot.slane %v8026_v46, 4  ;;  %v3375_v15 = vsel %vm7317_vm13, %v5408_v18, %v8314_v59  ;;  %v8343_v60 = vsel %vm631_vm10, %v2923_v56, %v9394_v11 }
 0x3f4   :  { %v5686_v47 = vpop.eup %5685  ;;  %v4170_v37 = vadd.f32 %v4122_v13, %v3051_v17  ;;  %v3654_v13 = vrot.slane %v3652_v61, 4  ;;  %v4123_v46 = vadd.f32 %v4027_v52, %v3810_v5  ;;  %v3653_v18 = vsel %vm7764_vm8, %v5431_v25, %v3652_v61  ;;  %v8364_v52 = vpop.f32.mrf.mxu1 }
 0x3f5   :  { %4380 = vst [vmem:[#allocation1 + $0x10] ss:$2 sm:$0xff] %v5686_v47  ;;  %v8335_v45 = vadd.f32 %v3453_v26, %v9393_v30  ;;  %v3655_v47 = vrot.slane %v3063_v38, 6  ;;  %v9395_v26 = vld [vmem:[#allocation24_spill] sm:$0xff]  ;;  %v3918_v38 = vsel %vm7770_vm15, %v5455_v29, %v3917_v62  ;;  %v3066_v5 = vsel %vm631_vm10, %v8131_v53, %v2910_v12 }
 0x3f6   :  { %v5688_v34 = vpop.eup %5687  ;;  %v4223_v7 = vadd.f32 %v8328_v58, %v4170_v37  ;;  %5382 = vmatmul.msk.bf16.gmra.mxu2 %vm366_vm4, %v7348_v55  ;;  %v3069_v55 = vsel %vm631_vm10, %v2910_v12, %v8131_v53  ;;  %v8349_v37 = vsel %vm631_vm10, %v9395_v26, %v2925_v10  ;;  %v3921_v61 = vsel %vm7770_vm15, %v3919_v23, %v3920_v48 }
 0x3f7   :  { %4381 = vst [vmem:[#allocation1 + $0x11] ss:$2 sm:$0xff] %v5688_v34  ;;  %v9396_v34 = vrot.slane %v8088_v51, 5  ;;  %v8370_v62 = vsel %vm631_vm10, %v9394_v11, %v2923_v56  ;;  %v9250_v51 = vrot.slane %v8343_v60, 4  ;;  %v3070_v25 = vrot.slane %v3069_v55, 4 }
 0x3f8   :  { %5689 = vtanh.f32 %v4223_v7  ;;  %v3460_v7 = vrot.slane %v3375_v15, 4  ;;  %v9251_v29 = vrot.slane %v8349_v37, 5  ;;  %v3811_v12 = vadd.f32 %v3653_v18, %v8249_v2  ;;  %v8386_v2 = vpop.f32.mrf.mxu3 }
 0x3f9   :  { %v2655_v30 = vpop.f32.mrf.mxu2  ;;  %v8360_v24 = vsel %vm7317_vm13, %v8186_v6, %v9396_v34  ;;  %v3656_v6 = vsel %vm7764_vm8, %v3654_v13, %v3655_v47  ;;  %v4028_v15 = vrot.slane %v3918_v38, 4  ;;  %v5432_v23 = vrot.slane %v3066_v5, 10 }
 0x3fa   :  { %v4171_v17 = vadd.f32 %v4123_v46, %v2655_v30  ;;  %v2927_v46 = vrot.slane %v8106_v40, 4  ;;  %v2912_v48 = vrot.slane %v8168_v43, 4  ;;  %v4029_v56 = vrot.slane %v3921_v61, 4  ;;  %v8392_v61 = vpop.f32.mrf.mxu0 }
 0x3fb   :  { %v8381_v30 = vadd.f32 %v3459_v54, %v8217_v9  ;;  %v3120_v13 = vsel %vm631_vm10, %v2925_v10, %v9395_v26  ;;  %v3812_v47 = vadd.f32 %v3656_v6, %v8122_v1  ;;  %v3659_v18 = vrot.slane %v3070_v25, 6 }
 0x3fc   :  { %v4224_v53 = vadd.f32 %v7839_v4, %v4171_v17  ;;  %v4386_v17 = vld.sshfl [vmem:[#allocation1] sm:$0xff pattern:$0x75316420]  ;;  %v5456_v40 = vrot.slane %v3066_v5, 11  ;;  %v3924_v38 = vrot.slane %v3070_v25, 7  ;;  %v8389_v34 = vadd.f32 %v3460_v7, %v8305_v20 }
 0x3fd   :  { %v4124_v10 = vadd.f32 %v4028_v15, %v3811_v12  ;;  %v3454_v26 = vrot.slane %v8360_v24, 4  ;;  %v8397_v1 = vrot.slane %v9250_v51, 9  ;;  %v5410_v6 = vrot.slane %v3120_v13, 9 }
 0x3fe   :  { %v5690_v11 = vpop.eup %5689  ;;  %5691 = vtanh.f32 %v4224_v53  ;;  %v4387_v55 = vld.sshfl [vmem:[#allocation1 + $0x10] sm:$0xff pattern:$0x75316420]  ;;  %v9397_v53 = vld [vmem:[#allocation26_spill] sm:$0xff]  ;;  %v9398_v20 = vrot.slane %v8190_v21, 4  ;;  %v3073_v24 = vsel %vm631_vm10, %v8181_v8, %v2912_v48  ;;  %v4125_v15 = vadd.f32 %v4029_v56, %v3812_v47 }
 0x3ff   :  { %4382 = vst [vmem:[#allocation1 + $0x20] ss:$2 sm:$0xff] %v5690_v11  ;;  %v4454_v43 = vpack.c.bf16 %v4387_v55, %v4386_v17  ;;  %v8401_v5 = vsel %vm631_vm10, %v2927_v46, %v9397_v53  ;;  %v3383_v13 = vrot.slane %v9251_v29, 4  ;;  %v3660_v17 = vsel %vm7764_vm8, %v5432_v23, %v3659_v18 }
 0x400   :  { %v3364_v7 = vsel %vm7317_vm13, %v9398_v20, %v3363_v19  ;;  %v2914_v55 = vrot.slane %v8221_v39, 4  ;;  %v3925_v21 = vsel %vm7770_vm15, %v5456_v40, %v3924_v38  ;;  %v9252_v19 = vrot.slane %v8401_v5, 4  ;;  %v8419_v20 = vpop.f32.mrf.mxu1  ;;  %v9399_v40 = vld [vmem:[#allocation8_spill] sm:$0xff] }
 0x401   :  { %v2657_v25 = vpop.f32.mrf.mxu2  ;;  %4538 = vmatmul.bf16.gmra.mxu3 %v4454_v43  ;;  %v3661_v43 = vrot.slane %v3659_v18, 4  ;;  %v3926_v47 = vrot.slane %v3924_v38, 4  ;;  %v3927_v23 = vrot.slane %v3073_v24, 7  ;;  %v3813_v18 = vadd.f32 %v3660_v17, %v8153_v41 }
 0x402   :  { %v3064_v12 = vrot.slane %v2657_v25, 4  ;;  %v4172_v11 = vadd.f32 %v4124_v10, %v2657_v25  ;;  %v3076_v10 = vsel %vm631_vm10, %v2912_v48, %v8181_v8  ;;  %v3662_v25 = vrot.slane %v3073_v24, 6 }
 0x403   :  { %v4030_v29 = vrot.slane %v3925_v21, 4  ;;  %v3082_v38 = vsel %vm631_vm10, %v2914_v55, %v8238_v22  ;;  %v9400_v8 = vrot.slane %v8126_v36, 4  ;;  %v3457_v24 = vrot.slane %v3364_v7, 4 }
 0x404   :  { %v5692_v32 = vpop.eup %5691  ;;  %v4173_v51 = vadd.f32 %v4125_v15, %v3064_v12  ;;  %v4225_v56 = vadd.f32 %v8328_v58, %v4172_v11  ;;  %v3079_v12 = vsel %vm631_vm10, %v8238_v22, %v2914_v55  ;;  %v8442_v15 = vsel %vm631_vm10, %v9397_v53, %v2927_v46  ;;  %v8449_v11 = vpop.f32.mrf.mxu3 }
 0x405   :  { %4383 = vst [vmem:[#allocation1 + $0x21] ss:$2 sm:$0xff] %v5692_v32  ;;  %v8434_v48 = vadd.f32 %v3454_v26, %v9400_v8  ;;  %v8446_v41 = vrot.slane %v9252_v19, 5  ;;  %v2931_v22 = vrot.slane %v8209_v35, 4  ;;  %v3077_v36 = vrot.slane %v3076_v10, 4  ;;  %v8455_v53 = vpop.f32.mrf.mxu0 }
 0x406   :  { %v4226_v39 = vadd.f32 %v7839_v4, %v4173_v51  ;;  %5693 = vtanh.f32 %v4225_v56  ;;  %5383 = vmatmul.msk.bf16.gmra.mxu2 %vm366_vm4, %v9399_v40  ;;  %v8438_v51 = vsel %vm7317_vm13, %v3383_v13, %v5410_v6  ;;  %v3663_v7 = vsel %vm7764_vm8, %v3661_v43, %v3662_v25 }
 0x407   :  { %v3928_v6 = vsel %vm7770_vm15, %v3926_v47, %v3927_v23  ;;  %v3083_v13 = vrot.slane %v3082_v38, 4  ;;  %v3931_v46 = vrot.slane %v3079_v12, 7  ;;  %v4126_v55 = vadd.f32 %v4030_v29, %v3813_v18  ;;  %v9402_v38 = vld [vmem:[#allocation29_spill] sm:$0xff] }
 0x408   :  { %5695 = vtanh.f32 %v4226_v39  ;;  %v5411_v21 = vrot.slane %v8442_v15, 9  ;;  %v2929_v35 = vrot.slane %v8155_v31, 4  ;;  %v3666_v32 = vrot.slane %v3079_v12, 6 }
 0x409   :  { %v2660_v26 = vpop.f32.mrf.mxu2  ;;  %v9401_v56 = vrot.slane %v8142_v42, 4  ;;  %v2916_v43 = vrot.slane %v8279_v3, 4  ;;  %v3814_v47 = vadd.f32 %v3663_v7, %v8335_v45  ;;  %v4031_v23 = vrot.slane %v3928_v6, 4 }
 0x40a   :  { %v3071_v17 = vrot.slane %v2660_v26, 4  ;;  %v3463_v40 = vrot.slane %v8438_v51, 4  ;;  %v8468_v29 = vsel %vm631_vm10, %v9402_v38, %v2931_v22  ;;  %v5433_v18 = vrot.slane %v3077_v36, 10  ;;  %v9403_v26 = vld [vmem:[#allocation27_spill] sm:$0xff] }
 0x40b   :  { %v8461_v10 = vadd.f32 %v3457_v24, %v9401_v56  ;;  %v5457_v31 = vrot.slane %v3077_v36, 11  ;;  %v3389_v42 = vsel %vm7317_vm13, %v5411_v21, %v8446_v41  ;;  %v3933_v8 = vrot.slane %v3931_v46, 4  ;;  %v8473_v24 = vpop.f32.mrf.mxu1 }
 0x40c   :  { %v5694_v39 = vpop.eup %5693  ;;  %v4174_v25 = vadd.f32 %v4126_v55, %v3071_v17  ;;  %v3934_v3 = vrot.slane %v3083_v13, 7  ;;  %v8478_v51 = vsel %vm631_vm10, %v2929_v35, %v9403_v26  ;;  %v3140_v7 = vsel %vm631_vm10, %v2931_v22, %v9402_v38 }
 0x40d   :  { %4384 = vst [vmem:[#allocation1 + $0x30] ss:$2 sm:$0xff] %v5694_v39  ;;  %v3668_v36 = vrot.slane %v3666_v32, 4  ;;  %v3669_v6 = vrot.slane %v3083_v13, 6  ;;  %v9253_v17 = vrot.slane %v8468_v29, 5  ;;  %v3089_v55 = vsel %vm631_vm10, %v2916_v43, %v8300_v50 }
 0x40e   :  { %v5696_v12 = vpop.eup %5695  ;;  %v4227_v45 = vadd.f32 %v8328_v58, %v4174_v25  ;;  %v4127_v21 = vadd.f32 %v4031_v23, %v3814_v47  ;;  %v2933_v56 = vrot.slane %v8268_v33, 4  ;;  %v3667_v25 = vsel %vm7764_vm8, %v5433_v18, %v3666_v32 }
 0x40f   :  { %4385 = vst [vmem:[#allocation1 + $0x31] ss:$2 sm:$0xff] %v5696_v12  ;;  %v3932_v19 = vsel %vm7770_vm15, %v5457_v31, %v3931_v46  ;;  %v9404_v22 = vrot.slane %v8217_v9, 5  ;;  %v3464_v38 = vrot.slane %v3389_v42, 4  ;;  %v3086_v47 = vsel %vm631_vm10, %v8300_v50, %v2916_v43  ;;  %v8502_v12 = vpop.f32.mrf.mxu3  ;;  %v8508_v31 = vpop.f32.mrf.mxu0 }
 0x410   :  { %5697 = vtanh.f32 %v4227_v45  ;;  %v3935_v33 = vsel %vm7770_vm15, %v3933_v8, %v3934_v3  ;;  %v9254_v32 = vrot.slane %v8478_v51, 4  ;;  %v5413_v18 = vrot.slane %v3140_v7, 9  ;;  %v9405_v8 = vld [vmem:[#allocation30_spill] sm:$0xff] }
 0x411   :  { %v2662_v39 = vpop.f32.mrf.mxu2  ;;  %v8495_v13 = vsel %vm7317_vm13, %v8294_v14, %v9404_v22  ;;  %v3670_v9 = vsel %vm7764_vm8, %v3668_v36, %v3669_v6  ;;  %v3090_v46 = vrot.slane %v3089_v55, 4  ;;  %v3397_v14 = vrot.slane %v9253_v17, 4 }
 0x412   :  { %v4175_v23 = vadd.f32 %v4127_v21, %v2662_v39  ;;  %v3815_v43 = vadd.f32 %v3667_v25, %v8434_v48  ;;  %v4032_v42 = vrot.slane %v3932_v19, 4  ;;  %v8514_v3 = vsel %vm631_vm10, %v2933_v56, %v9405_v8  ;;  %v9406_v39 = vld [vmem:[#allocation41_spill] sm:$0xff] }
 0x413   :  { %v5434_v45 = vrot.slane %v3086_v47, 10  ;;  %v2918_v7 = vrot.slane %v8323_v49, 4  ;;  %v4033_v21 = vrot.slane %v3935_v33, 4  ;;  %v8518_v6 = vadd.f32 %v3463_v40, %v8349_v37  ;;  %v4388_v19 = vld.sshfl [vmem:[#allocation1 + $0x20] sm:$0xff pattern:$0x75316420] }
 0x414   :  { %v4228_v50 = vadd.f32 %v7839_v4, %v4175_v23  ;;  %v8522_v55 = vsel %vm631_vm10, %v9403_v26, %v2929_v35  ;;  %v3816_v48 = vadd.f32 %v3670_v9, %v9406_v39  ;;  %v3673_v22 = vrot.slane %v3090_v46, 6  ;;  %v8531_v35 = vpop.f32.mrf.mxu1 }
 0x415   :  { %v5458_v23 = vrot.slane %v3086_v47, 11  ;;  %v3938_v17 = vrot.slane %v3090_v46, 7  ;;  %v8528_v40 = vsel %vm631_vm10, %v9405_v8, %v2933_v56  ;;  %v9255_v33 = vrot.slane %v8514_v3, 4 }
 0x416   :  { %v5698_v36 = vpop.eup %5697  ;;  %5699 = vtanh.f32 %v4228_v50  ;;  %v4389_v25 = vld.sshfl [vmem:[#allocation1 + $0x30] sm:$0xff pattern:$0x75316420]  ;;  %v4128_v26 = vadd.f32 %v4032_v42, %v3815_v43  ;;  %v8534_v9 = vadd.f32 %v3464_v38, %v8442_v15  ;;  %v8539_v47 = vrot.slane %v9254_v32, 9 }
 0x417   :  { %4390 = vst [vmem:[#allocation1] ss:$2 sm:$0xff] %v5698_v36  ;;  %v4455_v54 = vpack.c.bf16 %v4389_v25, %v4388_v19  ;;  %v3399_v46 = vsel %vm7317_vm13, %v3397_v14, %v5413_v18  ;;  %v3093_v56 = vsel %vm631_vm10, %v8364_v52, %v2918_v7  ;;  %v4129_v39 = vadd.f32 %v4033_v21, %v3816_v48  ;;  %v8556_v48 = vpop.f32.mrf.mxu3  ;;  %v8560_v32 = vpop.f32.mrf.mxu0 }
 0x418   :  { %v5414_v15 = vrot.slane %v8528_v40, 9  ;;  %v3674_v38 = vsel %vm7764_vm8, %v5434_v45, %v3673_v22  ;;  %v2920_v42 = vrot.slane %v8392_v61, 4  ;;  %v3939_v19 = vsel %vm7770_vm15, %v5458_v23, %v3938_v17 }
 0x419   :  { %v2665_v36 = vpop.f32.mrf.mxu2  ;;  %4543 = vmatmul.bf16.gmra.mxu3 %v4455_v54  ;;  %v8553_v54 = vrot.slane %v9255_v33, 5  ;;  %v3675_v18 = vrot.slane %v3673_v22, 4  ;;  %v3096_v45 = vsel %vm631_vm10, %v2918_v7, %v8364_v52  ;;  %v3941_v61 = vrot.slane %v3093_v56, 7 }
 0x41a   :  { %v3084_v8 = vrot.slane %v2665_v36, 4  ;;  %v4176_v43 = vadd.f32 %v4128_v26, %v2665_v36  ;;  %v3940_v26 = vrot.slane %v3938_v17, 4  ;;  %v3676_v36 = vrot.slane %v3093_v56, 6 }
 0x41b   :  { %v3817_v33 = vadd.f32 %v3674_v38, %v8244_v27  ;;  %v4034_v22 = vrot.slane %v3939_v19, 4  ;;  %v3102_v17 = vsel %vm631_vm10, %v2920_v42, %v8419_v20  ;;  %v3458_v52 = vrot.slane %v8495_v13, 4 }
 0x41c   :  { %v5700_v25 = vpop.eup %5699  ;;  %v4177_v14 = vadd.f32 %v4129_v39, %v3084_v8  ;;  %v4229_v21 = vadd.f32 %v8328_v58, %v4176_v43  ;;  %v3467_v8 = vrot.slane %v3399_v46, 4  ;;  %v3099_v39 = vsel %vm631_vm10, %v8419_v20, %v2920_v42 }
 0x41d   :  { %4391 = vst [vmem:[#allocation1 + $0x1] ss:$2 sm:$0xff] %v5700_v25  ;;  %v3403_v7 = vsel %vm7317_vm13, %v5414_v15, %v8553_v54  ;;  %v2935_v56 = vrot.slane %v8321_v16, 4  ;;  %v9407_v43 = vrot.slane %v8370_v62, 5  ;;  %v9408_v27 = vrot.slane %v8314_v59, 4  ;;  %v8586_v25 = vpop.f32.mrf.mxu1 }
 0x41e   :  { %v4230_v23 = vadd.f32 %v7839_v4, %v4177_v14  ;;  %5701 = vtanh.f32 %v4229_v21  ;;  %v2937_v38 = vrot.slane %v8386_v2, 4  ;;  %v3097_v20 = vrot.slane %v3096_v45, 4 }
 0x41f   :  { %v8579_v46 = vsel %vm7317_vm13, %v9408_v27, %v9407_v43  ;;  %v3677_v13 = vsel %vm7764_vm8, %v3675_v18, %v3676_v36  ;;  %v3942_v15 = vsel %vm7770_vm15, %v3940_v26, %v3941_v61  ;;  %v3103_v16 = vrot.slane %v3102_v17, 4  ;;  %v9410_v27 = vld [vmem:[#allocation34_spill] sm:$0xff] }
 0x420   :  { %5703 = vtanh.f32 %v4230_v23  ;;  %v3945_v19 = vrot.slane %v3099_v39, 7  ;;  %v4130_v59 = vadd.f32 %v4034_v22, %v3817_v33  ;;  %v8589_v14 = vadd.f32 %v3467_v8, %v8468_v29 }
 0x421   :  { %v2667_v42 = vpop.f32.mrf.mxu2  ;;  %v3680_v21 = vrot.slane %v3099_v39, 6  ;;  %v9409_v2 = vrot.slane %v8234_v0, 4  ;;  %v3461_v23 = vrot.slane %v8579_v46, 4  ;;  %v2922_v18 = vrot.slane %v8455_v53, 4 }
 0x422   :  { %v3091_v62 = vrot.slane %v2667_v42, 4  ;;  %v3818_v26 = vadd.f32 %v3677_v13, %v8461_v10  ;;  %v4035_v61 = vrot.slane %v3942_v15, 4  ;;  %v3468_v17 = vrot.slane %v3403_v7, 4 }
 0x423   :  { %v3554_v45 = vadd.f32 %v3458_v52, %v9409_v2  ;;  %v8598_v33 = vsel %vm631_vm10, %v9410_v27, %v2937_v38  ;;  %v5435_v22 = vrot.slane %v3097_v20, 10  ;;  %v5459_v8 = vrot.slane %v3097_v20, 11  ;;  %v9411_v52 = vld [vmem:[#allocation31_spill] sm:$0xff] }
 0x424   :  { %v5702_v43 = vpop.eup %5701  ;;  %v4178_v36 = vadd.f32 %v4130_v59, %v3091_v62  ;;  %v4519_v39 = vpop.f32.mrf.mxu3  ;;  %v8602_v42 = vsel %vm631_vm10, %v9411_v52, %v2935_v56  ;;  %v3947_v2 = vrot.slane %v3945_v19, 4  ;;  %v3948_v53 = vrot.slane %v3103_v16, 7 }
 0x425   :  { %4392 = vst [vmem:[#allocation1 + $0x10] ss:$2 sm:$0xff] %v5702_v43  ;;  %v8607_v10 = vsel %vm631_vm10, %v2935_v56, %v9411_v52  ;;  %v3160_v7 = vsel %vm631_vm10, %v2937_v38, %v9410_v27  ;;  %v3682_v13 = vrot.slane %v3680_v21, 4  ;;  %v3683_v20 = vrot.slane %v3103_v16, 6  ;;  %v8614_v43 = vpop.f32.mrf.mxu0 }
 0x426   :  { %v5704_v0 = vpop.eup %5703  ;;  %v4231_v62 = vadd.f32 %v8328_v58, %v4178_v36  ;;  %v9256_v15 = vrot.slane %v8598_v33, 5  ;;  %v3109_v59 = vsel %vm631_vm10, %v2922_v18, %v8473_v24  ;;  %v4131_v49 = vadd.f32 %v4035_v61, %v3818_v26 }
 0x427   :  { %4393 = vst [vmem:[#allocation1 + $0x11] ss:$2 sm:$0xff] %v5704_v0  ;;  %v8618_v56 = vadd.f32 %v3468_v17, %v8528_v40  ;;  %v3681_v38 = vsel %vm7764_vm8, %v5435_v22, %v3680_v21  ;;  %v3946_v16 = vsel %vm7770_vm15, %v5459_v8, %v3945_v19  ;;  %v3155_v27 = vrot.slane %v8607_v10, 4  ;;  %v8634_v19 = vpop.f32.mrf.mxu1 }
 0x428   :  { %5705 = vtanh.f32 %v4231_v62  ;;  %v3106_v0 = vsel %vm631_vm10, %v8473_v24, %v2922_v18  ;;  %v3949_v26 = vsel %vm7770_vm15, %v3947_v2, %v3948_v53  ;;  %v5416_v40 = vrot.slane %v3160_v7, 9  ;;  %v8639_v24 = vld [vmem:[%s9187_s9] ss:$0 sm:$0xff] }
 0x429   :  { %v2670_v52 = vpop.f32.mrf.mxu2  ;;  %v3684_v17 = vsel %vm7764_vm8, %v3682_v13, %v3683_v20  ;;  %v3110_v62 = vrot.slane %v3109_v59, 4  ;;  %v3411_v21 = vrot.slane %v9256_v15, 4  ;;  %v3819_v18 = vadd.f32 %v3681_v38, %v3554_v45  ;;  %v4398_v15 = vld.sshfl [vmem:[#allocation1] sm:$0xff pattern:$0x75316420] }
 0x42a   :  { %v4179_v50 = vadd.f32 %v4131_v49, %v2670_v52  ;;  %v4036_v22 = vrot.slane %v3946_v16, 4  ;;  %v2939_v8 = vrot.slane %v8449_v11, 4  ;;  %v5436_v2 = vrot.slane %v3106_v0, 10 }
 0x42b   :  { %v2924_v53 = vrot.slane %v8508_v31, 4  ;;  %v4037_v13 = vrot.slane %v3949_v26, 4  ;;  %v3820_v52 = vadd.f32 %v3684_v17, %v8381_v30  ;;  %v9412_v61 = vrot.slane %v8349_v37, 5 }
 0x42c   :  { %v4232_v49 = vadd.f32 %v7839_v4, %v4179_v50  ;;  %v4521_v7 = vpop.f32.mrf.mxu3  ;;  %v3687_v11 = vrot.slane %v3110_v62, 6  ;;  %v5460_v45 = vrot.slane %v3106_v0, 11  ;;  %v3952_v38 = vrot.slane %v3110_v62, 7 }
 0x42d   :  { %v4583_v59 = vadd.f32 %v8639_v24, %v4521_v7  ;;  %v3382_v50 = vsel %vm7317_vm13, %v8397_v1, %v9412_v61  ;;  %v8653_v16 = vrot.slane %v3155_v27, 9  ;;  %v4582_v26 = vadd.f32 %v8639_v24, %v4519_v39 }
 0x42e   :  { %v5706_v20 = vpop.eup %5705  ;;  %5707 = vtanh.f32 %v4232_v49  ;;  %v4399_v36 = vld.sshfl [vmem:[#allocation1 + $0x10] sm:$0xff pattern:$0x75316420]  ;;  %v4132_v30 = vadd.f32 %v4036_v22, %v3819_v18  ;;  %v9413_v17 = vrot.slane %v8277_v63, 4  ;;  %v3413_v1 = vsel %vm7317_vm13, %v3411_v21, %v5416_v40  ;;  %v8672_v63 = vpop.f32.mrf.mxu0  ;;  %v9416_v21 = vld [vmem:[#allocation36_spill] sm:$0xff] }
 0x42f   :  { %4394 = vst [vmem:[#allocation1 + $0x20] ss:$2 sm:$0xff] %v5706_v20  ;;  %v4456_v31 = vpack.c.bf16 %v4399_v36, %v4398_v15  ;;  %v3113_v0 = vsel %vm631_vm10, %v8531_v35, %v2924_v53  ;;  %v3462_v15 = vrot.slane %v3382_v50, 4  ;;  %v9414_v36 = vrot.slane %v8522_v55, 5 }
 0x430   :  { %v3557_v37 = vadd.f32 %v3461_v23, %v9413_v17  ;;  %v9415_v62 = vrot.slane %v8446_v41, 4  ;;  %5709 = vtanh.f32 %v4583_v59  ;;  %v4133_v23 = vadd.f32 %v4037_v13, %v3820_v52 }
 0x431   :  { %v2672_v61 = vpop.f32.mrf.mxu2  ;;  %4548 = vmatmul.bf16.gmra.mxu3 %v4456_v31  ;;  %v8676_v49 = vsel %vm631_vm10, %v2939_v8, %v9416_v21  ;;  %v3688_v18 = vsel %vm7764_vm8, %v5436_v2, %v3687_v11  ;;  %v2926_v55 = vrot.slane %v8560_v32, 4  ;;  %v3953_v41 = vsel %vm7770_vm15, %v5460_v45, %v3952_v38 }
 0x432   :  { %v8670_v39 = vsel %vm7317_vm13, %v9415_v62, %v9414_v36  ;;  %v3104_v46 = vrot.slane %v2672_v61, 4  ;;  %v4180_v40 = vadd.f32 %v4132_v30, %v2672_v61  ;;  %v3689_v7 = vrot.slane %v3687_v11, 4  ;;  %v8686_v30 = vpop.f32.mrf.mxu1 }
 0x433   :  { %5711 = vtanh.f32 %v4582_v26  ;;  %v3954_v13 = vrot.slane %v3952_v38, 4  ;;  %v3116_v52 = vsel %vm631_vm10, %v2924_v53, %v8531_v35  ;;  %v3690_v50 = vrot.slane %v3113_v0, 6 }
 0x434   :  { %v5708_v22 = vpop.eup %5707  ;;  %v4181_v20 = vadd.f32 %v4133_v23, %v3104_v46  ;;  %v4233_v59 = vadd.f32 %v8328_v58, %v4180_v40  ;;  %v3955_v31 = vrot.slane %v3113_v0, 7  ;;  %v3821_v2 = vadd.f32 %v3688_v18, %v8389_v34 }
 0x435   :  { %4395 = vst [vmem:[#allocation1 + $0x21] ss:$2 sm:$0xff] %v5708_v22  ;;  %v4038_v45 = vrot.slane %v3953_v41, 4  ;;  %v3471_v11 = vrot.slane %v3413_v1, 4  ;;  %v3119_v26 = vsel %vm631_vm10, %v8586_v25, %v2926_v55  ;;  %v3122_v38 = vsel %vm631_vm10, %v2926_v55, %v8586_v25 }
 0x436   :  { %v4234_v32 = vadd.f32 %v7839_v4, %v4181_v20  ;;  %5713 = vtanh.f32 %v4233_v59  ;;  %v9417_v35 = vrot.slane %v8343_v60, 4  ;;  %v5710_v17 = vpop.eup %5709  ;;  %v8698_v0 = vsel %vm631_vm10, %v9416_v21, %v2939_v8 }
 0x437   :  { %v9257_v61 = vrot.slane %v8676_v49, 4  ;;  %v3465_v34 = vrot.slane %v8670_v39, 4  ;;  %v3117_v1 = vrot.slane %v3116_v52, 4  ;;  %v2928_v36 = vrot.slane %v8614_v43, 4 }
 0x438   :  { %v3558_v53 = vadd.f32 %v3462_v15, %v9417_v35  ;;  %5715 = vtanh.f32 %v4234_v32  ;;  %v3691_v25 = vsel %vm7764_vm8, %v3689_v7, %v3690_v50  ;;  %v3956_v60 = vsel %vm7770_vm15, %v3954_v13, %v3955_v31  ;;  %v8715_v7 = vpop.f32.mrf.mxu0 }
 0x439   :  { %v2675_v62 = vpop.f32.mrf.mxu2  ;;  %v5712_v15 = vpop.eup %5711  ;;  %v3123_v46 = vrot.slane %v3122_v38, 4  ;;  %v3959_v23 = vrot.slane %v3119_v26, 7  ;;  %v4134_v40 = vadd.f32 %v4038_v45, %v3821_v2  ;;  %v8708_v21 = vadd.f32 %v3471_v11, %v8598_v33 }
 0x43a   :  { %v3111_v8 = vrot.slane %v2675_v62, 4  ;;  %v5417_v18 = vrot.slane %v8698_v0, 9  ;;  %v3694_v55 = vrot.slane %v3119_v26, 6  ;;  %v4636_v41 = vrot.slane %v5710_v17, 4 }
 0x43b   :  { %v8713_v22 = vrot.slane %v9257_v61, 5  ;;  %v3822_v59 = vadd.f32 %v3691_v25, %v3557_v37  ;;  %v4039_v13 = vrot.slane %v3956_v60, 4  ;;  %v5437_v52 = vrot.slane %v3117_v1, 10 }
 0x43c   :  { %v5714_v43 = vpop.eup %5713  ;;  %v4182_v20 = vadd.f32 %v4134_v40, %v3111_v8  ;;  %v5461_v50 = vrot.slane %v3117_v1, 11  ;;  %v3129_v31 = vsel %vm631_vm10, %v2928_v36, %v8634_v19  ;;  %v4630_v32 = vrot.slane %v5712_v15, 4  ;;  %v4524_v2 = vpop.f32.mrf.mxu3 }
 0x43d   :  { %4396 = vst [vmem:[#allocation1 + $0x30] ss:$2 sm:$0xff] %v5714_v43  ;;  %v3961_v11 = vrot.slane %v3959_v23, 4  ;;  %v3962_v26 = vrot.slane %v3123_v46, 7  ;;  %v4584_v35 = vadd.f32 %v8639_v24, %v4524_v2  ;;  %v2941_v62 = vrot.slane %v8502_v12, 4  ;;  %v8727_v40 = vpop.f32.mrf.mxu1 }
 0x43e   :  { %v5716_v45 = vpop.eup %5715  ;;  %v4235_v38 = vadd.f32 %v8328_v58, %v4182_v20  ;;  %v3696_v8 = vrot.slane %v3694_v55, 4  ;;  %v3697_v37 = vrot.slane %v3123_v46, 6  ;;  %v4637_v25 = vmax.f32 %v5710_v17, %v4636_v41 }
 0x43f   :  { %4397 = vst [vmem:[#allocation1 + $0x31] ss:$2 sm:$0xff] %v5716_v45  ;;  %v8725_v1 = vsel %vm7317_vm13, %v5417_v18, %v8713_v22  ;;  %v3130_v60 = vrot.slane %v3129_v31, 4  ;;  %v4135_v43 = vadd.f32 %v4039_v13, %v3822_v59  ;;  %v4631_v61 = vmax.f32 %v5712_v15, %v4630_v32  ;;  %v9418_v15 = vld [vmem:[#allocation38_spill] sm:$0xff] }
 0x440   :  { %5717 = vtanh.f32 %v4235_v38  ;;  %v3695_v2 = vsel %vm7764_vm8, %v5437_v52, %v3694_v55  ;;  %v3960_v17 = vsel %vm7770_vm15, %v5461_v50, %v3959_v23  ;;  %v3418_v46 = vrot.slane %v8713_v22, 4 }
 0x441   :  { %5719 = vtanh.f32 %v4584_v35  ;;  %v2677_v20 = vpop.f32.mrf.mxu2  ;;  %v3126_v18 = vsel %vm631_vm10, %v8634_v19, %v2928_v36  ;;  %v3963_v31 = vsel %vm7770_vm15, %v3961_v11, %v3962_v26  ;;  %v3472_v59 = vrot.slane %v8725_v1, 4  ;;  %v8751_v35 = vpop.f32.mrf.mxu0 }
 0x442   :  { %v4183_v41 = vadd.f32 %v4135_v43, %v2677_v20  ;;  %v8743_v13 = vsel %vm631_vm10, %v9418_v15, %v2941_v62  ;;  %v3698_v23 = vsel %vm7764_vm8, %v3696_v8, %v3697_v37  ;;  %v4638_v55 = vrot.slane %v4637_v25, 2  ;;  %v4400_v20 = vld.sshfl [vmem:[#allocation1 + $0x20] sm:$0xff pattern:$0x75316420] }
 0x443   :  { %v2930_v52 = vrot.slane %v8672_v63, 4  ;;  %v3823_v36 = vadd.f32 %v3695_v2, %v3558_v53  ;;  %v4040_v50 = vrot.slane %v3960_v17, 4  ;;  %v5438_v32 = vrot.slane %v3126_v18, 10 }
 0x444   :  { %v4236_v19 = vadd.f32 %v7839_v4, %v4183_v41  ;;  %v8749_v45 = vrot.slane %v3130_v60, 6  ;;  %v4632_v11 = vrot.slane %v4631_v61, 2  ;;  %v4041_v26 = vrot.slane %v3963_v31, 4 }
 0x445   :  { %v3824_v43 = vadd.f32 %v3698_v23, %v8518_v6  ;;  %v9419_v37 = vrot.slane %v8401_v5, 4  ;;  %v9420_v53 = vrot.slane %v8468_v29, 5  ;;  %v5462_v41 = vrot.slane %v3126_v18, 11 }
 0x446   :  { %v5718_v38 = vpop.eup %5717  ;;  %5721 = vtanh.f32 %v4236_v19  ;;  %v4401_v8 = vld.sshfl [vmem:[#allocation1 + $0x30] sm:$0xff pattern:$0x75316420]  ;;  %v3966_v31 = vrot.slane %v3130_v60, 7  ;;  %v4639_v19 = vmax.f32 %v4637_v25, %v4638_v55  ;;  %v3133_v5 = vsel %vm631_vm10, %v8686_v30, %v2930_v52  ;;  %v8774_v25 = vpop.f32.mrf.mxu1 }
 0x447   :  { %v8758_v63 = vadd.f32 %v3465_v34, %v9419_v37  ;;  %v8765_v2 = vsel %vm7317_vm13, %v8539_v47, %v9420_v53  ;;  %v5720_v17 = vpop.eup %5719  ;;  %4402 = vst [vmem:[#allocation1] ss:$2 sm:$0xff] %v5718_v38  ;;  %v4457_v6 = vpack.c.bf16 %v4401_v8, %v4400_v20  ;;  %v2932_v39 = vrot.slane %v8715_v7, 4  ;;  %v4526_v55 = vpop.f32.mrf.mxu3 }
 0x448   :  { %v4642_v34 = vrot.slane %v5720_v17, 4  ;;  %v4136_v23 = vadd.f32 %v4040_v50, %v3823_v36  ;;  %v3702_v29 = vsel %vm7764_vm8, %v5438_v32, %v8749_v45  ;;  %v3703_v47 = vrot.slane %v8749_v45, 4 }
 0x449   :  { %v3968_v37 = vrot.slane %v3966_v31, 4  ;;  %v4633_v53 = vmax.f32 %v4631_v61, %v4632_v11  ;;  %v2680_v18 = vpop.f32.mrf.mxu2  ;;  %4553 = vmatmul.bf16.gmra.mxu3 %v4457_v6  ;;  %v4137_v20 = vadd.f32 %v4041_v26, %v3824_v43  ;;  %v3136_v7 = vsel %vm631_vm10, %v2930_v52, %v8686_v30 }
 0x44a   :  { %v4643_v60 = vmax.f32 %v5720_v17, %v4642_v34  ;;  %v3124_v38 = vrot.slane %v2680_v18, 4  ;;  %v4184_v8 = vadd.f32 %v4136_v23, %v2680_v18  ;;  %v3704_v36 = vrot.slane %v3133_v5, 6 }
 0x44b   :  { %v3967_v50 = vsel %vm7770_vm15, %v5462_v41, %v3966_v31  ;;  %v4640_v32 = vrot.slane %v4639_v19, 1  ;;  %v8782_v61 = vsel %vm631_vm10, %v8727_v40, %v2932_v39  ;;  %v3969_v34 = vrot.slane %v3133_v5, 7 }
 0x44c   :  { %v5722_v45 = vpop.eup %5721  ;;  %v4644_v11 = vrot.slane %v4643_v60, 2  ;;  %v4185_v6 = vadd.f32 %v4137_v20, %v3124_v38  ;;  %v4237_v17 = vadd.f32 %v8328_v58, %v4184_v8  ;;  %v3142_v26 = vsel %vm631_vm10, %v2932_v39, %v8727_v40  ;;  %v8795_v39 = vpop.f32.mrf.mxu0 }
 0x44d   :  { %4403 = vst [vmem:[#allocation1 + $0x1] ss:$2 sm:$0xff] %v5722_v45  ;;  %v4585_v30 = vadd.f32 %v8639_v24, %v4526_v55  ;;  %v4634_v52 = vrot.slane %v4633_v53, 1  ;;  %v3825_v41 = vadd.f32 %v3702_v29, %v8534_v9  ;;  %v4042_v31 = vrot.slane %v3967_v50, 4 }
 0x44e   :  { %v4238_v43 = vadd.f32 %v7839_v4, %v4185_v6  ;;  %5723 = vtanh.f32 %v4237_v17  ;;  %v3137_v23 = vrot.slane %v3136_v7, 4  ;;  %v3708_v18 = vrot.slane %v8782_v61, 6 }
 0x44f   :  { %v2934_v38 = vrot.slane %v8751_v35, 4  ;;  %v8792_v20 = vmax.f32 %v4639_v19, %v4640_v32  ;;  %v3143_v5 = vrot.slane %v3142_v26, 4  ;;  %v3973_v40 = vrot.slane %v8782_v61, 7 }
 0x450   :  { %5725 = vtanh.f32 %v4238_v43  ;;  %v4645_v55 = vmax.f32 %v4643_v60, %v4644_v11  ;;  %v8797_v45 = vmax.f32 %v4633_v53, %v4634_v52  ;;  %v3705_v9 = vsel %vm7764_vm8, %v3703_v47, %v3704_v36  ;;  %v8806_v53 = vpop.f32.mrf.mxu1 }
 0x451   :  { %5727 = vtanh.f32 %v4585_v30  ;;  %v2682_v8 = vpop.f32.mrf.mxu2  ;;  %v3970_v29 = vsel %vm7770_vm15, %v3968_v37, %v3969_v34  ;;  %v4138_v19 = vadd.f32 %v4042_v31, %v3825_v41  ;;  %v3466_v50 = vrot.slane %v8765_v2, 4 }
 0x452   :  { %v3131_v35 = vrot.slane %v2682_v8, 4  ;;  %v4646_v7 = vrot.slane %v4645_v55, 1  ;;  %v5439_v32 = vrot.slane %v3137_v23, 10  ;;  %v5463_v61 = vrot.slane %v3137_v23, 11 }
 0x453   :  { %v3710_v6 = vrot.slane %v3708_v18, 4  ;;  %v4883_v60 = vmul.f32 %v8792_v20, %v8792_v20  ;;  %v3826_v47 = vadd.f32 %v3705_v9, %v8758_v63  ;;  %v4043_v37 = vrot.slane %v3970_v29, 4 }
 0x454   :  { %v5724_v11 = vpop.eup %5723  ;;  %v4186_v17 = vadd.f32 %v4138_v19, %v3131_v35  ;;  %v8808_v26 = vmax.f32 %v4645_v55, %v4646_v7  ;;  %v3711_v36 = vrot.slane %v3143_v5, 6  ;;  %v3975_v34 = vrot.slane %v3973_v40, 4  ;;  %v4529_v30 = vpop.f32.mrf.mxu3 }
 0x455   :  { %v3149_v2 = vsel %vm631_vm10, %v2934_v38, %v8774_v25  ;;  %4404 = vst [vmem:[#allocation1 + $0x10] ss:$2 sm:$0xff] %v5724_v11  ;;  %v4882_v52 = vmul.f32 %v8797_v45, %v8797_v45  ;;  %v3976_v41 = vrot.slane %v3143_v5, 7  ;;  %v4586_v23 = vadd.f32 %v8639_v24, %v4529_v30 }
 0x456   :  { %v5726_v43 = vpop.eup %5725  ;;  %v4239_v31 = vadd.f32 %v8328_v58, %v4186_v17  ;;  %v4884_v63 = vmul.f32 %v8808_v26, %v8808_v26  ;;  %v3419_v8 = vrot.slane %v8743_v13, 5  ;;  %v3146_v9 = vsel %vm631_vm10, %v8774_v25, %v2934_v38 }
 0x457   :  { %v5728_v55 = vpop.eup %5727  ;;  %4405 = vst [vmem:[#allocation1 + $0x11] ss:$2 sm:$0xff] %v5726_v43  ;;  %v4930_v29 = vsel %vm118_vm1, %v4883_v60, %v4882_v52  ;;  %v9421_v35 = vrot.slane %v8478_v51, 4  ;;  %v3150_v5 = vrot.slane %v3149_v2, 4  ;;  %v4139_v7 = vadd.f32 %v4043_v37, %v3826_v47  ;;  %v8833_v51 = vpop.f32.mrf.mxu0 }
 0x458   :  { %5729 = vtanh.f32 %v4239_v31  ;;  %v4931_v58 = vsel %vm122_vm2, %v4884_v63, %v4930_v29  ;;  %v3709_v30 = vsel %vm7764_vm8, %v5439_v32, %v3708_v18  ;;  %v3974_v25 = vsel %vm7770_vm15, %v5463_v61, %v3973_v40  ;;  %v4410_v29 = vld.sshfl [vmem:[#allocation1] sm:$0xff pattern:$0x75316420] }
 0x459   :  { %v3562_v19 = vadd.f32 %v3466_v50, %v9421_v35  ;;  %5731 = vtanh.f32 %v4586_v23  ;;  %v4954_v11 = vsel %vm3257_vm7, %v4931_v58, 0.0  ;;  %v2685_v17 = vpop.f32.mrf.mxu2  ;;  %v3712_v38 = vsel %vm7764_vm8, %v3710_v6, %v3711_v36  ;;  %v2497_v23 = vpop.f32.mrf.mxu1 }
 0x45a   :  { %v4648_v50 = vrot.slane %v5728_v55, 4  ;;  %4955 = vadd.xlane.f32.xlu0 %v4954_v11  ;;  %v4187_v60 = vadd.f32 %v4139_v7, %v2685_v17  ;;  %v3977_v47 = vsel %vm7770_vm15, %v3975_v34, %v3976_v41  ;;  %v2943_v37 = vrot.slane %v8556_v48, 4 }
 0x45b   :  { %v5440_v2 = vrot.slane %v3146_v9, 10  ;;  %v2936_v52 = vrot.slane %v8795_v39, 4  ;;  %v9422_v18 = vrot.slane %v8602_v42, 5  ;;  %v9423_v40 = vrot.slane %v8553_v54, 4 }
 0x45c   :  { %v5464_v61 = vrot.slane %v3146_v9, 11  ;;  %v4240_v6 = vadd.f32 %v7839_v4, %v4187_v60  ;;  %v3827_v36 = vadd.f32 %v3709_v30, %v3562_v19  ;;  %v4044_v43 = vrot.slane %v3974_v25, 4  ;;  %v4531_v48 = vpop.f32.mrf.mxu3 }
 0x45d   :  { %v8845_v32 = vsel %vm7317_vm13, %v9423_v40, %v9422_v18  ;;  %v8848_v31 = vrot.slane %v3150_v5, 6  ;;  %v8850_v34 = vrot.slane %v3150_v5, 7  ;;  %v3828_v39 = vadd.f32 %v3712_v38, %v8589_v14  ;;  %v9424_v5 = vld [vmem:[#allocation40_spill] sm:$0xff] }
 0x45e   :  { %v4045_v41 = vrot.slane %v3977_v47, 4  ;;  %v5730_v42 = vpop.eup %5729  ;;  %v8857_v54 = vsel %vm631_vm10, %v2941_v62, %v9418_v15  ;;  %v4649_v63 = vmax.f32 %v5728_v55, %v4648_v50  ;;  %5733 = vtanh.f32 %v4240_v6  ;;  %v4411_v35 = vld.sshfl [vmem:[#allocation1 + $0x10] sm:$0xff pattern:$0x75316420] }
 0x45f   :  { %v4587_v9 = vadd.f32 %v8639_v24, %v4531_v48  ;;  %v5732_v19 = vpop.eup %5731  ;;  %v8862_v58 = vsel %vm631_vm10, %v9424_v5, %v2943_v37  ;;  %v8866_v14 = vsel %vm631_vm10, %v2943_v37, %v9424_v5  ;;  %4406 = vst [vmem:[#allocation1 + $0x20] ss:$2 sm:$0xff] %v5730_v42  ;;  %v4458_v12 = vpack.c.bf16 %v4411_v35, %v4410_v29 }
 0x460   :  { %v3469_v62 = vrot.slane %v8845_v32, 4  ;;  %v3153_v15 = vsel %vm631_vm10, %v8806_v53, %v2936_v52  ;;  %v4654_v55 = vrot.slane %v5732_v19, 4  ;;  %v4140_v7 = vadd.f32 %v4044_v43, %v3827_v36  ;;  %v2598_v36 = vpop.f32.mrf.mxu0 }
 0x461   :  { %5735 = vtanh.f32 %v4587_v9  ;;  %v3716_v11 = vsel %vm7764_vm8, %v5440_v2, %v8848_v31  ;;  %v2938_v17 = vrot.slane %v8833_v51, 4  ;;  %v2687_v30 = vpop.f32.mrf.mxu2  ;;  %v4141_v25 = vadd.f32 %v4045_v41, %v3828_v39  ;;  %4558 = vmatmul.bf16.gmra.mxu3 %v4458_v12 }
 0x462   :  { %v3981_v38 = vsel %vm7770_vm15, %v5464_v61, %v8850_v34  ;;  %v4650_v50 = vrot.slane %v4649_v63, 2  ;;  %v4655_v60 = vmax.f32 %v5732_v19, %v4654_v55  ;;  %v3144_v47 = vrot.slane %v2687_v30, 4  ;;  %v8885_v61 = vld [vmem:[%s9186_s7] ss:$0 sm:$0xff]  ;;  %v2499_v55 = vpop.f32.mrf.mxu1 }
 0x463   :  { %v4188_v37 = vadd.f32 %v4140_v7, %v2687_v30  ;;  %v3717_v18 = vrot.slane %v8848_v31, 4  ;;  %v3982_v40 = vrot.slane %v8850_v34, 4  ;;  %v3156_v2 = vsel %vm631_vm10, %v2936_v52, %v8806_v53 }
 0x464   :  { %v3718_v32 = vrot.slane %v3153_v15, 6  ;;  %v5734_v51 = vpop.eup %5733  ;;  %v3983_v6 = vrot.slane %v3153_v15, 7  ;;  %v4656_v43 = vrot.slane %v4655_v60, 2  ;;  %v4189_v48 = vadd.f32 %v4141_v25, %v3144_v47 }
 0x465   :  { %v4241_v39 = vadd.f32 %v8885_v61, %v4188_v37  ;;  %v8889_v31 = vsel %vm631_vm10, %v2497_v23, %v2938_v17  ;;  %4407 = vst [vmem:[#allocation1 + $0x21] ss:$2 sm:$0xff] %v5734_v51  ;;  %v3829_v34 = vadd.f32 %v3716_v11, %v8618_v56  ;;  %v4046_v53 = vrot.slane %v3981_v38, 4 }
 0x466   :  { %v8895_v52 = vsel %vm118_vm1, %v8792_v20, %v8797_v45  ;;  %v4651_v42 = vmax.f32 %v4649_v63, %v4650_v50  ;;  %v4657_v9 = vmax.f32 %v4655_v60, %v4656_v43  ;;  %v4242_v29 = vadd.f32 %v7839_v4, %v4189_v48 }
 0x467   :  { %v5736_v41 = vpop.eup %5735  ;;  %5737 = vtanh.f32 %v4241_v39  ;;  %v3157_v35 = vrot.slane %v3156_v2, 4  ;;  %v3162_v19 = vsel %vm631_vm10, %v2938_v17, %v2497_v23  ;;  %v9425_v12 = vrot.slane %v8514_v3, 4 }
 0x468   :  { %v4660_v5 = vrot.slane %v5736_v41, 4  ;;  %v3722_v56 = vrot.slane %v8889_v31, 6  ;;  %v4658_v7 = vrot.slane %v4657_v9, 1  ;;  %5739 = vtanh.f32 %v4242_v29 }
 0x469   :  { %v3565_v15 = vadd.f32 %v3469_v62, %v9425_v12  ;;  %v9426_v20 = vrot.slane %v8598_v33, 5  ;;  %v3987_v63 = vrot.slane %v8889_v31, 7  ;;  %v2690_v30 = vpop.f32.mrf.mxu2  ;;  %v3719_v23 = vsel %vm7764_vm8, %v3717_v18, %v3718_v32 }
 0x46a   :  { %v4661_v11 = vmax.f32 %v5736_v41, %v4660_v5  ;;  %v3984_v3 = vsel %vm7770_vm15, %v3982_v40, %v3983_v6  ;;  %v3163_v62 = vrot.slane %v3162_v19, 4  ;;  %v4652_v17 = vrot.slane %v4651_v42, 1 }
 0x46b   :  { %v3410_v45 = vsel %vm7317_vm13, %v8653_v16, %v9426_v20  ;;  %v3151_v25 = vrot.slane %v2690_v30, 4  ;;  %v4142_v38 = vadd.f32 %v4046_v53, %v3829_v34  ;;  %v3423_v33 = vrot.slane %v8862_v58, 5  ;;  %v8915_v53 = vpop.f32.mrf.mxu0 }
 0x46c   :  { %v5441_v50 = vrot.slane %v3157_v35, 10  ;;  %v2940_v60 = vrot.slane %v2598_v36, 4  ;;  %v4662_v47 = vrot.slane %v4661_v11, 2  ;;  %v4534_v2 = vpop.f32.mrf.mxu3  ;;  %v3830_v51 = vadd.f32 %v3719_v23, %v3565_v15  ;;  %v2502_v23 = vpop.f32.mrf.mxu1 }
 0x46d   :  { %v5738_v16 = vpop.eup %5737  ;;  %v4190_v37 = vadd.f32 %v4142_v38, %v3151_v25  ;;  %v4047_v43 = vrot.slane %v3984_v3, 4  ;;  %v8913_v48 = vmax.f32 %v4657_v9, %v4658_v7  ;;  %v5465_v18 = vrot.slane %v3157_v35, 11 }
 0x46e   :  { %v3724_v32 = vrot.slane %v3722_v56, 4  ;;  %4408 = vst [vmem:[#allocation1 + $0x30] ss:$2 sm:$0xff] %v5738_v16  ;;  %v4663_v40 = vmax.f32 %v4661_v11, %v4662_v47  ;;  %v3470_v6 = vrot.slane %v3410_v45, 4  ;;  %v5740_v39 = vpop.eup %5739  ;;  %v3725_v31 = vrot.slane %v3163_v62, 6 }
 0x46f   :  { %v3989_v34 = vrot.slane %v3987_v63, 4  ;;  %v4243_v36 = vadd.f32 %v8885_v61, %v4190_v37  ;;  %v8918_v41 = vmax.f32 %v4651_v42, %v4652_v17  ;;  %v3990_v29 = vrot.slane %v3163_v62, 7  ;;  %4409 = vst [vmem:[#allocation1 + $0x31] ss:$2 sm:$0xff] %v5740_v39 }
 0x470   :  { %v3166_v19 = vsel %vm631_vm10, %v2499_v55, %v2940_v60  ;;  %v3169_v9 = vsel %vm631_vm10, %v2940_v60, %v2499_v55  ;;  %v4664_v35 = vrot.slane %v4663_v40, 1  ;;  %v4143_v5 = vadd.f32 %v4047_v43, %v3830_v51  ;;  %v4412_v51 = vld.sshfl [vmem:[#allocation1 + $0x20] sm:$0xff pattern:$0x75316420] }
 0x471   :  { %5741 = vtanh.f32 %v4243_v36  ;;  %v4886_v12 = vmul.f32 %v8913_v48, %v8913_v48  ;;  %v3723_v15 = vsel %vm7764_vm8, %v5441_v50, %v3722_v56  ;;  %v2942_v7 = vrot.slane %v8915_v53, 4  ;;  %v2692_v20 = vpop.f32.mrf.mxu2 }
 0x472   :  { %v8927_v42 = vmax.f32 %v4663_v40, %v4664_v35  ;;  %v3566_v45 = vadd.f32 %v3470_v6, %v3155_v27  ;;  %v3988_v55 = vsel %vm7770_vm15, %v5465_v18, %v3987_v63  ;;  %v3726_v11 = vsel %vm7764_vm8, %v3724_v32, %v3725_v31 }
 0x473   :  { %v3170_v30 = vrot.slane %v3169_v9, 4  ;;  %v4191_v3 = vadd.f32 %v4143_v5, %v2692_v20  ;;  %v4885_v56 = vmul.f32 %v8918_v41, %v8918_v41  ;;  %v5442_v62 = vrot.slane %v3166_v19, 10  ;;  %v2603_v53 = vpop.f32.mrf.mxu0 }
 0x474   :  { %v4887_v17 = vmul.f32 %v8927_v42, %v8927_v42  ;;  %v3831_v25 = vadd.f32 %v3723_v15, %v3566_v45  ;;  %v3991_v10 = vsel %vm7770_vm15, %v3989_v34, %v3990_v29  ;;  %v4588_v27 = vadd.f32 %v8639_v24, %v4534_v2  ;;  %v4536_v38 = vpop.f32.mrf.mxu3  ;;  %v2504_v15 = vpop.f32.mrf.mxu1 }
 0x475   :  { %v4244_v63 = vadd.f32 %v7839_v4, %v4191_v3  ;;  %v4932_v50 = vsel %vm118_vm1, %v4886_v12, %v4885_v56  ;;  %v4048_v60 = vrot.slane %v3988_v55, 4  ;;  %v5466_v47 = vrot.slane %v3166_v19, 11 }
 0x476   :  { %v4589_v16 = vadd.f32 %v8639_v24, %v4536_v38  ;;  %v4933_v37 = vsel %vm122_vm2, %v4887_v17, %v4932_v50  ;;  %v8949_v43 = vsel %vm122_vm2, %v8808_v26, %v8895_v52  ;;  %v3832_v32 = vadd.f32 %v3726_v11, %v8708_v21  ;;  %v4413_v6 = vld.sshfl [vmem:[#allocation1 + $0x30] sm:$0xff pattern:$0x75316420] }
 0x477   :  { %v5742_v18 = vpop.eup %5741  ;;  %5743 = vtanh.f32 %v4244_v63  ;;  %v4957_v2 = vsel %vm3257_vm7, %v4933_v37, 0.0  ;;  %v4049_v40 = vrot.slane %v3991_v10, 4  ;;  %v3729_v39 = vrot.slane %v3170_v30, 6 }
 0x478   :  { %v3994_v31 = vrot.slane %v3170_v30, 7  ;;  %4414 = vst [vmem:[#allocation1] ss:$2 sm:$0xff] %v5742_v18  ;;  %5745 = vtanh.f32 %v4589_v16  ;;  %4958 = vadd.xlane.f32.xlu0 %v4957_v2  ;;  %v4459_v34 = vpack.c.bf16 %v4413_v6, %v4412_v51  ;;  %v4144_v36 = vadd.f32 %v4048_v60, %v3831_v25 }
 0x479   :  { %5747 = vtanh.f32 %v4588_v27  ;;  %v3568_v26 = vadd.f32 %v3472_v59, %v8698_v0  ;;  %v3175_v52 = vrot.slane %v8857_v54, 4  ;;  %v5419_v29 = vrot.slane %v8866_v14, 9  ;;  %v2695_v21 = vpop.f32.mrf.mxu2 }
 0x47a   :  { %4563 = vmatmul.bf16.gmra.mxu3 %v4459_v34  ;;  %v3420_v19 = vsel %vm7317_vm13, %v3418_v46, %v3419_v8  ;;  %v3173_v9 = vsel %vm631_vm10, %v2502_v23, %v2942_v7  ;;  %v3164_v35 = vrot.slane %v2695_v21, 4  ;;  %v4145_v5 = vadd.f32 %v4049_v40, %v3832_v32 }
 0x47b   :  { %v4192_v12 = vadd.f32 %v4144_v36, %v2695_v21  ;;  %v3425_v0 = vrot.slane %v3423_v33, 4  ;;  %v3730_v1 = vsel %vm7764_vm8, %v5442_v62, %v3729_v39  ;;  %v2944_v59 = vrot.slane %v2603_v53, 4 }
 0x47c   :  { %v3995_v13 = vsel %vm7770_vm15, %v5466_v47, %v3994_v31  ;;  %v3731_v22 = vrot.slane %v3729_v39, 4  ;;  %v4193_v20 = vadd.f32 %v4145_v5, %v3164_v35  ;;  %v3473_v8 = vrot.slane %v3420_v19, 4 }
 0x47d   :  { %v5744_v14 = vpop.eup %5743  ;;  %v4245_v46 = vadd.f32 %v8885_v61, %v4192_v12  ;;  %v3996_v55 = vrot.slane %v3994_v31, 4  ;;  %v3176_v11 = vsel %vm631_vm10, %v2942_v7, %v2502_v23  ;;  %v3732_v30 = vrot.slane %v3173_v9, 6 }
 0x47e   :  { %v5746_v45 = vpop.eup %5745  ;;  %v3997_v3 = vrot.slane %v3173_v9, 7  ;;  %4415 = vst [vmem:[#allocation1 + $0x1] ss:$2 sm:$0xff] %v5744_v14  ;;  %v4246_v62 = vadd.f32 %v7839_v4, %v4193_v20  ;;  %v3833_v17 = vadd.f32 %v3730_v1, %v3568_v26  ;;  %v4050_v25 = vrot.slane %v3995_v13, 4 }
 0x47f   :  { %v5748_v56 = vpop.eup %5747  ;;  %5749 = vtanh.f32 %v4245_v46  ;;  %v3179_v10 = vsel %vm631_vm10, %v2504_v15, %v2944_v59  ;;  %v3182_v27 = vsel %vm631_vm10, %v2944_v59, %v2504_v15  ;;  %v4672_v63 = vrot.slane %v5746_v45, 4 }
 0x480   :  { %v5418_v38 = vrot.slane %v3175_v52, 9  ;;  %v3427_v7 = vsel %vm7317_vm13, %v3425_v0, %v5419_v29  ;;  %5751 = vtanh.f32 %v4246_v62  ;;  %v9427_v23 = vrot.slane %v8676_v49, 4 }
 0x481   :  { %v3177_v60 = vrot.slane %v3176_v11, 4  ;;  %v4666_v47 = vrot.slane %v5748_v56, 4  ;;  %v2697_v16 = vpop.f32.mrf.mxu2  ;;  %v3733_v37 = vsel %vm7764_vm8, %v3731_v22, %v3732_v30  ;;  %v3998_v51 = vsel %vm7770_vm15, %v3996_v55, %v3997_v3 }
 0x482   :  { %v3569_v50 = vadd.f32 %v3473_v8, %v9427_v23  ;;  %v3183_v18 = vrot.slane %v3182_v27, 4  ;;  %v3736_v2 = vrot.slane %v3179_v10, 6  ;;  %v3171_v32 = vrot.slane %v2697_v16, 4 }
 0x483   :  { %v4146_v40 = vadd.f32 %v4050_v25, %v3833_v17  ;;  %v4001_v6 = vrot.slane %v3179_v10, 7  ;;  %v4673_v39 = vmax.f32 %v5746_v45, %v4672_v63  ;;  %v3424_v49 = vsel %vm7317_vm13, %v5418_v38, %v3423_v33 }
 0x484   :  { %v3475_v34 = vrot.slane %v3427_v7, 4  ;;  %v4539_v36 = vpop.f32.mrf.mxu3  ;;  %v3834_v26 = vadd.f32 %v3733_v37, %v3569_v50  ;;  %v4051_v29 = vrot.slane %v3998_v51, 4  ;;  %v5443_v21 = vrot.slane %v3177_v60, 10 }
 0x485   :  { %v5750_v31 = vpop.eup %5749  ;;  %v4194_v53 = vadd.f32 %v4146_v40, %v3171_v32  ;;  %v5467_v19 = vrot.slane %v3177_v60, 11  ;;  %v4667_v9 = vmax.f32 %v5748_v56, %v4666_v47  ;;  %v4590_v35 = vadd.f32 %v8639_v24, %v4539_v36 }
 0x486   :  { %4416 = vst [vmem:[#allocation1 + $0x10] ss:$2 sm:$0xff] %v5750_v31  ;;  %v5752_v5 = vpop.eup %5751  ;;  %v3738_v12 = vrot.slane %v3736_v2, 4  ;;  %v3739_v0 = vrot.slane %v3183_v18, 6  ;;  %v3474_v59 = vrot.slane %v3424_v49, 4  ;;  %v4003_v57 = vrot.slane %v4001_v6, 4 }
 0x487   :  { %v4247_v1 = vadd.f32 %v8885_v61, %v4194_v53  ;;  %v4004_v33 = vrot.slane %v3183_v18, 7  ;;  %v4674_v13 = vrot.slane %v4673_v39, 2  ;;  %4417 = vst [vmem:[#allocation1 + $0x11] ss:$2 sm:$0xff] %v5752_v5  ;;  %5753 = vtanh.f32 %v4590_v35 }
 0x488   :  { %v4147_v14 = vadd.f32 %v4051_v29, %v3834_v26  ;;  %v4668_v22 = vrot.slane %v4667_v9, 2  ;;  %v3737_v20 = vsel %vm7764_vm8, %v5443_v21, %v3736_v2  ;;  %v4002_v46 = vsel %vm7770_vm15, %v5467_v19, %v4001_v6 }
 0x489   :  { %5755 = vtanh.f32 %v4247_v1  ;;  %v2700_v15 = vpop.f32.mrf.mxu2  ;;  %v3570_v45 = vadd.f32 %v3474_v59, %v3175_v52  ;;  %v3571_v55 = vadd.f32 %v3475_v34, %v8862_v58  ;;  %v4675_v11 = vmax.f32 %v4673_v39, %v4674_v13  ;;  %v4422_v52 = vld.sshfl [vmem:[#allocation1] sm:$0xff pattern:$0x75316420] }
 0x48a   :  { %v4195_v8 = vadd.f32 %v4147_v14, %v2700_v15  ;;  %v3740_v30 = vsel %vm7764_vm8, %v3738_v12, %v3739_v0  ;;  %v4005_v3 = vsel %vm7770_vm15, %v4003_v57, %v4004_v33  ;;  %v4052_v17 = vrot.slane %v4002_v46, 4  ;;  %v9428_v46 = vld [vmem:[#allocation9_spill] sm:$0xff] }
 0x48b   :  { %v3835_v62 = vadd.f32 %v3737_v20, %v3570_v45  ;;  %v4800_v25 = vsel %vm118_vm1, %v8913_v48, %v8918_v41  ;;  %v4669_v54 = vmax.f32 %v4667_v9, %v4668_v22  ;;  %v3836_v63 = vadd.f32 %v3740_v30, %v3571_v55 }
 0x48c   :  { %v4248_v56 = vadd.f32 %v7839_v4, %v4195_v8  ;;  %v4053_v44 = vrot.slane %v4005_v3, 4  ;;  %v4676_v7 = vrot.slane %v4675_v11, 1  ;;  %v4541_v50 = vpop.f32.mrf.mxu3  ;;  %v9011_v49 = vsel %vm122_vm2, %v8927_v42, %v4800_v25 }
 0x48d   :  { %v5754_v10 = vpop.eup %5753  ;;  %v4148_v60 = vadd.f32 %v4052_v17, %v3835_v62  ;;  %v4670_v16 = vrot.slane %v4669_v54, 1  ;;  %v4591_v18 = vadd.f32 %v8639_v24, %v4541_v50  ;;  %v1562_v8 = vsel %vm635_vm9, %v9428_v46, -inf }
 0x48e   :  { %v4678_v58 = vrot.slane %v5754_v10, 4  ;;  %5757 = vtanh.f32 %v4248_v56  ;;  %v4423_v38 = vld.sshfl [vmem:[#allocation1 + $0x10] sm:$0xff pattern:$0x75316420]  ;;  %v4149_v41 = vadd.f32 %v4053_v44, %v3836_v63  ;;  %v4677_v2 = vmax.f32 %v4675_v11, %v4676_v7 }
 0x48f   :  { %v5756_v27 = vpop.eup %5755  ;;  %v4460_v28 = vpack.c.bf16 %v4423_v38, %v4422_v52  ;;  %v4671_v31 = vmax.f32 %v4669_v54, %v4670_v16  ;;  %v1563_v11 = vrot.slane %v1562_v8, 4  ;;  %vm4877_vm4 = vcmask 1047559  }
 0x490   :  { %4418 = vst [vmem:[#allocation1 + $0x20] ss:$2 sm:$0xff] %v5756_v27  ;;  %v4679_v23 = vmax.f32 %v5754_v10, %v4678_v58  ;;  %v4889_v36 = vmul.f32 %v4677_v2, %v4677_v2 }
 0x491   :  { %v2702_v47 = vpop.f32.mrf.mxu2  ;;  %4568 = vmatmul.bf16.gmra.mxu3 %v4460_v28  ;;  %v4888_v26 = vmul.f32 %v4671_v31, %v4671_v31  ;;  %v4802_v3 = vsel %vm118_vm1, %v4677_v2, %v4671_v31  ;;  %v1564_v10 = vmax.f32 %v1562_v8, %v1563_v11 }
 0x492   :  { %v4680_v37 = vrot.slane %v4679_v23, 2  ;;  %v3184_v48 = vrot.slane %v2702_v47, 4  ;;  %v4196_v51 = vadd.f32 %v4148_v60, %v2702_v47 }
 0x493   :  { %v4934_v21 = vsel %vm118_vm1, %v4889_v36, %v4888_v26  ;;  %v1565_v63 = vrot.slane %v1564_v10, 2 }
 0x494   :  { %v5758_v32 = vpop.eup %5757  ;;  %v4197_v40 = vadd.f32 %v4149_v41, %v3184_v48  ;;  %v4249_v6 = vadd.f32 %v8885_v61, %v4196_v51  ;;  %v4681_v39 = vmax.f32 %v4679_v23, %v4680_v37 }
 0x495   :  { %4419 = vst [vmem:[#allocation1 + $0x21] ss:$2 sm:$0xff] %v5758_v32  ;;  %v1566_v50 = vmax.f32 %v1564_v10, %v1565_v63 }
 0x496   :  { %v4250_v34 = vadd.f32 %v7839_v4, %v4197_v40  ;;  %5759 = vtanh.f32 %v4249_v6  ;;  %v4682_v53 = vrot.slane %v4681_v39, 1  ;;  %v9019_v4 = vld [vmem:[%s9187_s9] ss:$0 sm:$0xff] }
 0x497   :  { %5761 = vtanh.f32 %v4591_v18  ;;  %v1567_v48 = vrot.slane %v1566_v50, 1 }
 0x498   :  { %5763 = vtanh.f32 %v4250_v34  ;;  %v4683_v24 = vmax.f32 %v4681_v39, %v4682_v53 }
 0x499   :  { %v9035_v6 = vmax.f32 %v1566_v50, %v1567_v48  ;;  %v9433_v50 = vld [vmem:[#allocation4_spill] sm:$0xff] }
 0x49a   :  { %v4890_v29 = vmul.f32 %v4683_v24, %v4683_v24  ;;  %v9031_v2 = vsel %vm122_vm2, %v4683_v24, %v4802_v3 }
 0x49b   :  { %v4823_v39 = vmul.f32 %v9011_v49, %v9035_v6 }
 0x49c   :  { %v5760_v61 = vpop.eup %5759  ;;  %v4544_v19 = vpop.f32.mrf.mxu3  ;;  %v4935_v9 = vsel %vm122_vm2, %v4890_v29, %v4934_v21  ;;  %v4424_v13 = vld.sshfl [vmem:[#allocation1 + $0x20] sm:$0xff pattern:$0x75316420] }
 0x49d   :  { %v5762_v42 = vpop.eup %5761  ;;  %4420 = vst [vmem:[#allocation1 + $0x30] ss:$2 sm:$0xff] %v5760_v61  ;;  %v4592_v35 = vadd.f32 %v9019_v4, %v4544_v19  ;;  %v4960_v5 = vsel %vm3257_vm7, %v4935_v9, 0.0  ;;  %v4833_v34 = vsel %vm3257_vm7, %v4823_v39, 0.0 }
 0x49e   :  { %v5764_v12 = vpop.eup %5763  ;;  %4961 = vadd.xlane.f32.xlu1 %v4960_v5  ;;  %v4684_v0 = vrot.slane %v5762_v42, 4 }
 0x49f   :  { %4421 = vst [vmem:[#allocation1 + $0x31] ss:$2 sm:$0xff] %v5764_v12  ;;  %5765 = vtanh.f32 %v4592_v35 }
 0x4a0   :  { %v4685_v57 = vmax.f32 %v5762_v42, %v4684_v0 }
 0x4a2   :  { %v4686_v45 = vrot.slane %v4685_v57, 2 }
 0x4a4   :  { %v4546_v1 = vpop.f32.mrf.mxu3  ;;  %v4687_v62 = vmax.f32 %v4685_v57, %v4686_v45 }
 0x4a5   :  { %v5766_v59 = vpop.eup %5765  ;;  %v4593_v33 = vadd.f32 %v9019_v4, %v4546_v1 }
 0x4a6   :  { %v4690_v14 = vrot.slane %v5766_v59, 4  ;;  %v4425_v22 = vld.sshfl [vmem:[#allocation1 + $0x30] sm:$0xff pattern:$0x75316420]  ;;  %v4688_v52 = vrot.slane %v4687_v62, 1 }
 0x4a7   :  { %5767 = vtanh.f32 %v4593_v33  ;;  %v4461_v15 = vpack.c.bf16 %v4425_v22, %v4424_v13 }
 0x4a8   :  { %v4691_v20 = vmax.f32 %v5766_v59, %v4690_v14  ;;  %v4689_v28 = vmax.f32 %v4687_v62, %v4688_v52  ;;  %v9429_v62 = vld [vmem:[#allocation12_spill] sm:$0xff] }
 0x4a9   :  { %4573 = vmatmul.bf16.gmra.mxu3 %v4461_v15 }
 0x4aa   :  { %v4692_v55 = vrot.slane %v4691_v20, 2  ;;  %v4891_v47 = vmul.f32 %v4689_v28, %v4689_v28 }
 0x4ac   :  { %v4693_v30 = vmax.f32 %v4691_v20, %v4692_v55 }
 0x4ad   :  { %v5768_v56 = vpop.eup %5767 }
 0x4ae   :  { %v4696_v17 = vrot.slane %v5768_v56, 4  ;;  %v4694_v25 = vrot.slane %v4693_v30, 1 }
 0x4b0   :  { %v4697_v54 = vmax.f32 %v5768_v56, %v4696_v17  ;;  %v4695_v58 = vmax.f32 %v4693_v30, %v4694_v25  ;;  %v1569_v17 = vsel %vm635_vm9, %v9429_v62, -inf  ;;  %v9430_v25 = vld [vmem:[#allocation11_spill] sm:$0xff] }
 0x4b1   :  { %v1555_v10 = vsel %vm635_vm9, %v9430_v25, -inf }
 0x4b2   :  { %v4698_v27 = vrot.slane %v4697_v54, 2  ;;  %v4892_v23 = vmul.f32 %v4695_v58, %v4695_v58  ;;  %v4804_v35 = vsel %vm118_vm1, %v4695_v58, %v4689_v28  ;;  %v1570_v58 = vrot.slane %v1569_v17, 4 }
 0x4b3   :  { %v1556_v63 = vrot.slane %v1555_v10, 4 }
 0x4b4   :  { %v4549_v44 = vpop.f32.mrf.mxu3  ;;  %v4699_v38 = vmax.f32 %v4697_v54, %v4698_v27  ;;  %v4936_v37 = vsel %vm118_vm1, %v4892_v23, %v4891_v47  ;;  %v1571_v47 = vmax.f32 %v1569_v17, %v1570_v58 }
 0x4b5   :  { %v4594_v41 = vadd.f32 %v9019_v4, %v4549_v44  ;;  %v9431_v44 = vld [vmem:[#allocation16_spill] sm:$0xff] }
 0x4b6   :  { %v4700_v7 = vrot.slane %v4699_v38, 1 }
 0x4b8   :  { %v4701_v60 = vmax.f32 %v4699_v38, %v4700_v7  ;;  %v1576_v38 = vsel %vm635_vm9, %v9431_v44, -inf  ;;  %v9432_v7 = vld [vmem:[#allocation14_spill] sm:$0xff] }
 0x4b9   :  { %v1583_v23 = vsel %vm635_vm9, %v9432_v7, -inf }
 0x4ba   :  { %v4893_v16 = vmul.f32 %v4701_v60, %v4701_v60  ;;  %v9044_v15 = vsel %vm122_vm2, %v4701_v60, %v4804_v35  ;;  %v1590_v60 = vsel %vm635_vm9, %v9433_v50, -inf }
 0x4bc   :  { %v4551_v51 = vpop.f32.mrf.mxu3  ;;  %v4937_v18 = vsel %vm122_vm2, %v4893_v16, %v4936_v37  ;;  %v1577_v16 = vrot.slane %v1576_v38, 4  ;;  %v9434_v37 = vld [vmem:[#allocation13_spill] sm:$0xff] }
 0x4bd   :  { %v4595_v32 = vadd.f32 %v9019_v4, %v4551_v51  ;;  %v4963_v40 = vsel %vm3257_vm7, %v4937_v18, 0.0  ;;  %v1597_v48 = vsel %vm635_vm9, %v9434_v37, -inf  ;;  %v1584_v18 = vrot.slane %v1583_v23, 4 }
 0x4be   :  { %4964 = vadd.xlane.f32.xlu1 %v4963_v40 }
 0x4bf   :  { %5769 = vtanh.f32 %v4595_v32 }
 0x4c0   :  { %5771 = vtanh.f32 %v4594_v41  ;;  %v1557_v41 = vmax.f32 %v1555_v10, %v1556_v63 }
 0x4c5   :  { %v5770_v31 = vpop.eup %5769 }
 0x4c6   :  { %v5772_v53 = vpop.eup %5771  ;;  %4834 = vadd.xlane.f32.xlu1 %v4833_v34  ;;  %v4708_v36 = vrot.slane %v5770_v31, 4 }
 0x4c7   :  { %v4702_v24 = vrot.slane %v5772_v53, 4 }
 0x4c8   :  { %v4709_v26 = vmax.f32 %v5770_v31, %v4708_v36  ;;  %v1591_v31 = vrot.slane %v1590_v60, 4  ;;  %v9435_v36 = vld [vmem:[#allocation15_spill] sm:$0xff] }
 0x4c9   :  { %v4703_v21 = vmax.f32 %v5772_v53, %v4702_v24  ;;  %v1598_v53 = vrot.slane %v1597_v48, 4  ;;  %v1604_v24 = vsel %vm635_vm9, %v9435_v36, -inf }
 0x4ca   :  { %v4710_v19 = vrot.slane %v4709_v26, 2  ;;  %v1605_v35 = vrot.slane %v1604_v24, 4 }
 0x4cb   :  { %v4704_v9 = vrot.slane %v4703_v21, 2 }
 0x4cc   :  { %v4554_v29 = vpop.f32.mrf.mxu3  ;;  %v4711_v42 = vmax.f32 %v4709_v26, %v4710_v19  ;;  %v1572_v26 = vrot.slane %v1571_v47, 2  ;;  %v1585_v19 = vmax.f32 %v1583_v23, %v1584_v18 }
 0x4cd   :  { %v4596_v61 = vadd.f32 %v9019_v4, %v4554_v29  ;;  %v4705_v49 = vmax.f32 %v4703_v21, %v4704_v9  ;;  %v1578_v29 = vmax.f32 %v1576_v38, %v1577_v16  ;;  %v1558_v21 = vrot.slane %v1557_v41, 2 }
 0x4ce   :  { %v4712_v0 = vrot.slane %v4711_v42, 1 }
 0x4cf   :  { %5773 = vtanh.f32 %v4596_v61  ;;  %v4706_v57 = vrot.slane %v4705_v49, 1 }
 0x4d0   :  { %v4713_v13 = vmax.f32 %v4711_v42, %v4712_v0  ;;  %v1592_v42 = vmax.f32 %v1590_v60, %v1591_v31  ;;  %v1579_v0 = vrot.slane %v1578_v29, 2 }
 0x4d1   :  { %v4707_v20 = vmax.f32 %v4705_v49, %v4706_v57  ;;  %v1599_v49 = vmax.f32 %v1597_v48, %v1598_v53  ;;  %v1586_v57 = vrot.slane %v1585_v19, 2 }
 0x4d2   :  { %v4895_v8 = vmul.f32 %v4713_v13, %v4713_v13 }
 0x4d3   :  { %v4894_v55 = vmul.f32 %v4707_v20, %v4707_v20  ;;  %v1587_v25 = vmax.f32 %v1585_v19, %v1586_v57 }
 0x4d4   :  { %v4556_v59 = vpop.f32.mrf.mxu3 }
 0x4d5   :  { %v5774_v5 = vpop.eup %5773  ;;  %v4597_v14 = vadd.f32 %v9019_v4, %v4556_v59  ;;  %v4938_v30 = vsel %vm118_vm1, %v4895_v8, %v4894_v55  ;;  %v1606_v8 = vmax.f32 %v1604_v24, %v1605_v35  ;;  %v1588_v7 = vrot.slane %v1587_v25, 1 }
 0x4d6   :  { %v4714_v12 = vrot.slane %v5774_v5, 4 }
 0x4d7   :  { %5775 = vtanh.f32 %v4597_v14 }
 0x4d8   :  { %v4715_v1 = vmax.f32 %v5774_v5, %v4714_v12  ;;  %v1573_v12 = vmax.f32 %v1571_v47, %v1572_v26  ;;  %v4855_v47 = vmul.f32 %v9035_v6, %v9035_v6 }
 0x4da   :  { %v4716_v33 = vrot.slane %v4715_v1, 2 }
 0x4dc   :  { %v4717_v22 = vmax.f32 %v4715_v1, %v4716_v33  ;;  %v1559_v1 = vmax.f32 %v1557_v41, %v1558_v21  ;;  %v4806_v33 = vsel %vm118_vm1, %v4713_v13, %v4707_v20 }
 0x4dd   :  { %v5776_v27 = vpop.eup %5775 }
 0x4de   :  { %v4718_v46 = vrot.slane %v4717_v22, 1  ;;  %v4720_v28 = vrot.slane %v5776_v27, 4  ;;  %v1560_v62 = vrot.slane %v1559_v1, 1 }
 0x4e0   :  { %v9046_v45 = vmax.f32 %v4717_v22, %v4718_v46  ;;  %v4721_v40 = vmax.f32 %v5776_v27, %v4720_v28  ;;  %v1593_v46 = vrot.slane %v1592_v42, 2  ;;  %v9070_v20 = vmax.f32 %v1559_v1, %v1560_v62 }
 0x4e2   :  { %v4896_v11 = vmul.f32 %v9046_v45, %v9046_v45  ;;  %v4722_v9 = vrot.slane %v4721_v40, 2  ;;  %v4854_v18 = vmul.f32 %v9070_v20, %v9070_v20 }
 0x4e4   :  { %v4559_v3 = vpop.f32.mrf.mxu3  ;;  %v4939_v56 = vsel %vm122_vm2, %v4896_v11, %v4938_v30  ;;  %v4723_v22 = vmax.f32 %v4721_v40, %v4722_v9  ;;  %v1600_v11 = vrot.slane %v1599_v49, 2  ;;  %v9078_v40 = vmax.f32 %v1587_v25, %v1588_v7 }
 0x4e5   :  { %v4598_v54 = vadd.f32 %v9019_v4, %v4559_v3  ;;  %v4966_v52 = vsel %vm3257_vm7, %v4939_v56, 0.0  ;;  %v1574_v3 = vrot.slane %v1573_v12, 1  ;;  %v1580_v56 = vmax.f32 %v1578_v29, %v1579_v0 }
 0x4e6   :  { %4967 = vadd.xlane.f32.xlu2 %v4966_v52  ;;  %v4724_v10 = vrot.slane %v4723_v22, 1  ;;  %v1607_v52 = vrot.slane %v1606_v8, 2  ;;  %v1601_v58 = vmax.f32 %v1599_v49, %v1600_v11  ;;  %v4870_v53 = vsel %vm118_vm1, %v4855_v47, %v4854_v18 }
 0x4e7   :  { %5777 = vtanh.f32 %v4598_v54  ;;  %v1594_v54 = vmax.f32 %v1592_v42, %v1593_v46  ;;  %v1575_v44 = vmax.f32 %v1573_v12, %v1574_v3  ;;  %v1581_v13 = vrot.slane %v1580_v56, 1 }
 0x4e8   :  { %v4725_v23 = vmax.f32 %v4723_v22, %v4724_v10  ;;  %v1608_v60 = vmax.f32 %v1606_v8, %v1607_v52  ;;  %v1602_v37 = vrot.slane %v1601_v58, 1  ;;  %v4858_v9 = vmul.f32 %v9078_v40, %v9078_v40 }
 0x4e9   :  { %v1595_v50 = vrot.slane %v1594_v54, 1  ;;  %v9074_v41 = vmax.f32 %v1580_v56, %v1581_v13  ;;  %v9093_v42 = vsel %vm122_vm2, %v9046_v45, %v4806_v33  ;;  %v4824_v11 = vmul.f32 %v9031_v2, %v1575_v44 }
 0x4ea   :  { %v9081_v24 = vmax.f32 %v1601_v58, %v1602_v37 }
 0x4eb   :  { %v1596_v31 = vmax.f32 %v1594_v54, %v1595_v50  ;;  %v4857_v26 = vmul.f32 %v9074_v41, %v9074_v41 }
 0x4ec   :  { %v4561_v51 = vpop.f32.mrf.mxu3  ;;  %v4860_v0 = vmul.f32 %v9081_v24, %v9081_v24 }
 0x4ed   :  { %v5778_v32 = vpop.eup %5777  ;;  %v4599_v39 = vadd.f32 %v9019_v4, %v4561_v51  ;;  %v4856_v51 = vmul.f32 %v1575_v44, %v1575_v44  ;;  %v4859_v12 = vmul.f32 %v1596_v31, %v1596_v31 }
 0x4ee   :  { %v4726_v34 = vrot.slane %v5778_v32, 4 }
 0x4ef   :  { %5779 = vtanh.f32 %v4599_v39  ;;  %v4897_v39 = vmul.f32 %v4725_v23, %v4725_v23  ;;  %v4871_v29 = vsel %vm122_vm2, %v4856_v51, %v4870_v53 }
 0x4f0   :  { %v4727_v61 = vmax.f32 %v5778_v32, %v4726_v34  ;;  %v1609_v34 = vrot.slane %v1608_v60, 1  ;;  %v4872_v1 = vsel %vm126_vm3, %v4857_v26, %v4871_v29 }
 0x4f2   :  { %v4728_v5 = vrot.slane %v4727_v61, 2  ;;  %v9097_v49 = vmax.f32 %v1608_v60, %v1609_v34 }
 0x4f4   :  { %v4729_v59 = vmax.f32 %v4727_v61, %v4728_v5  ;;  %v4861_v45 = vmul.f32 %v9097_v49, %v9097_v49 }
 0x4f5   :  { %v5780_v14 = vpop.eup %5779 }
 0x4f6   :  { %v4732_v55 = vrot.slane %v5780_v14, 4  ;;  %v4730_v30 = vrot.slane %v4729_v59, 1 }
 0x4f8   :  { %v4733_v17 = vmax.f32 %v5780_v14, %v4732_v55  ;;  %v4731_v63 = vmax.f32 %v4729_v59, %v4730_v30  ;;  %v4873_v59 = vsel %vm844_vm12, %v4858_v9, %v4872_v1 }
 0x4f9   :  { %v4875_v57 = vsel %vm4874_vm0, %v4859_v12, %v4873_v59  ;;  %v4825_v59 = vmul.f32 %v9044_v15, %v9074_v41 }
 0x4fa   :  { %v4734_v27 = vrot.slane %v4733_v17, 2  ;;  %v4898_v48 = vmul.f32 %v4731_v63, %v4731_v63  ;;  %v4876_v33 = vsel %vm846_vm14, %v4860_v0, %v4875_v57  ;;  %v4808_v25 = vsel %vm118_vm1, %v4731_v63, %v4725_v23 }
 0x4fb   :  { %v4878_v22 = vsel %vm4877_vm4, %v4861_v45, %v4876_v33 }
 0x4fc   :  { %v4735_v28 = vmax.f32 %v4733_v17, %v4734_v27  ;;  %v4940_v6 = vsel %vm118_vm1, %v4898_v48, %v4897_v39  ;;  %v4836_v17 = vsel %vm3257_vm7, %v4824_v11, 0.0 }
 0x4fd   :  { %v4564_v38 = vpop.f32.mrf.mxu3 }
 0x4fe   :  { %v4736_v16 = vrot.slane %v4735_v28, 1  ;;  %v4600_v21 = vadd.f32 %v9019_v4, %v4564_v38 }
 0x500   :  { %v4737_v32 = vmax.f32 %v4735_v28, %v4736_v16 }
 0x502   :  { %v4899_v36 = vmul.f32 %v4737_v32, %v4737_v32  ;;  %v4809_v10 = vsel %vm122_vm2, %v4737_v32, %v4808_v25 }
 0x503   :  { %v4827_v27 = vmul.f32 %v4809_v10, %v1596_v31 }
 0x504   :  { %v4941_v19 = vsel %vm122_vm2, %v4899_v36, %v4940_v6 }
 0x505   :  { %v4566_v61 = vpop.f32.mrf.mxu3  ;;  %v4969_v5 = vsel %vm3257_vm7, %v4941_v19, 0.0  ;;  %v4845_v2 = vsel %vm3257_vm7, %v4827_v27, 0.0 }
 0x506   :  { %v4601_v35 = vadd.f32 %v9019_v4, %v4566_v61  ;;  %4970 = vadd.xlane.f32.xlu2 %v4969_v5 }
 0x508   :  { %5781 = vtanh.f32 %v4601_v35 }
 0x509   :  { %5783 = vtanh.f32 %v4600_v21  ;;  %v4822_v21 = vmul.f32 %v8949_v43, %v9070_v20  ;;  %v4839_v43 = vsel %vm3257_vm7, %v4825_v59, 0.0 }
 0x50b   :  { %v4830_v5 = vsel %vm3257_vm7, %v4822_v21, 0.0 }
 0x50e   :  { %v5782_v14 = vpop.eup %5781  ;;  %4880 = vadd.xlane.f32.xlu2 %v4878_v22 }
 0x50f   :  { %v5784_v46 = vpop.eup %5783  ;;  %v4744_v8 = vrot.slane %v5782_v14, 4 }
 0x510   :  { %v4738_v55 = vrot.slane %v5784_v46, 4 }
 0x511   :  { %v4745_v30 = vmax.f32 %v5782_v14, %v4744_v8 }
 0x512   :  { %v4739_v56 = vmax.f32 %v5784_v46, %v4738_v55 }
 0x513   :  { %v4746_v54 = vrot.slane %v4745_v30, 2 }
 0x514   :  { %v4569_v3 = vpop.f32.mrf.mxu3  ;;  %v4740_v52 = vrot.slane %v4739_v56, 2 }
 0x515   :  { %v4602_v62 = vadd.f32 %v9019_v4, %v4569_v3  ;;  %v4747_v58 = vmax.f32 %v4745_v30, %v4746_v54 }
 0x516   :  { %4837 = vadd.xlane.f32.xlu2 %v4836_v17  ;;  %v4741_v38 = vmax.f32 %v4739_v56, %v4740_v52 }
 0x517   :  { %5785 = vtanh.f32 %v4602_v62  ;;  %v4748_v28 = vrot.slane %v4747_v58, 1 }
 0x518   :  { %v4742_v50 = vrot.slane %v4741_v38, 1 }
 0x519   :  { %v4749_v63 = vmax.f32 %v4747_v58, %v4748_v28 }
 0x51a   :  { %v4743_v37 = vmax.f32 %v4741_v38, %v4742_v50  ;;  %v4956_v50 = vpop.xlane.xlu0 %4955 }
 0x51b   :  { %v4901_v51 = vmul.f32 %v4749_v63, %v4749_v63 }
 0x51c   :  { %v4571_v60 = vpop.f32.mrf.mxu3  ;;  %v4900_v32 = vmul.f32 %v4743_v37, %v4743_v37  ;;  %v4810_v20 = vsel %vm118_vm1, %v4749_v63, %v4743_v37  ;;  %v4986_v63 = vlaneseq }
 0x51d   :  { %v5786_v13 = vpop.eup %5785  ;;  %v4603_v23 = vadd.f32 %v9019_v4, %v4571_v60 }
 0x51e   :  { %v4750_v44 = vrot.slane %v5786_v13, 4  ;;  %4846 = vadd.xlane.f32.xlu2 %v4845_v2  ;;  %v4942_v31 = vsel %vm118_vm1, %v4901_v51, %v4900_v32 }
 0x51f   :  { %5787 = vtanh.f32 %v4603_v23 }
 0x520   :  { %v4751_v7 = vmax.f32 %v5786_v13, %v4750_v44 }
 0x522   :  { %v4752_v47 = vrot.slane %v4751_v7, 2  ;;  %v4959_v23 = vpop.xlane.xlu0 %4958 }
 0x524   :  { %v4753_v16 = vmax.f32 %v4751_v7, %v4752_v47  ;;  %v4962_v7 = vpop.xlane.xlu1 %4961 }
 0x525   :  { %v5788_v26 = vpop.eup %5787 }
 0x526   :  { %v4754_v48 = vrot.slane %v4753_v16, 1  ;;  %v4756_v29 = vrot.slane %v5788_v26, 4 }
 0x528   :  { %v4755_v18 = vmax.f32 %v4753_v16, %v4754_v48  ;;  %v4757_v9 = vmax.f32 %v5788_v26, %v4756_v29  ;;  %v9140_v16 = vand.u32 127, %v4986_v63  ;;  %v5019_v48 = vshrl.u32 %v4986_v63, 7 }
 0x52a   :  { %v4902_v39 = vmul.f32 %v4755_v18, %v4755_v18  ;;  %v4758_v1 = vrot.slane %v4757_v9, 2  ;;  %v4990_v51 = vperm.slane %v4962_v7, %v9140_v16  ;;  %5545 = vset.pattern.permute.xlu1 %v5019_v48  ;;  %5544 = vset.pattern.permute.xlu0 %v5019_v48 }
 0x52b   :  { %5543 = vset.pattern.permute.xlu2 %v5019_v48 }
 0x52c   :  { %v4574_v34 = vpop.f32.mrf.mxu3  ;;  %v4943_v53 = vsel %vm122_vm2, %v4902_v39, %v4942_v31  ;;  %v4759_v14 = vmax.f32 %v4757_v9, %v4758_v1 }
 0x52d   :  { %v4604_v36 = vadd.f32 %v9019_v4, %v4574_v34  ;;  %v4972_v6 = vsel %vm3257_vm7, %v4943_v53, 0.0 }
 0x52e   :  { %4973 = vadd.xlane.f32.xlu0 %v4972_v6  ;;  %v4760_v55 = vrot.slane %v4759_v14, 1 }
 0x52f   :  { %5789 = vtanh.f32 %v4604_v36 }
 0x530   :  { %v4761_v56 = vmax.f32 %v4759_v14, %v4760_v55 }
 0x531   :  { %v4965_v60 = vpop.xlane.xlu1 %4964 }
 0x532   :  { %v4903_v10 = vmul.f32 %v4761_v56, %v4761_v56 }
 0x534   :  { %v4576_v61 = vpop.f32.mrf.mxu3 }
 0x535   :  { %v5790_v19 = vpop.eup %5789  ;;  %v4605_v35 = vadd.f32 %v9019_v4, %v4576_v61  ;;  %v4811_v4 = vsel %vm122_vm2, %v4755_v18, %v4810_v20  ;;  %v4991_v18 = vperm.slane %v4965_v60, %v9140_v16 }
 0x536   :  { %v4762_v12 = vrot.slane %v5790_v19, 4  ;;  %4831 = vadd.xlane.f32.xlu0 %v4830_v5  ;;  %v4828_v11 = vmul.f32 %v4811_v4, %v9081_v24  ;;  %v4826_v24 = vmul.f32 %v9093_v42, %v9078_v40  ;;  %v4989_v42 = vperm.slane %v4959_v23, %v9140_v16 }
 0x537   :  { %5791 = vtanh.f32 %v4605_v35 }
 0x538   :  { %v4763_v0 = vmax.f32 %v5790_v19, %v4762_v12  ;;  %v4848_v41 = vsel %vm3257_vm7, %v4828_v11, 0.0  ;;  %v4842_v13 = vsel %vm3257_vm7, %v4826_v24, 0.0 }
 0x539   :  { %v9142_v40 = vpop.xlane.xlu1 %4834 }
 0x53a   :  { %v4764_v45 = vrot.slane %v4763_v0, 2 }
 0x53c   :  { %v4765_v57 = vmax.f32 %v4763_v0, %v4764_v45 }
 0x53d   :  { %v5792_v33 = vpop.eup %5791 }
 0x53e   :  { %v4768_v22 = vrot.slane %v5792_v33, 4  ;;  %4840 = vadd.xlane.f32.xlu0 %v4839_v43  ;;  %v4766_v46 = vrot.slane %v4765_v57, 1 }
 0x540   :  { %v4769_v8 = vmax.f32 %v5792_v33, %v4768_v22  ;;  %v4767_v3 = vmax.f32 %v4765_v57, %v4766_v46 }
 0x542   :  { %v4770_v30 = vrot.slane %v4769_v8, 2  ;;  %v4904_v17 = vmul.f32 %v4767_v3, %v4767_v3  ;;  %v4812_v38 = vsel %vm118_vm1, %v4767_v3, %v4761_v56 }
 0x544   :  { %v4771_v15 = vmax.f32 %v4769_v8, %v4770_v30  ;;  %v4944_v52 = vsel %vm118_vm1, %v4904_v17, %v4903_v10  ;;  %v5798_v30 = vmov 0  }
 0x546   :  { %4849 = vadd.xlane.f32.xlu0 %v4848_v41  ;;  %v4772_v62 = vrot.slane %v4771_v15, 1 }
 0x548   :  { %v4773_v25 = vmax.f32 %v4771_v15, %v4772_v62 }
 0x54a   :  { %v4905_v54 = vmul.f32 %v4773_v25, %v4773_v25  ;;  %v4813_v2 = vsel %vm122_vm2, %v4773_v25, %v4812_v38 }
 0x54b   :  { %v4829_v44 = vmul.f32 %v4813_v2, %v9097_v49  ;;  %v4988_v49 = vperm.slane %v4956_v50, %v9140_v16 }
 0x54c   :  { %v4945_v27 = vsel %vm122_vm2, %v4905_v54, %v4944_v52 }
 0x54d   :  { %v4975_v58 = vsel %vm3257_vm7, %v4945_v27, 0.0  ;;  %v4851_v28 = vsel %vm3257_vm7, %v4829_v44, 0.0  ;;  %v4996_v31 = vsel %vm118_vm1, %v4989_v42, %v4988_v49 }
 0x54e   :  { %4976 = vadd.xlane.f32.xlu1 %v4975_v58  ;;  %v4997_v53 = vsel %vm122_vm2, %v4990_v51, %v4996_v31 }
 0x54f   :  { %v4998_v6 = vsel %vm126_vm3, %v4991_v18, %v4997_v53 }
 0x556   :  { %4843 = vadd.xlane.f32.xlu1 %v4842_v13 }
 0x559   :  { %v4968_v47 = vpop.xlane.xlu2 %4967 }
 0x55a   :  { %v4992_v39 = vperm.slane %v4968_v47, %v9140_v16 }
 0x55c   :  { %v4999_v26 = vsel %vm844_vm12, %v4992_v39, %v4998_v6 }
 0x55e   :  { %4852 = vadd.xlane.f32.xlu1 %v4851_v28 }
 0x579   :  { %v4971_v37 = vpop.xlane.xlu2 %4970 }
 0x57a   :  { %v4993_v34 = vperm.slane %v4971_v37, %v9140_v16 }
 0x57c   :  { %v5000_v21 = vsel %vm4874_vm0, %v4993_v34, %v4999_v26 }
 0x581   :  { %v4881_v9 = vpop.xlane.xlu2 %4880 }
 0x589   :  { %v4838_v3 = vpop.xlane.xlu2 %4837 }
 0x591   :  { %v4847_v15 = vpop.xlane.xlu2 %4846 }
 0x5a1   :  { %v4974_v32 = vpop.xlane.xlu0 %4973 }
 0x5a2   :  { %v4994_v36 = vperm.slane %v4974_v32, %v9140_v16 }
 0x5a4   :  { %v5001_v19 = vsel %vm846_vm14, %v4994_v36, %v5000_v21 }
 0x5a9   :  { %v4832_v41 = vpop.xlane.xlu0 %4831 }
 0x5b1   :  { %v4841_v17 = vpop.xlane.xlu0 %4840 }
 0x5b9   :  { %v4850_v10 = vpop.xlane.xlu0 %4849 }
 0x5c1   :  { %v4977_v29 = vpop.xlane.xlu1 %4976 }
 0x5c2   :  { %v4995_v61 = vperm.slane %v4977_v29, %v9140_v16 }
 0x5c4   :  { %v5002_v35 = vsel %vm4877_vm4, %v4995_v61, %v5001_v19 }
 0x5c5   :  { %v5004_v5 = vmul.f32 %v5002_v35, %v4881_v9 }
 0x5c7   :  { %v5005_v12 = vmax.f32 %v5004_v5, 1e-16 }
 0x5c9   :  { %5793 = vrsqrt.f32 %v5005_v12  ;;  %vm5012_vm6 = vweird.f32 %v5005_v12  ;;  %v4844_v25 = vpop.xlane.xlu1 %4843 }
 0x5cf   :  { %v5794_v0 = vpop.eup %5793 }
 0x5d0   :  { %v5007_v1 = vmul.f32 %v5794_v0, %v5005_v12  ;;  %vm5013_vm5 = vweird.f32 %v5794_v0 }
 0x5d1   :  { %vm5014_vm9 = vmor %vm5012_vm6, %vm5013_vm5  ;;  %v4853_v54 = vpop.xlane.xlu1 %4852 }
 0x5d2   :  { %v5008_v59 = vmul.f32 %v5794_v0, %v5007_v1 }
 0x5d4   :  { %v5009_v45 = vmul.f32 0.5, %v5008_v59 }
 0x5d6   :  { %v5010_v57 = vsub.f32 1.5, %v5009_v45 }
 0x5d8   :  { %v5011_v33 = vmul.f32 %v5794_v0, %v5010_v57 }
 0x5da   :  { %v5015_v14 = vsel %vm5014_vm9, %v5794_v0, %v5011_v33 }
 0x5db   :  { %v5024_v43 = vperm.slane %v5015_v14, 1  ;;  %v5017_v20 = vperm.slane %v5015_v14, 0  ;;  %v5031_v22 = vperm.slane %v5015_v14, 2  ;;  %v5038_v4 = vperm.slane %v5015_v14, 3 }
 0x5dc   :  { %v5052_v46 = vperm.slane %v5015_v14, 5  ;;  %v5045_v8 = vperm.slane %v5015_v14, 4  ;;  %v5066_v55 = vperm.slane %v5015_v14, 7  ;;  %v5059_v11 = vperm.slane %v5015_v14, 6 }
 0x5dd   :  { %5029 = vperm.xlu0 %5544, %v5024_v43   ;;  %5022 = vperm.xlu2 %5543, %v5017_v20  }
 0x5de   :  { %5036 = vperm.xlu1 %5545, %v5031_v22  }
 0x5e5   :  { %5043 = vperm.xlu2 %5543, %v5038_v4   ;;  %5546 = vset.pattern.permute.xlu0 %v5798_v30 }
 0x5e6   :  { %5057 = vperm.xlu1 %5545, %v5052_v46  }
 0x5ed   :  { %5050 = vperm.xlu2 %5543, %v5045_v8  }
 0x5ee   :  { %5071 = vperm.xlu1 %5545, %v5066_v55  }
 0x5f5   :  { %5064 = vperm.xlu2 %5543, %v5059_v11  }
 0x5f6   :  { %5548 = vset.pattern.permute.xlu1 %v5798_v30 }
 0x5fd   :  { %5547 = vset.pattern.permute.xlu2 %v5798_v30 }
 0x637   :  { %v5023_v56 = vpop.permute.xlu2 %5022 }
 0x638   :  { %v5081_v62 = vmul.f32 %v5023_v56, %v4832_v41 }
 0x63a   :  { %5098 = vperm.xlu0 %5546, %v5081_v62  }
 0x63f   :  { %v5044_v52 = vpop.permute.xlu2 %5043 }
 0x640   :  { %v5084_v2 = vmul.f32 %v5044_v52, %v4841_v17 }
 0x647   :  { %v5051_v38 = vpop.permute.xlu2 %5050 }
 0x648   :  { %v5085_v28 = vmul.f32 %v5051_v38, %v4844_v25 }
 0x64f   :  { %v5030_v27 = vpop.permute.xlu0 %5029  ;;  %v5065_v50 = vpop.permute.xlu2 %5064 }
 0x650   :  { %v5082_v58 = vmul.f32 %v5030_v27, %v9142_v40  ;;  %v5037_v24 = vpop.permute.xlu1 %5036  ;;  %v5087_v60 = vmul.f32 %v5065_v50, %v4850_v10 }
 0x651   :  { %v5083_v13 = vmul.f32 %v5037_v24, %v4838_v3 }
 0x652   :  { %5101 = vperm.xlu2 %5547, %v5082_v58  }
 0x653   :  { %5104 = vperm.xlu1 %5548, %v5083_v13  }
 0x658   :  { %v5058_v44 = vpop.permute.xlu1 %5057 }
 0x659   :  { %v5086_v7 = vmul.f32 %v5058_v44, %v4847_v15 }
 0x65a   :  { %5107 = vperm.xlu2 %5547, %v5084_v2  }
 0x65b   :  { %5110 = vperm.xlu1 %5548, %v5085_v28   ;;  %5113 = vperm.xlu0 %5546, %v5086_v7  }
 0x660   :  { %v5072_v47 = vpop.permute.xlu1 %5071 }
 0x661   :  { %v5088_v63 = vmul.f32 %v5072_v47, %v4853_v54 }
 0x662   :  { %5116 = vperm.xlu2 %5547, %v5087_v60  }
 0x663   :  { %5119 = vperm.xlu1 %5548, %v5088_v63  }
 0x6ac   :  { %v5102_v23 = vpop.permute.xlu2 %5101  ;;  %v5099_v40 = vpop.permute.xlu0 %5098 }
 0x6ad   :  { %v5121_v37 = vperm.slane %v5099_v40, %v9140_v16  ;;  %v5122_v48 = vperm.slane %v5102_v23, %v9140_v16 }
 0x6af   :  { %v5129_v18 = vsel %vm118_vm1, %v5122_v48, %v5121_v37  ;;  %vm5137_vm1 = vcmask 23552  }
 0x6b4   :  { %v5108_v51 = vpop.permute.xlu2 %5107 }
 0x6b5   :  { %v5124_v34 = vperm.slane %v5108_v51, %v9140_v16 }
 0x6bc   :  { %v5117_v29 = vpop.permute.xlu2 %5116 }
 0x6bd   :  { %v5127_v61 = vperm.slane %v5117_v29, %v9140_v16 }
 0x6c5   :  { %v5105_v42 = vpop.permute.xlu1 %5104 }
 0x6c6   :  { %v5123_v49 = vperm.slane %v5105_v42, %v9140_v16 }
 0x6c8   :  { %v5130_v32 = vsel %vm122_vm2, %v5123_v49, %v5129_v18 }
 0x6c9   :  { %v5131_v6 = vsel %vm126_vm3, %v5124_v34, %v5130_v32 }
 0x6cd   :  { %v5114_v39 = vpop.permute.xlu0 %5113  ;;  %v5111_v31 = vpop.permute.xlu1 %5110 }
 0x6ce   :  { %v5125_v53 = vperm.slane %v5111_v31, %v9140_v16  ;;  %v5126_v36 = vperm.slane %v5114_v39, %v9140_v16 }
 0x6d0   :  { %v5132_v26 = vsel %vm844_vm12, %v5125_v53, %v5131_v6 }
 0x6d1   :  { %v5133_v21 = vsel %vm4874_vm0, %v5126_v36, %v5132_v26 }
 0x6d2   :  { %v5134_v35 = vsel %vm846_vm14, %v5127_v61, %v5133_v21 }
 0x6d5   :  { %v5120_v19 = vpop.permute.xlu1 %5119 }
 0x6d6   :  { %v5128_v9 = vperm.slane %v5120_v19, %v9140_v16 }
 0x6d8   :  { %v5135_v5 = vsel %vm4877_vm4, %v5128_v9, %v5134_v35 }
 0x6d9   :  { %5138 = vst.msk [vmem:[%s9188_s10] sm:$0xff] %vm5137_vm1, %v5135_v5 }

</bundles_post_ra>
